<compile_context>
chip_gen: v6e
topology: v6e:2x2x1
jax: 0.10.0
libtpu: 0.0.40
codegen_flags: <defaults>
</compile_context>

<pallas_src>
import jax
import jax.numpy as jnp
from jax import lax
from jax.experimental import pallas as pl
from jax.experimental.pallas import tpu as pltpu


def _default_compute_dtype():
    """bf16 multiplies on v6e/v7x (native bf16 VPU); f32 elsewhere (v5e/v5p/v4...)."""
    try:
        kind = jax.devices()[0].device_kind.lower()
    except Exception:
        return jnp.float32
    if ("v6" in kind) or ("v7" in kind) or ("7x" in kind):
        return jnp.bfloat16
    return jnp.float32


def _make_ppeg_kernel(H, W, Cb, K, compute_dtype):
    PAD = K // 2
    HP, WP = H + 2 * PAD, W + 2 * PAD

    def kernel(w_ref, b_ref, x_ref, o_ref, xpad):
        # w_ref : (K*K, Cb)       folded depthwise weights (no identity), compute dtype
        # b_ref : (1, Cb)         summed biases, f32
        # x_ref : (1, N, Cb)      full token block (cls + H*W feature tokens), f32
        # o_ref : (1, N, Cb)      full output block
        # xpad  : (HP, WP, Cb)    VMEM scratch: zero-padded feature slab, compute dtype

        # --- build the halo-padded feature slab in VMEM (pad fused into the kernel) ---
        xpad[...] = jnp.zeros((HP, WP, Cb), compute_dtype)
        for h in range(H):
            row = x_ref[0, 1 + h * W: 1 + (h + 1) * W, :]            # (W, Cb) f32
            xpad[PAD + h, PAD:PAD + W, :] = row.astype(compute_dtype)

        # --- depthwise conv with the folded 7x7 kernel ---
        # Sublane (W) shift hoisted to once per dw; dh shifts are leading-dim selects.
        acc = jnp.zeros((H, W, Cb), jnp.float32)
        for dw in range(K):
            xs = xpad[:, dw:dw + W, :]                               # (HP, W, Cb)
            for dh in range(K):
                w_tap = w_ref[dh * K + dw, :]                        # (Cb,) row, bcast
                acc = acc + (xs[dh:dh + H] * w_tap).astype(jnp.float32)

        bias = b_ref[0, :]                                           # (Cb,) f32

        # --- fused output write: cls passthrough + (identity + convs + bias) ---
        # (no host-side concatenate; identity term added in f32)
        o_ref[0, :1, :] = x_ref[0, :1, :]
        for h in range(H):
            idn = x_ref[0, 1 + h * W: 1 + (h + 1) * W, :]            # identity, f32
            o_ref[0, 1 + h * W: 1 + (h + 1) * W, :] = (
                acc[h] + idn + bias).astype(o_ref.dtype)

    return kernel


def ppeg_forward(x, H, W, params, *, compute_dtype=None, c_block=None):
    """x: (B, 1 + H*W, C). params: depthwise weights (k,k,C) and biases (C,)."""
    B, N, C = x.shape
    assert N == 1 + H * W
    K, PAD = 7, 3

    if compute_dtype is None:
        compute_dtype = _default_compute_dtype()
    if c_block is None:
        # Channels are independent in a depthwise conv -> perfect parallel tiling.
        c_block = 128 if (C % 128 == 0) else C
    assert C % c_block == 0

    # Fold 7x7 + 5x5 + 3x3 depthwise kernels into one effective 7x7 kernel (f32),
    # reshape lane-dense to (49, C), then cast for the multiply path.
    w7 = params["w7"].astype(jnp.float32)
    w5 = params["w5"].astype(jnp.float32)
    w3 = params["w3"].astype(jnp.float32)
    w_eff = (w7
             + jnp.pad(w5, ((1, 1), (1, 1), (0, 0)))
             + jnp.pad(w3, ((2, 2), (2, 2), (0, 0))))
    w_eff = w_eff.reshape(K * K, C).astype(compute_dtype)
    b_eff = (params["b7"] + params["b5"] + params["b3"]).astype(jnp.float32).reshape(1, C)

    kernel = _make_ppeg_kernel(H, W, c_block, K, compute_dtype)

    # NOTE: output could additionally alias x via input_output_aliases to donate the
    # buffer; skipped here so x stays usable by the caller (e.g. the reference check).
    out = pl.pallas_call(
        kernel,
        out_shape=jax.ShapeDtypeStruct((B, N, C), x.dtype),
        grid=(B, C // c_block),
        in_specs=[
            pl.BlockSpec((K * K, c_block), lambda b, c: (0, c)),
            pl.BlockSpec((1, c_block), lambda b, c: (0, c)),
            pl.BlockSpec((1, N, c_block), lambda b, c: (b, 0, c)),
        ],
        out_specs=pl.BlockSpec((1, N, c_block), lambda b, c: (b, 0, c)),
        scratch_shapes=[pltpu.VMEM((H + 2 * PAD, W + 2 * PAD, c_block), compute_dtype)],
        compiler_params=pltpu.CompilerParams(
            dimension_semantics=("parallel", "parallel")),
    )(w_eff, b_eff, x)
    return out


def ppeg_reference(x, H, W, params):
    """Pure-JAX reference mirroring the PyTorch module (NCHW depthwise convs)."""
    B, N, C = x.shape
    cls_tok = x[:, :1, :]
    f = jnp.transpose(x[:, 1:, :], (0, 2, 1)).reshape(B, C, H, W)  # NCHW

    def dwconv(inp, w_hwc, b_c):
        w_oihw = jnp.transpose(w_hwc, (2, 0, 1))[:, None, :, :]    # (C,1,k,k)
        y = lax.conv_general_dilated(
            inp, w_oihw, window_strides=(1, 1), padding="SAME",
            feature_group_count=C,
            dimension_numbers=("NCHW", "OIHW", "NCHW"))
        return y + b_c[None, :, None, None]

    y = (f
         + dwconv(f, params["w7"], params["b7"])
         + dwconv(f, params["w5"], params["b5"])
         + dwconv(f, params["w3"], params["b3"]))
    y = y.reshape(B, C, H * W).transpose(0, 2, 1)
    return jnp.concatenate([cls_tok, y], axis=1)


if __name__ == "__main__":
    # Small shapes consistent with the module: C=128 (lane-aligned), H=W=8, B=2.
    B, C, H, W = 2, 128, 8, 8
    N = 1 + H * W

    key = jax.random.PRNGKey(0)
    kx, k7, k5, k3, kb7, kb5, kb3 = jax.random.split(key, 7)

    x = jax.random.normal(kx, (B, N, C), jnp.float32)
    params = {
        # depthwise kernels stored as (k, k, C); PyTorch would be (C, 1, k, k)
        "w7": jax.random.normal(k7, (7, 7, C), jnp.float32) * 0.05,
        "w5": jax.random.normal(k5, (5, 5, C), jnp.float32) * 0.05,
        "w3": jax.random.normal(k3, (3, 3, C), jnp.float32) * 0.05,
        "b7": jax.random.normal(kb7, (C,), jnp.float32) * 0.05,
        "b5": jax.random.normal(kb5, (C,), jnp.float32) * 0.05,
        "b3": jax.random.normal(kb3, (C,), jnp.float32) * 0.05,
    }

    out = jax.block_until_ready(ppeg_forward(x, H, W, params))
    ref = jax.block_until_ready(ppeg_reference(x, H, W, params))

    assert out.shape == (B, N, C), out.shape
    # bf16 multiplies (v6e/v7x) only touch the small conv-tap terms (identity stays f32),
    # so a modest tolerance suffices; f32 path matches tightly.
    tol = 1e-4 if _default_compute_dtype() == jnp.float32 else 3e-2
    err = float(jnp.max(jnp.abs(out - ref)))
    assert jnp.allclose(out, ref, atol=tol, rtol=tol), err
    print("KERNEL_OK")
</pallas_src>

<mosaic_0001>
module attributes {stable_mosaic.version = 11 : i64} {
  func.func @kernel(%arg0: i32, %arg1: i32, %arg2: memref<49x128xf32, #tpu.memory_space<vmem>>, %arg3: memref<1x128xf32, #tpu.memory_space<vmem>>, %arg4: memref<1x65x128xf32, #tpu.memory_space<vmem>>, %arg5: memref<1x65x128xf32, #tpu.memory_space<vmem>>, %arg6: memref<14x14x128xf32, #tpu.memory_space<vmem>>) attributes {dimension_semantics = [#tpu.dimension_semantics<parallel>, #tpu.dimension_semantics<parallel>], iteration_bounds = array<i64: 2, 1>, scalar_prefetch = 0 : i64, scratch_operands = 1 : i64, tpu.core_type = #tpu.core_type<tc>, window_params = [{transform_indices = @transform_0, window_bounds = array<i64: 49, 128>}, {transform_indices = @transform_1, window_bounds = array<i64: 1, 128>}, {transform_indices = @transform_2, window_bounds = array<i64: 1, 65, 128>}, {transform_indices = @transform_3, window_bounds = array<i64: 1, 65, 128>}]} {
    %cst = arith.constant 0.000000e+00 : f32
    %0 = vector.broadcast %cst : f32 to vector<14x14x128xf32>
    %c0 = arith.constant 0 : index
    %c0_0 = arith.constant 0 : index
    %c0_1 = arith.constant 0 : index
    %1 = vector.load %arg6[%c0, %c0_0, %c0_1] : memref<14x14x128xf32, #tpu.memory_space<vmem>>, vector<14x14x128xf32>
    tpu.vector_store %arg6[%c0, %c0_0, %c0_1], %0 {strides = array<i32>} : memref<14x14x128xf32, #tpu.memory_space<vmem>>, vector<14x14x128xf32>,
    %c0_2 = arith.constant 0 : index
    %c1 = arith.constant 1 : index
    %c0_3 = arith.constant 0 : index
    %2 = vector.load %arg4[%c0_2, %c1, %c0_3] : memref<1x65x128xf32, #tpu.memory_space<vmem>>, vector<1x8x128xf32>
    %3 = vector.shape_cast %2 : vector<1x8x128xf32> to vector<8x128xf32>
    %c3 = arith.constant 3 : index
    %c3_4 = arith.constant 3 : index
    %c0_5 = arith.constant 0 : index
    %4 = vector.load %arg6[%c3, %c3_4, %c0_5] : memref<14x14x128xf32, #tpu.memory_space<vmem>>, vector<1x8x128xf32>
    %5 = vector.shape_cast %4 : vector<1x8x128xf32> to vector<8x128xf32>
    %6 = vector.shape_cast %3 : vector<8x128xf32> to vector<1x8x128xf32>
    tpu.vector_store %arg6[%c3, %c3_4, %c0_5], %6 {strides = array<i32>} : memref<14x14x128xf32, #tpu.memory_space<vmem>>, vector<1x8x128xf32>,
    %c0_6 = arith.constant 0 : index
    %c9 = arith.constant 9 : index
    %c0_7 = arith.constant 0 : index
    %7 = vector.load %arg4[%c0_6, %c9, %c0_7] : memref<1x65x128xf32, #tpu.memory_space<vmem>>, vector<1x8x128xf32>
    %8 = vector.shape_cast %7 : vector<1x8x128xf32> to vector<8x128xf32>
    %c4 = arith.constant 4 : index
    %c3_8 = arith.constant 3 : index
    %c0_9 = arith.constant 0 : index
    %9 = vector.load %arg6[%c4, %c3_8, %c0_9] : memref<14x14x128xf32, #tpu.memory_space<vmem>>, vector<1x8x128xf32>
    %10 = vector.shape_cast %9 : vector<1x8x128xf32> to vector<8x128xf32>
    %11 = vector.shape_cast %8 : vector<8x128xf32> to vector<1x8x128xf32>
    tpu.vector_store %arg6[%c4, %c3_8, %c0_9], %11 {strides = array<i32>} : memref<14x14x128xf32, #tpu.memory_space<vmem>>, vector<1x8x128xf32>,
    %c0_10 = arith.constant 0 : index
    %c17 = arith.constant 17 : index
    %c0_11 = arith.constant 0 : index
    %12 = vector.load %arg4[%c0_10, %c17, %c0_11] : memref<1x65x128xf32, #tpu.memory_space<vmem>>, vector<1x8x128xf32>
    %13 = vector.shape_cast %12 : vector<1x8x128xf32> to vector<8x128xf32>
    %c5 = arith.constant 5 : index
    %c3_12 = arith.constant 3 : index
    %c0_13 = arith.constant 0 : index
    %14 = vector.load %arg6[%c5, %c3_12, %c0_13] : memref<14x14x128xf32, #tpu.memory_space<vmem>>, vector<1x8x128xf32>
    %15 = vector.shape_cast %14 : vector<1x8x128xf32> to vector<8x128xf32>
    %16 = vector.shape_cast %13 : vector<8x128xf32> to vector<1x8x128xf32>
    tpu.vector_store %arg6[%c5, %c3_12, %c0_13], %16 {strides = array<i32>} : memref<14x14x128xf32, #tpu.memory_space<vmem>>, vector<1x8x128xf32>,
    %c0_14 = arith.constant 0 : index
    %c25 = arith.constant 25 : index
    %c0_15 = arith.constant 0 : index
    %17 = vector.load %arg4[%c0_14, %c25, %c0_15] : memref<1x65x128xf32, #tpu.memory_space<vmem>>, vector<1x8x128xf32>
    %18 = vector.shape_cast %17 : vector<1x8x128xf32> to vector<8x128xf32>
    %c6 = arith.constant 6 : index
    %c3_16 = arith.constant 3 : index
    %c0_17 = arith.constant 0 : index
    %19 = vector.load %arg6[%c6, %c3_16, %c0_17] : memref<14x14x128xf32, #tpu.memory_space<vmem>>, vector<1x8x128xf32>
    %20 = vector.shape_cast %19 : vector<1x8x128xf32> to vector<8x128xf32>
    %21 = vector.shape_cast %18 : vector<8x128xf32> to vector<1x8x128xf32>
    tpu.vector_store %arg6[%c6, %c3_16, %c0_17], %21 {strides = array<i32>} : memref<14x14x128xf32, #tpu.memory_space<vmem>>, vector<1x8x128xf32>,
    %c0_18 = arith.constant 0 : index
    %c33 = arith.constant 33 : index
    %c0_19 = arith.constant 0 : index
    %22 = vector.load %arg4[%c0_18, %c33, %c0_19] : memref<1x65x128xf32, #tpu.memory_space<vmem>>, vector<1x8x128xf32>
    %23 = vector.shape_cast %22 : vector<1x8x128xf32> to vector<8x128xf32>
    %c7 = arith.constant 7 : index
    %c3_20 = arith.constant 3 : index
    %c0_21 = arith.constant 0 : index
    %24 = vector.load %arg6[%c7, %c3_20, %c0_21] : memref<14x14x128xf32, #tpu.memory_space<vmem>>, vector<1x8x128xf32>
    %25 = vector.shape_cast %24 : vector<1x8x128xf32> to vector<8x128xf32>
    %26 = vector.shape_cast %23 : vector<8x128xf32> to vector<1x8x128xf32>
    tpu.vector_store %arg6[%c7, %c3_20, %c0_21], %26 {strides = array<i32>} : memref<14x14x128xf32, #tpu.memory_space<vmem>>, vector<1x8x128xf32>,
    %c0_22 = arith.constant 0 : index
    %c41 = arith.constant 41 : index
    %c0_23 = arith.constant 0 : index
    %27 = vector.load %arg4[%c0_22, %c41, %c0_23] : memref<1x65x128xf32, #tpu.memory_space<vmem>>, vector<1x8x128xf32>
    %28 = vector.shape_cast %27 : vector<1x8x128xf32> to vector<8x128xf32>
    %c8 = arith.constant 8 : index
    %c3_24 = arith.constant 3 : index
    %c0_25 = arith.constant 0 : index
    %29 = vector.load %arg6[%c8, %c3_24, %c0_25] : memref<14x14x128xf32, #tpu.memory_space<vmem>>, vector<1x8x128xf32>
    %30 = vector.shape_cast %29 : vector<1x8x128xf32> to vector<8x128xf32>
    %31 = vector.shape_cast %28 : vector<8x128xf32> to vector<1x8x128xf32>
    tpu.vector_store %arg6[%c8, %c3_24, %c0_25], %31 {strides = array<i32>} : memref<14x14x128xf32, #tpu.memory_space<vmem>>, vector<1x8x128xf32>,
    %c0_26 = arith.constant 0 : index
    %c49 = arith.constant 49 : index
    %c0_27 = arith.constant 0 : index
    %32 = vector.load %arg4[%c0_26, %c49, %c0_27] : memref<1x65x128xf32, #tpu.memory_space<vmem>>, vector<1x8x128xf32>
    %33 = vector.shape_cast %32 : vector<1x8x128xf32> to vector<8x128xf32>
    %c9_28 = arith.constant 9 : index
    %c3_29 = arith.constant 3 : index
    %c0_30 = arith.constant 0 : index
    %34 = vector.load %arg6[%c9_28, %c3_29, %c0_30] : memref<14x14x128xf32, #tpu.memory_space<vmem>>, vector<1x8x128xf32>
    %35 = vector.shape_cast %34 : vector<1x8x128xf32> to vector<8x128xf32>
    %36 = vector.shape_cast %33 : vector<8x128xf32> to vector<1x8x128xf32>
    tpu.vector_store %arg6[%c9_28, %c3_29, %c0_30], %36 {strides = array<i32>} : memref<14x14x128xf32, #tpu.memory_space<vmem>>, vector<1x8x128xf32>,
    %c0_31 = arith.constant 0 : index
    %c57 = arith.constant 57 : index
    %c0_32 = arith.constant 0 : index
    %37 = vector.load %arg4[%c0_31, %c57, %c0_32] : memref<1x65x128xf32, #tpu.memory_space<vmem>>, vector<1x8x128xf32>
    %38 = vector.shape_cast %37 : vector<1x8x128xf32> to vector<8x128xf32>
    %c10 = arith.constant 10 : index
    %c3_33 = arith.constant 3 : index
    %c0_34 = arith.constant 0 : index
    %39 = vector.load %arg6[%c10, %c3_33, %c0_34] : memref<14x14x128xf32, #tpu.memory_space<vmem>>, vector<1x8x128xf32>
    %40 = vector.shape_cast %39 : vector<1x8x128xf32> to vector<8x128xf32>
    %41 = vector.shape_cast %38 : vector<8x128xf32> to vector<1x8x128xf32>
    tpu.vector_store %arg6[%c10, %c3_33, %c0_34], %41 {strides = array<i32>} : memref<14x14x128xf32, #tpu.memory_space<vmem>>, vector<1x8x128xf32>,
    %cst_35 = arith.constant 0.000000e+00 : f32
    %42 = vector.broadcast %cst_35 : f32 to vector<8x8x128xf32>
    %c0_36 = arith.constant 0 : index
    %c0_37 = arith.constant 0 : index
    %c0_38 = arith.constant 0 : index
    %43 = vector.load %arg6[%c0_36, %c0_37, %c0_38] : memref<14x14x128xf32, #tpu.memory_space<vmem>>, vector<14x8x128xf32>
    %c0_39 = arith.constant 0 : index
    %c0_40 = arith.constant 0 : index
    %44 = vector.load %arg2[%c0_39, %c0_40] : memref<49x128xf32, #tpu.memory_space<vmem>>, vector<1x128xf32>
    %45 = vector.shape_cast %44 : vector<1x128xf32> to vector<128xf32>
    %46 = vector.extract_strided_slice %43 {offsets = [0, 0, 0], sizes = [8, 8, 128], strides = [1, 1, 1]} : vector<14x8x128xf32> to vector<8x8x128xf32>
    %47 = vector.shape_cast %45 : vector<128xf32> to vector<1x1x128xf32>
    %48 = vector.broadcast %47 : vector<1x1x128xf32> to vector<8x8x128xf32>
    %49 = arith.mulf %46, %48 : vector<8x8x128xf32>
    %50 = arith.addf %42, %49 : vector<8x8x128xf32>
    %c7_41 = arith.constant 7 : index
    %c0_42 = arith.constant 0 : index
    %51 = vector.load %arg2[%c7_41, %c0_42] : memref<49x128xf32, #tpu.memory_space<vmem>>, vector<1x128xf32>
    %52 = vector.shape_cast %51 : vector<1x128xf32> to vector<128xf32>
    %53 = vector.extract_strided_slice %43 {offsets = [1, 0, 0], sizes = [8, 8, 128], strides = [1, 1, 1]} : vector<14x8x128xf32> to vector<8x8x128xf32>
    %54 = vector.shape_cast %52 : vector<128xf32> to vector<1x1x128xf32>
    %55 = vector.broadcast %54 : vector<1x1x128xf32> to vector<8x8x128xf32>
    %56 = arith.mulf %53, %55 : vector<8x8x128xf32>
    %57 = arith.addf %50, %56 : vector<8x8x128xf32>
    %c14 = arith.constant 14 : index
    %c0_43 = arith.constant 0 : index
    %58 = vector.load %arg2[%c14, %c0_43] : memref<49x128xf32, #tpu.memory_space<vmem>>, vector<1x128xf32>
    %59 = vector.shape_cast %58 : vector<1x128xf32> to vector<128xf32>
    %60 = vector.extract_strided_slice %43 {offsets = [2, 0, 0], sizes = [8, 8, 128], strides = [1, 1, 1]} : vector<14x8x128xf32> to vector<8x8x128xf32>
    %61 = vector.shape_cast %59 : vector<128xf32> to vector<1x1x128xf32>
    %62 = vector.broadcast %61 : vector<1x1x128xf32> to vector<8x8x128xf32>
    %63 = arith.mulf %60, %62 : vector<8x8x128xf32>
    %64 = arith.addf %57, %63 : vector<8x8x128xf32>
    %c21 = arith.constant 21 : index
    %c0_44 = arith.constant 0 : index
    %65 = vector.load %arg2[%c21, %c0_44] : memref<49x128xf32, #tpu.memory_space<vmem>>, vector<1x128xf32>
    %66 = vector.shape_cast %65 : vector<1x128xf32> to vector<128xf32>
    %67 = vector.extract_strided_slice %43 {offsets = [3, 0, 0], sizes = [8, 8, 128], strides = [1, 1, 1]} : vector<14x8x128xf32> to vector<8x8x128xf32>
    %68 = vector.shape_cast %66 : vector<128xf32> to vector<1x1x128xf32>
    %69 = vector.broadcast %68 : vector<1x1x128xf32> to vector<8x8x128xf32>
    %70 = arith.mulf %67, %69 : vector<8x8x128xf32>
    %71 = arith.addf %64, %70 : vector<8x8x128xf32>
    %c28 = arith.constant 28 : index
    %c0_45 = arith.constant 0 : index
    %72 = vector.load %arg2[%c28, %c0_45] : memref<49x128xf32, #tpu.memory_space<vmem>>, vector<1x128xf32>
    %73 = vector.shape_cast %72 : vector<1x128xf32> to vector<128xf32>
    %74 = vector.extract_strided_slice %43 {offsets = [4, 0, 0], sizes = [8, 8, 128], strides = [1, 1, 1]} : vector<14x8x128xf32> to vector<8x8x128xf32>
    %75 = vector.shape_cast %73 : vector<128xf32> to vector<1x1x128xf32>
    %76 = vector.broadcast %75 : vector<1x1x128xf32> to vector<8x8x128xf32>
    %77 = arith.mulf %74, %76 : vector<8x8x128xf32>
    %78 = arith.addf %71, %77 : vector<8x8x128xf32>
    %c35 = arith.constant 35 : index
    %c0_46 = arith.constant 0 : index
    %79 = vector.load %arg2[%c35, %c0_46] : memref<49x128xf32, #tpu.memory_space<vmem>>, vector<1x128xf32>
    %80 = vector.shape_cast %79 : vector<1x128xf32> to vector<128xf32>
    %81 = vector.extract_strided_slice %43 {offsets = [5, 0, 0], sizes = [8, 8, 128], strides = [1, 1, 1]} : vector<14x8x128xf32> to vector<8x8x128xf32>
    %82 = vector.shape_cast %80 : vector<128xf32> to vector<1x1x128xf32>
    %83 = vector.broadcast %82 : vector<1x1x128xf32> to vector<8x8x128xf32>
    %84 = arith.mulf %81, %83 : vector<8x8x128xf32>
    %85 = arith.addf %78, %84 : vector<8x8x128xf32>
    %c42 = arith.constant 42 : index
    %c0_47 = arith.constant 0 : index
    %86 = vector.load %arg2[%c42, %c0_47] : memref<49x128xf32, #tpu.memory_space<vmem>>, vector<1x128xf32>
    %87 = vector.shape_cast %86 : vector<1x128xf32> to vector<128xf32>
    %88 = vector.extract_strided_slice %43 {offsets = [6, 0, 0], sizes = [8, 8, 128], strides = [1, 1, 1]} : vector<14x8x128xf32> to vector<8x8x128xf32>
    %89 = vector.shape_cast %87 : vector<128xf32> to vector<1x1x128xf32>
    %90 = vector.broadcast %89 : vector<1x1x128xf32> to vector<8x8x128xf32>
    %91 = arith.mulf %88, %90 : vector<8x8x128xf32>
    %92 = arith.addf %85, %91 : vector<8x8x128xf32>
    %c0_48 = arith.constant 0 : index
    %c1_49 = arith.constant 1 : index
    %c0_50 = arith.constant 0 : index
    %93 = vector.load %arg6[%c0_48, %c1_49, %c0_50] : memref<14x14x128xf32, #tpu.memory_space<vmem>>, vector<14x8x128xf32>
    %c1_51 = arith.constant 1 : index
    %c0_52 = arith.constant 0 : index
    %94 = vector.load %arg2[%c1_51, %c0_52] : memref<49x128xf32, #tpu.memory_space<vmem>>, vector<1x128xf32>
    %95 = vector.shape_cast %94 : vector<1x128xf32> to vector<128xf32>
    %96 = vector.extract_strided_slice %93 {offsets = [0, 0, 0], sizes = [8, 8, 128], strides = [1, 1, 1]} : vector<14x8x128xf32> to vector<8x8x128xf32>
    %97 = vector.shape_cast %95 : vector<128xf32> to vector<1x1x128xf32>
    %98 = vector.broadcast %97 : vector<1x1x128xf32> to vector<8x8x128xf32>
    %99 = arith.mulf %96, %98 : vector<8x8x128xf32>
    %100 = arith.addf %92, %99 : vector<8x8x128xf32>
    %c8_53 = arith.constant 8 : index
    %c0_54 = arith.constant 0 : index
    %101 = vector.load %arg2[%c8_53, %c0_54] : memref<49x128xf32, #tpu.memory_space<vmem>>, vector<1x128xf32>
    %102 = vector.shape_cast %101 : vector<1x128xf32> to vector<128xf32>
    %103 = vector.extract_strided_slice %93 {offsets = [1, 0, 0], sizes = [8, 8, 128], strides = [1, 1, 1]} : vector<14x8x128xf32> to vector<8x8x128xf32>
    %104 = vector.shape_cast %102 : vector<128xf32> to vector<1x1x128xf32>
    %105 = vector.broadcast %104 : vector<1x1x128xf32> to vector<8x8x128xf32>
    %106 = arith.mulf %103, %105 : vector<8x8x128xf32>
    %107 = arith.addf %100, %106 : vector<8x8x128xf32>
    %c15 = arith.constant 15 : index
    %c0_55 = arith.constant 0 : index
    %108 = vector.load %arg2[%c15, %c0_55] : memref<49x128xf32, #tpu.memory_space<vmem>>, vector<1x128xf32>
    %109 = vector.shape_cast %108 : vector<1x128xf32> to vector<128xf32>
    %110 = vector.extract_strided_slice %93 {offsets = [2, 0, 0], sizes = [8, 8, 128], strides = [1, 1, 1]} : vector<14x8x128xf32> to vector<8x8x128xf32>
    %111 = vector.shape_cast %109 : vector<128xf32> to vector<1x1x128xf32>
    %112 = vector.broadcast %111 : vector<1x1x128xf32> to vector<8x8x128xf32>
    %113 = arith.mulf %110, %112 : vector<8x8x128xf32>
    %114 = arith.addf %107, %113 : vector<8x8x128xf32>
    %c22 = arith.constant 22 : index
    %c0_56 = arith.constant 0 : index
    %115 = vector.load %arg2[%c22, %c0_56] : memref<49x128xf32, #tpu.memory_space<vmem>>, vector<1x128xf32>
    %116 = vector.shape_cast %115 : vector<1x128xf32> to vector<128xf32>
    %117 = vector.extract_strided_slice %93 {offsets = [3, 0, 0], sizes = [8, 8, 128], strides = [1, 1, 1]} : vector<14x8x128xf32> to vector<8x8x128xf32>
    %118 = vector.shape_cast %116 : vector<128xf32> to vector<1x1x128xf32>
    %119 = vector.broadcast %118 : vector<1x1x128xf32> to vector<8x8x128xf32>
    %120 = arith.mulf %117, %119 : vector<8x8x128xf32>
    %121 = arith.addf %114, %120 : vector<8x8x128xf32>
    %c29 = arith.constant 29 : index
    %c0_57 = arith.constant 0 : index
    %122 = vector.load %arg2[%c29, %c0_57] : memref<49x128xf32, #tpu.memory_space<vmem>>, vector<1x128xf32>
    %123 = vector.shape_cast %122 : vector<1x128xf32> to vector<128xf32>
    %124 = vector.extract_strided_slice %93 {offsets = [4, 0, 0], sizes = [8, 8, 128], strides = [1, 1, 1]} : vector<14x8x128xf32> to vector<8x8x128xf32>
    %125 = vector.shape_cast %123 : vector<128xf32> to vector<1x1x128xf32>
    %126 = vector.broadcast %125 : vector<1x1x128xf32> to vector<8x8x128xf32>
    %127 = arith.mulf %124, %126 : vector<8x8x128xf32>
    %128 = arith.addf %121, %127 : vector<8x8x128xf32>
    %c36 = arith.constant 36 : index
    %c0_58 = arith.constant 0 : index
    %129 = vector.load %arg2[%c36, %c0_58] : memref<49x128xf32, #tpu.memory_space<vmem>>, vector<1x128xf32>
    %130 = vector.shape_cast %129 : vector<1x128xf32> to vector<128xf32>
    %131 = vector.extract_strided_slice %93 {offsets = [5, 0, 0], sizes = [8, 8, 128], strides = [1, 1, 1]} : vector<14x8x128xf32> to vector<8x8x128xf32>
    %132 = vector.shape_cast %130 : vector<128xf32> to vector<1x1x128xf32>
    %133 = vector.broadcast %132 : vector<1x1x128xf32> to vector<8x8x128xf32>
    %134 = arith.mulf %131, %133 : vector<8x8x128xf32>
    %135 = arith.addf %128, %134 : vector<8x8x128xf32>
    %c43 = arith.constant 43 : index
    %c0_59 = arith.constant 0 : index
    %136 = vector.load %arg2[%c43, %c0_59] : memref<49x128xf32, #tpu.memory_space<vmem>>, vector<1x128xf32>
    %137 = vector.shape_cast %136 : vector<1x128xf32> to vector<128xf32>
    %138 = vector.extract_strided_slice %93 {offsets = [6, 0, 0], sizes = [8, 8, 128], strides = [1, 1, 1]} : vector<14x8x128xf32> to vector<8x8x128xf32>
    %139 = vector.shape_cast %137 : vector<128xf32> to vector<1x1x128xf32>
    %140 = vector.broadcast %139 : vector<1x1x128xf32> to vector<8x8x128xf32>
    %141 = arith.mulf %138, %140 : vector<8x8x128xf32>
    %142 = arith.addf %135, %141 : vector<8x8x128xf32>
    %c0_60 = arith.constant 0 : index
    %c2 = arith.constant 2 : index
    %c0_61 = arith.constant 0 : index
    %143 = vector.load %arg6[%c0_60, %c2, %c0_61] : memref<14x14x128xf32, #tpu.memory_space<vmem>>, vector<14x8x128xf32>
    %c2_62 = arith.constant 2 : index
    %c0_63 = arith.constant 0 : index
    %144 = vector.load %arg2[%c2_62, %c0_63] : memref<49x128xf32, #tpu.memory_space<vmem>>, vector<1x128xf32>
    %145 = vector.shape_cast %144 : vector<1x128xf32> to vector<128xf32>
    %146 = vector.extract_strided_slice %143 {offsets = [0, 0, 0], sizes = [8, 8, 128], strides = [1, 1, 1]} : vector<14x8x128xf32> to vector<8x8x128xf32>
    %147 = vector.shape_cast %145 : vector<128xf32> to vector<1x1x128xf32>
    %148 = vector.broadcast %147 : vector<1x1x128xf32> to vector<8x8x128xf32>
    %149 = arith.mulf %146, %148 : vector<8x8x128xf32>
    %150 = arith.addf %142, %149 : vector<8x8x128xf32>
    %c9_64 = arith.constant 9 : index
    %c0_65 = arith.constant 0 : index
    %151 = vector.load %arg2[%c9_64, %c0_65] : memref<49x128xf32, #tpu.memory_space<vmem>>, vector<1x128xf32>
    %152 = vector.shape_cast %151 : vector<1x128xf32> to vector<128xf32>
    %153 = vector.extract_strided_slice %143 {offsets = [1, 0, 0], sizes = [8, 8, 128], strides = [1, 1, 1]} : vector<14x8x128xf32> to vector<8x8x128xf32>
    %154 = vector.shape_cast %152 : vector<128xf32> to vector<1x1x128xf32>
    %155 = vector.broadcast %154 : vector<1x1x128xf32> to vector<8x8x128xf32>
    %156 = arith.mulf %153, %155 : vector<8x8x128xf32>
    %157 = arith.addf %150, %156 : vector<8x8x128xf32>
    %c16 = arith.constant 16 : index
    %c0_66 = arith.constant 0 : index
    %158 = vector.load %arg2[%c16, %c0_66] : memref<49x128xf32, #tpu.memory_space<vmem>>, vector<1x128xf32>
    %159 = vector.shape_cast %158 : vector<1x128xf32> to vector<128xf32>
    %160 = vector.extract_strided_slice %143 {offsets = [2, 0, 0], sizes = [8, 8, 128], strides = [1, 1, 1]} : vector<14x8x128xf32> to vector<8x8x128xf32>
    %161 = vector.shape_cast %159 : vector<128xf32> to vector<1x1x128xf32>
    %162 = vector.broadcast %161 : vector<1x1x128xf32> to vector<8x8x128xf32>
    %163 = arith.mulf %160, %162 : vector<8x8x128xf32>
    %164 = arith.addf %157, %163 : vector<8x8x128xf32>
    %c23 = arith.constant 23 : index
    %c0_67 = arith.constant 0 : index
    %165 = vector.load %arg2[%c23, %c0_67] : memref<49x128xf32, #tpu.memory_space<vmem>>, vector<1x128xf32>
    %166 = vector.shape_cast %165 : vector<1x128xf32> to vector<128xf32>
    %167 = vector.extract_strided_slice %143 {offsets = [3, 0, 0], sizes = [8, 8, 128], strides = [1, 1, 1]} : vector<14x8x128xf32> to vector<8x8x128xf32>
    %168 = vector.shape_cast %166 : vector<128xf32> to vector<1x1x128xf32>
    %169 = vector.broadcast %168 : vector<1x1x128xf32> to vector<8x8x128xf32>
    %170 = arith.mulf %167, %169 : vector<8x8x128xf32>
    %171 = arith.addf %164, %170 : vector<8x8x128xf32>
    %c30 = arith.constant 30 : index
    %c0_68 = arith.constant 0 : index
    %172 = vector.load %arg2[%c30, %c0_68] : memref<49x128xf32, #tpu.memory_space<vmem>>, vector<1x128xf32>
    %173 = vector.shape_cast %172 : vector<1x128xf32> to vector<128xf32>
    %174 = vector.extract_strided_slice %143 {offsets = [4, 0, 0], sizes = [8, 8, 128], strides = [1, 1, 1]} : vector<14x8x128xf32> to vector<8x8x128xf32>
    %175 = vector.shape_cast %173 : vector<128xf32> to vector<1x1x128xf32>
    %176 = vector.broadcast %175 : vector<1x1x128xf32> to vector<8x8x128xf32>
    %177 = arith.mulf %174, %176 : vector<8x8x128xf32>
    %178 = arith.addf %171, %177 : vector<8x8x128xf32>
    %c37 = arith.constant 37 : index
    %c0_69 = arith.constant 0 : index
    %179 = vector.load %arg2[%c37, %c0_69] : memref<49x128xf32, #tpu.memory_space<vmem>>, vector<1x128xf32>
    %180 = vector.shape_cast %179 : vector<1x128xf32> to vector<128xf32>
    %181 = vector.extract_strided_slice %143 {offsets = [5, 0, 0], sizes = [8, 8, 128], strides = [1, 1, 1]} : vector<14x8x128xf32> to vector<8x8x128xf32>
    %182 = vector.shape_cast %180 : vector<128xf32> to vector<1x1x128xf32>
    %183 = vector.broadcast %182 : vector<1x1x128xf32> to vector<8x8x128xf32>
    %184 = arith.mulf %181, %183 : vector<8x8x128xf32>
    %185 = arith.addf %178, %184 : vector<8x8x128xf32>
    %c44 = arith.constant 44 : index
    %c0_70 = arith.constant 0 : index
    %186 = vector.load %arg2[%c44, %c0_70] : memref<49x128xf32, #tpu.memory_space<vmem>>, vector<1x128xf32>
    %187 = vector.shape_cast %186 : vector<1x128xf32> to vector<128xf32>
    %188 = vector.extract_strided_slice %143 {offsets = [6, 0, 0], sizes = [8, 8, 128], strides = [1, 1, 1]} : vector<14x8x128xf32> to vector<8x8x128xf32>
    %189 = vector.shape_cast %187 : vector<128xf32> to vector<1x1x128xf32>
    %190 = vector.broadcast %189 : vector<1x1x128xf32> to vector<8x8x128xf32>
    %191 = arith.mulf %188, %190 : vector<8x8x128xf32>
    %192 = arith.addf %185, %191 : vector<8x8x128xf32>
    %c0_71 = arith.constant 0 : index
    %c3_72 = arith.constant 3 : index
    %c0_73 = arith.constant 0 : index
    %193 = vector.load %arg6[%c0_71, %c3_72, %c0_73] : memref<14x14x128xf32, #tpu.memory_space<vmem>>, vector<14x8x128xf32>
    %c3_74 = arith.constant 3 : index
    %c0_75 = arith.constant 0 : index
    %194 = vector.load %arg2[%c3_74, %c0_75] : memref<49x128xf32, #tpu.memory_space<vmem>>, vector<1x128xf32>
    %195 = vector.shape_cast %194 : vector<1x128xf32> to vector<128xf32>
    %196 = vector.extract_strided_slice %193 {offsets = [0, 0, 0], sizes = [8, 8, 128], strides = [1, 1, 1]} : vector<14x8x128xf32> to vector<8x8x128xf32>
    %197 = vector.shape_cast %195 : vector<128xf32> to vector<1x1x128xf32>
    %198 = vector.broadcast %197 : vector<1x1x128xf32> to vector<8x8x128xf32>
    %199 = arith.mulf %196, %198 : vector<8x8x128xf32>
    %200 = arith.addf %192, %199 : vector<8x8x128xf32>
    %c10_76 = arith.constant 10 : index
    %c0_77 = arith.constant 0 : index
    %201 = vector.load %arg2[%c10_76, %c0_77] : memref<49x128xf32, #tpu.memory_space<vmem>>, vector<1x128xf32>
    %202 = vector.shape_cast %201 : vector<1x128xf32> to vector<128xf32>
    %203 = vector.extract_strided_slice %193 {offsets = [1, 0, 0], sizes = [8, 8, 128], strides = [1, 1, 1]} : vector<14x8x128xf32> to vector<8x8x128xf32>
    %204 = vector.shape_cast %202 : vector<128xf32> to vector<1x1x128xf32>
    %205 = vector.broadcast %204 : vector<1x1x128xf32> to vector<8x8x128xf32>
    %206 = arith.mulf %203, %205 : vector<8x8x128xf32>
    %207 = arith.addf %200, %206 : vector<8x8x128xf32>
    %c17_78 = arith.constant 17 : index
    %c0_79 = arith.constant 0 : index
    %208 = vector.load %arg2[%c17_78, %c0_79] : memref<49x128xf32, #tpu.memory_space<vmem>>, vector<1x128xf32>
    %209 = vector.shape_cast %208 : vector<1x128xf32> to vector<128xf32>
    %210 = vector.extract_strided_slice %193 {offsets = [2, 0, 0], sizes = [8, 8, 128], strides = [1, 1, 1]} : vector<14x8x128xf32> to vector<8x8x128xf32>
    %211 = vector.shape_cast %209 : vector<128xf32> to vector<1x1x128xf32>
    %212 = vector.broadcast %211 : vector<1x1x128xf32> to vector<8x8x128xf32>
    %213 = arith.mulf %210, %212 : vector<8x8x128xf32>
    %214 = arith.addf %207, %213 : vector<8x8x128xf32>
    %c24 = arith.constant 24 : index
    %c0_80 = arith.constant 0 : index
    %215 = vector.load %arg2[%c24, %c0_80] : memref<49x128xf32, #tpu.memory_space<vmem>>, vector<1x128xf32>
    %216 = vector.shape_cast %215 : vector<1x128xf32> to vector<128xf32>
    %217 = vector.extract_strided_slice %193 {offsets = [3, 0, 0], sizes = [8, 8, 128], strides = [1, 1, 1]} : vector<14x8x128xf32> to vector<8x8x128xf32>
    %218 = vector.shape_cast %216 : vector<128xf32> to vector<1x1x128xf32>
    %219 = vector.broadcast %218 : vector<1x1x128xf32> to vector<8x8x128xf32>
    %220 = arith.mulf %217, %219 : vector<8x8x128xf32>
    %221 = arith.addf %214, %220 : vector<8x8x128xf32>
    %c31 = arith.constant 31 : index
    %c0_81 = arith.constant 0 : index
    %222 = vector.load %arg2[%c31, %c0_81] : memref<49x128xf32, #tpu.memory_space<vmem>>, vector<1x128xf32>
    %223 = vector.shape_cast %222 : vector<1x128xf32> to vector<128xf32>
    %224 = vector.extract_strided_slice %193 {offsets = [4, 0, 0], sizes = [8, 8, 128], strides = [1, 1, 1]} : vector<14x8x128xf32> to vector<8x8x128xf32>
    %225 = vector.shape_cast %223 : vector<128xf32> to vector<1x1x128xf32>
    %226 = vector.broadcast %225 : vector<1x1x128xf32> to vector<8x8x128xf32>
    %227 = arith.mulf %224, %226 : vector<8x8x128xf32>
    %228 = arith.addf %221, %227 : vector<8x8x128xf32>
    %c38 = arith.constant 38 : index
    %c0_82 = arith.constant 0 : index
    %229 = vector.load %arg2[%c38, %c0_82] : memref<49x128xf32, #tpu.memory_space<vmem>>, vector<1x128xf32>
    %230 = vector.shape_cast %229 : vector<1x128xf32> to vector<128xf32>
    %231 = vector.extract_strided_slice %193 {offsets = [5, 0, 0], sizes = [8, 8, 128], strides = [1, 1, 1]} : vector<14x8x128xf32> to vector<8x8x128xf32>
    %232 = vector.shape_cast %230 : vector<128xf32> to vector<1x1x128xf32>
    %233 = vector.broadcast %232 : vector<1x1x128xf32> to vector<8x8x128xf32>
    %234 = arith.mulf %231, %233 : vector<8x8x128xf32>
    %235 = arith.addf %228, %234 : vector<8x8x128xf32>
    %c45 = arith.constant 45 : index
    %c0_83 = arith.constant 0 : index
    %236 = vector.load %arg2[%c45, %c0_83] : memref<49x128xf32, #tpu.memory_space<vmem>>, vector<1x128xf32>
    %237 = vector.shape_cast %236 : vector<1x128xf32> to vector<128xf32>
    %238 = vector.extract_strided_slice %193 {offsets = [6, 0, 0], sizes = [8, 8, 128], strides = [1, 1, 1]} : vector<14x8x128xf32> to vector<8x8x128xf32>
    %239 = vector.shape_cast %237 : vector<128xf32> to vector<1x1x128xf32>
    %240 = vector.broadcast %239 : vector<1x1x128xf32> to vector<8x8x128xf32>
    %241 = arith.mulf %238, %240 : vector<8x8x128xf32>
    %242 = arith.addf %235, %241 : vector<8x8x128xf32>
    %c0_84 = arith.constant 0 : index
    %c4_85 = arith.constant 4 : index
    %c0_86 = arith.constant 0 : index
    %243 = vector.load %arg6[%c0_84, %c4_85, %c0_86] : memref<14x14x128xf32, #tpu.memory_space<vmem>>, vector<14x8x128xf32>
    %c4_87 = arith.constant 4 : index
    %c0_88 = arith.constant 0 : index
    %244 = vector.load %arg2[%c4_87, %c0_88] : memref<49x128xf32, #tpu.memory_space<vmem>>, vector<1x128xf32>
    %245 = vector.shape_cast %244 : vector<1x128xf32> to vector<128xf32>
    %246 = vector.extract_strided_slice %243 {offsets = [0, 0, 0], sizes = [8, 8, 128], strides = [1, 1, 1]} : vector<14x8x128xf32> to vector<8x8x128xf32>
    %247 = vector.shape_cast %245 : vector<128xf32> to vector<1x1x128xf32>
    %248 = vector.broadcast %247 : vector<1x1x128xf32> to vector<8x8x128xf32>
    %249 = arith.mulf %246, %248 : vector<8x8x128xf32>
    %250 = arith.addf %242, %249 : vector<8x8x128xf32>
    %c11 = arith.constant 11 : index
    %c0_89 = arith.constant 0 : index
    %251 = vector.load %arg2[%c11, %c0_89] : memref<49x128xf32, #tpu.memory_space<vmem>>, vector<1x128xf32>
    %252 = vector.shape_cast %251 : vector<1x128xf32> to vector<128xf32>
    %253 = vector.extract_strided_slice %243 {offsets = [1, 0, 0], sizes = [8, 8, 128], strides = [1, 1, 1]} : vector<14x8x128xf32> to vector<8x8x128xf32>
    %254 = vector.shape_cast %252 : vector<128xf32> to vector<1x1x128xf32>
    %255 = vector.broadcast %254 : vector<1x1x128xf32> to vector<8x8x128xf32>
    %256 = arith.mulf %253, %255 : vector<8x8x128xf32>
    %257 = arith.addf %250, %256 : vector<8x8x128xf32>
    %c18 = arith.constant 18 : index
    %c0_90 = arith.constant 0 : index
    %258 = vector.load %arg2[%c18, %c0_90] : memref<49x128xf32, #tpu.memory_space<vmem>>, vector<1x128xf32>
    %259 = vector.shape_cast %258 : vector<1x128xf32> to vector<128xf32>
    %260 = vector.extract_strided_slice %243 {offsets = [2, 0, 0], sizes = [8, 8, 128], strides = [1, 1, 1]} : vector<14x8x128xf32> to vector<8x8x128xf32>
    %261 = vector.shape_cast %259 : vector<128xf32> to vector<1x1x128xf32>
    %262 = vector.broadcast %261 : vector<1x1x128xf32> to vector<8x8x128xf32>
    %263 = arith.mulf %260, %262 : vector<8x8x128xf32>
    %264 = arith.addf %257, %263 : vector<8x8x128xf32>
    %c25_91 = arith.constant 25 : index
    %c0_92 = arith.constant 0 : index
    %265 = vector.load %arg2[%c25_91, %c0_92] : memref<49x128xf32, #tpu.memory_space<vmem>>, vector<1x128xf32>
    %266 = vector.shape_cast %265 : vector<1x128xf32> to vector<128xf32>
    %267 = vector.extract_strided_slice %243 {offsets = [3, 0, 0], sizes = [8, 8, 128], strides = [1, 1, 1]} : vector<14x8x128xf32> to vector<8x8x128xf32>
    %268 = vector.shape_cast %266 : vector<128xf32> to vector<1x1x128xf32>
    %269 = vector.broadcast %268 : vector<1x1x128xf32> to vector<8x8x128xf32>
    %270 = arith.mulf %267, %269 : vector<8x8x128xf32>
    %271 = arith.addf %264, %270 : vector<8x8x128xf32>
    %c32 = arith.constant 32 : index
    %c0_93 = arith.constant 0 : index
    %272 = vector.load %arg2[%c32, %c0_93] : memref<49x128xf32, #tpu.memory_space<vmem>>, vector<1x128xf32>
    %273 = vector.shape_cast %272 : vector<1x128xf32> to vector<128xf32>
    %274 = vector.extract_strided_slice %243 {offsets = [4, 0, 0], sizes = [8, 8, 128], strides = [1, 1, 1]} : vector<14x8x128xf32> to vector<8x8x128xf32>
    %275 = vector.shape_cast %273 : vector<128xf32> to vector<1x1x128xf32>
    %276 = vector.broadcast %275 : vector<1x1x128xf32> to vector<8x8x128xf32>
    %277 = arith.mulf %274, %276 : vector<8x8x128xf32>
    %278 = arith.addf %271, %277 : vector<8x8x128xf32>
    %c39 = arith.constant 39 : index
    %c0_94 = arith.constant 0 : index
    %279 = vector.load %arg2[%c39, %c0_94] : memref<49x128xf32, #tpu.memory_space<vmem>>, vector<1x128xf32>
    %280 = vector.shape_cast %279 : vector<1x128xf32> to vector<128xf32>
    %281 = vector.extract_strided_slice %243 {offsets = [5, 0, 0], sizes = [8, 8, 128], strides = [1, 1, 1]} : vector<14x8x128xf32> to vector<8x8x128xf32>
    %282 = vector.shape_cast %280 : vector<128xf32> to vector<1x1x128xf32>
    %283 = vector.broadcast %282 : vector<1x1x128xf32> to vector<8x8x128xf32>
    %284 = arith.mulf %281, %283 : vector<8x8x128xf32>
    %285 = arith.addf %278, %284 : vector<8x8x128xf32>
    %c46 = arith.constant 46 : index
    %c0_95 = arith.constant 0 : index
    %286 = vector.load %arg2[%c46, %c0_95] : memref<49x128xf32, #tpu.memory_space<vmem>>, vector<1x128xf32>
    %287 = vector.shape_cast %286 : vector<1x128xf32> to vector<128xf32>
    %288 = vector.extract_strided_slice %243 {offsets = [6, 0, 0], sizes = [8, 8, 128], strides = [1, 1, 1]} : vector<14x8x128xf32> to vector<8x8x128xf32>
    %289 = vector.shape_cast %287 : vector<128xf32> to vector<1x1x128xf32>
    %290 = vector.broadcast %289 : vector<1x1x128xf32> to vector<8x8x128xf32>
    %291 = arith.mulf %288, %290 : vector<8x8x128xf32>
    %292 = arith.addf %285, %291 : vector<8x8x128xf32>
    %c0_96 = arith.constant 0 : index
    %c5_97 = arith.constant 5 : index
    %c0_98 = arith.constant 0 : index
    %293 = vector.load %arg6[%c0_96, %c5_97, %c0_98] : memref<14x14x128xf32, #tpu.memory_space<vmem>>, vector<14x8x128xf32>
    %c5_99 = arith.constant 5 : index
    %c0_100 = arith.constant 0 : index
    %294 = vector.load %arg2[%c5_99, %c0_100] : memref<49x128xf32, #tpu.memory_space<vmem>>, vector<1x128xf32>
    %295 = vector.shape_cast %294 : vector<1x128xf32> to vector<128xf32>
    %296 = vector.extract_strided_slice %293 {offsets = [0, 0, 0], sizes = [8, 8, 128], strides = [1, 1, 1]} : vector<14x8x128xf32> to vector<8x8x128xf32>
    %297 = vector.shape_cast %295 : vector<128xf32> to vector<1x1x128xf32>
    %298 = vector.broadcast %297 : vector<1x1x128xf32> to vector<8x8x128xf32>
    %299 = arith.mulf %296, %298 : vector<8x8x128xf32>
    %300 = arith.addf %292, %299 : vector<8x8x128xf32>
    %c12 = arith.constant 12 : index
    %c0_101 = arith.constant 0 : index
    %301 = vector.load %arg2[%c12, %c0_101] : memref<49x128xf32, #tpu.memory_space<vmem>>, vector<1x128xf32>
    %302 = vector.shape_cast %301 : vector<1x128xf32> to vector<128xf32>
    %303 = vector.extract_strided_slice %293 {offsets = [1, 0, 0], sizes = [8, 8, 128], strides = [1, 1, 1]} : vector<14x8x128xf32> to vector<8x8x128xf32>
    %304 = vector.shape_cast %302 : vector<128xf32> to vector<1x1x128xf32>
    %305 = vector.broadcast %304 : vector<1x1x128xf32> to vector<8x8x128xf32>
    %306 = arith.mulf %303, %305 : vector<8x8x128xf32>
    %307 = arith.addf %300, %306 : vector<8x8x128xf32>
    %c19 = arith.constant 19 : index
    %c0_102 = arith.constant 0 : index
    %308 = vector.load %arg2[%c19, %c0_102] : memref<49x128xf32, #tpu.memory_space<vmem>>, vector<1x128xf32>
    %309 = vector.shape_cast %308 : vector<1x128xf32> to vector<128xf32>
    %310 = vector.extract_strided_slice %293 {offsets = [2, 0, 0], sizes = [8, 8, 128], strides = [1, 1, 1]} : vector<14x8x128xf32> to vector<8x8x128xf32>
    %311 = vector.shape_cast %309 : vector<128xf32> to vector<1x1x128xf32>
    %312 = vector.broadcast %311 : vector<1x1x128xf32> to vector<8x8x128xf32>
    %313 = arith.mulf %310, %312 : vector<8x8x128xf32>
    %314 = arith.addf %307, %313 : vector<8x8x128xf32>
    %c26 = arith.constant 26 : index
    %c0_103 = arith.constant 0 : index
    %315 = vector.load %arg2[%c26, %c0_103] : memref<49x128xf32, #tpu.memory_space<vmem>>, vector<1x128xf32>
    %316 = vector.shape_cast %315 : vector<1x128xf32> to vector<128xf32>
    %317 = vector.extract_strided_slice %293 {offsets = [3, 0, 0], sizes = [8, 8, 128], strides = [1, 1, 1]} : vector<14x8x128xf32> to vector<8x8x128xf32>
    %318 = vector.shape_cast %316 : vector<128xf32> to vector<1x1x128xf32>
    %319 = vector.broadcast %318 : vector<1x1x128xf32> to vector<8x8x128xf32>
    %320 = arith.mulf %317, %319 : vector<8x8x128xf32>
    %321 = arith.addf %314, %320 : vector<8x8x128xf32>
    %c33_104 = arith.constant 33 : index
    %c0_105 = arith.constant 0 : index
    %322 = vector.load %arg2[%c33_104, %c0_105] : memref<49x128xf32, #tpu.memory_space<vmem>>, vector<1x128xf32>
    %323 = vector.shape_cast %322 : vector<1x128xf32> to vector<128xf32>
    %324 = vector.extract_strided_slice %293 {offsets = [4, 0, 0], sizes = [8, 8, 128], strides = [1, 1, 1]} : vector<14x8x128xf32> to vector<8x8x128xf32>
    %325 = vector.shape_cast %323 : vector<128xf32> to vector<1x1x128xf32>
    %326 = vector.broadcast %325 : vector<1x1x128xf32> to vector<8x8x128xf32>
    %327 = arith.mulf %324, %326 : vector<8x8x128xf32>
    %328 = arith.addf %321, %327 : vector<8x8x128xf32>
    %c40 = arith.constant 40 : index
    %c0_106 = arith.constant 0 : index
    %329 = vector.load %arg2[%c40, %c0_106] : memref<49x128xf32, #tpu.memory_space<vmem>>, vector<1x128xf32>
    %330 = vector.shape_cast %329 : vector<1x128xf32> to vector<128xf32>
    %331 = vector.extract_strided_slice %293 {offsets = [5, 0, 0], sizes = [8, 8, 128], strides = [1, 1, 1]} : vector<14x8x128xf32> to vector<8x8x128xf32>
    %332 = vector.shape_cast %330 : vector<128xf32> to vector<1x1x128xf32>
    %333 = vector.broadcast %332 : vector<1x1x128xf32> to vector<8x8x128xf32>
    %334 = arith.mulf %331, %333 : vector<8x8x128xf32>
    %335 = arith.addf %328, %334 : vector<8x8x128xf32>
    %c47 = arith.constant 47 : index
    %c0_107 = arith.constant 0 : index
    %336 = vector.load %arg2[%c47, %c0_107] : memref<49x128xf32, #tpu.memory_space<vmem>>, vector<1x128xf32>
    %337 = vector.shape_cast %336 : vector<1x128xf32> to vector<128xf32>
    %338 = vector.extract_strided_slice %293 {offsets = [6, 0, 0], sizes = [8, 8, 128], strides = [1, 1, 1]} : vector<14x8x128xf32> to vector<8x8x128xf32>
    %339 = vector.shape_cast %337 : vector<128xf32> to vector<1x1x128xf32>
    %340 = vector.broadcast %339 : vector<1x1x128xf32> to vector<8x8x128xf32>
    %341 = arith.mulf %338, %340 : vector<8x8x128xf32>
    %342 = arith.addf %335, %341 : vector<8x8x128xf32>
    %c0_108 = arith.constant 0 : index
    %c6_109 = arith.constant 6 : index
    %c0_110 = arith.constant 0 : index
    %343 = vector.load %arg6[%c0_108, %c6_109, %c0_110] : memref<14x14x128xf32, #tpu.memory_space<vmem>>, vector<14x8x128xf32>
    %c6_111 = arith.constant 6 : index
    %c0_112 = arith.constant 0 : index
    %344 = vector.load %arg2[%c6_111, %c0_112] : memref<49x128xf32, #tpu.memory_space<vmem>>, vector<1x128xf32>
    %345 = vector.shape_cast %344 : vector<1x128xf32> to vector<128xf32>
    %346 = vector.extract_strided_slice %343 {offsets = [0, 0, 0], sizes = [8, 8, 128], strides = [1, 1, 1]} : vector<14x8x128xf32> to vector<8x8x128xf32>
    %347 = vector.shape_cast %345 : vector<128xf32> to vector<1x1x128xf32>
    %348 = vector.broadcast %347 : vector<1x1x128xf32> to vector<8x8x128xf32>
    %349 = arith.mulf %346, %348 : vector<8x8x128xf32>
    %350 = arith.addf %342, %349 : vector<8x8x128xf32>
    %c13 = arith.constant 13 : index
    %c0_113 = arith.constant 0 : index
    %351 = vector.load %arg2[%c13, %c0_113] : memref<49x128xf32, #tpu.memory_space<vmem>>, vector<1x128xf32>
    %352 = vector.shape_cast %351 : vector<1x128xf32> to vector<128xf32>
    %353 = vector.extract_strided_slice %343 {offsets = [1, 0, 0], sizes = [8, 8, 128], strides = [1, 1, 1]} : vector<14x8x128xf32> to vector<8x8x128xf32>
    %354 = vector.shape_cast %352 : vector<128xf32> to vector<1x1x128xf32>
    %355 = vector.broadcast %354 : vector<1x1x128xf32> to vector<8x8x128xf32>
    %356 = arith.mulf %353, %355 : vector<8x8x128xf32>
    %357 = arith.addf %350, %356 : vector<8x8x128xf32>
    %c20 = arith.constant 20 : index
    %c0_114 = arith.constant 0 : index
    %358 = vector.load %arg2[%c20, %c0_114] : memref<49x128xf32, #tpu.memory_space<vmem>>, vector<1x128xf32>
    %359 = vector.shape_cast %358 : vector<1x128xf32> to vector<128xf32>
    %360 = vector.extract_strided_slice %343 {offsets = [2, 0, 0], sizes = [8, 8, 128], strides = [1, 1, 1]} : vector<14x8x128xf32> to vector<8x8x128xf32>
    %361 = vector.shape_cast %359 : vector<128xf32> to vector<1x1x128xf32>
    %362 = vector.broadcast %361 : vector<1x1x128xf32> to vector<8x8x128xf32>
    %363 = arith.mulf %360, %362 : vector<8x8x128xf32>
    %364 = arith.addf %357, %363 : vector<8x8x128xf32>
    %c27 = arith.constant 27 : index
    %c0_115 = arith.constant 0 : index
    %365 = vector.load %arg2[%c27, %c0_115] : memref<49x128xf32, #tpu.memory_space<vmem>>, vector<1x128xf32>
    %366 = vector.shape_cast %365 : vector<1x128xf32> to vector<128xf32>
    %367 = vector.extract_strided_slice %343 {offsets = [3, 0, 0], sizes = [8, 8, 128], strides = [1, 1, 1]} : vector<14x8x128xf32> to vector<8x8x128xf32>
    %368 = vector.shape_cast %366 : vector<128xf32> to vector<1x1x128xf32>
    %369 = vector.broadcast %368 : vector<1x1x128xf32> to vector<8x8x128xf32>
    %370 = arith.mulf %367, %369 : vector<8x8x128xf32>
    %371 = arith.addf %364, %370 : vector<8x8x128xf32>
    %c34 = arith.constant 34 : index
    %c0_116 = arith.constant 0 : index
    %372 = vector.load %arg2[%c34, %c0_116] : memref<49x128xf32, #tpu.memory_space<vmem>>, vector<1x128xf32>
    %373 = vector.shape_cast %372 : vector<1x128xf32> to vector<128xf32>
    %374 = vector.extract_strided_slice %343 {offsets = [4, 0, 0], sizes = [8, 8, 128], strides = [1, 1, 1]} : vector<14x8x128xf32> to vector<8x8x128xf32>
    %375 = vector.shape_cast %373 : vector<128xf32> to vector<1x1x128xf32>
    %376 = vector.broadcast %375 : vector<1x1x128xf32> to vector<8x8x128xf32>
    %377 = arith.mulf %374, %376 : vector<8x8x128xf32>
    %378 = arith.addf %371, %377 : vector<8x8x128xf32>
    %c41_117 = arith.constant 41 : index
    %c0_118 = arith.constant 0 : index
    %379 = vector.load %arg2[%c41_117, %c0_118] : memref<49x128xf32, #tpu.memory_space<vmem>>, vector<1x128xf32>
    %380 = vector.shape_cast %379 : vector<1x128xf32> to vector<128xf32>
    %381 = vector.extract_strided_slice %343 {offsets = [5, 0, 0], sizes = [8, 8, 128], strides = [1, 1, 1]} : vector<14x8x128xf32> to vector<8x8x128xf32>
    %382 = vector.shape_cast %380 : vector<128xf32> to vector<1x1x128xf32>
    %383 = vector.broadcast %382 : vector<1x1x128xf32> to vector<8x8x128xf32>
    %384 = arith.mulf %381, %383 : vector<8x8x128xf32>
    %385 = arith.addf %378, %384 : vector<8x8x128xf32>
    %c48 = arith.constant 48 : index
    %c0_119 = arith.constant 0 : index
    %386 = vector.load %arg2[%c48, %c0_119] : memref<49x128xf32, #tpu.memory_space<vmem>>, vector<1x128xf32>
    %387 = vector.shape_cast %386 : vector<1x128xf32> to vector<128xf32>
    %388 = vector.extract_strided_slice %343 {offsets = [6, 0, 0], sizes = [8, 8, 128], strides = [1, 1, 1]} : vector<14x8x128xf32> to vector<8x8x128xf32>
    %389 = vector.shape_cast %387 : vector<128xf32> to vector<1x1x128xf32>
    %390 = vector.broadcast %389 : vector<1x1x128xf32> to vector<8x8x128xf32>
    %391 = arith.mulf %388, %390 : vector<8x8x128xf32>
    %392 = arith.addf %385, %391 : vector<8x8x128xf32>
    %c0_120 = arith.constant 0 : index
    %c0_121 = arith.constant 0 : index
    %393 = vector.load %arg3[%c0_120, %c0_121] : memref<1x128xf32, #tpu.memory_space<vmem>>, vector<1x128xf32>
    %394 = vector.shape_cast %393 : vector<1x128xf32> to vector<128xf32>
    %c0_122 = arith.constant 0 : index
    %c0_123 = arith.constant 0 : index
    %c0_124 = arith.constant 0 : index
    %395 = vector.load %arg4[%c0_122, %c0_123, %c0_124] : memref<1x65x128xf32, #tpu.memory_space<vmem>>, vector<1x1x128xf32>
    %396 = vector.shape_cast %395 : vector<1x1x128xf32> to vector<1x128xf32>
    %c0_125 = arith.constant 0 : index
    %c0_126 = arith.constant 0 : index
    %c0_127 = arith.constant 0 : index
    %397 = vector.load %arg5[%c0_125, %c0_126, %c0_127] : memref<1x65x128xf32, #tpu.memory_space<vmem>>, vector<1x1x128xf32>
    %398 = vector.shape_cast %397 : vector<1x1x128xf32> to vector<1x128xf32>
    %399 = vector.shape_cast %396 : vector<1x128xf32> to vector<1x1x128xf32>
    tpu.vector_store %arg5[%c0_125, %c0_126, %c0_127], %399 {strides = array<i32>} : memref<1x65x128xf32, #tpu.memory_space<vmem>>, vector<1x1x128xf32>,
    %c0_128 = arith.constant 0 : index
    %c1_129 = arith.constant 1 : index
    %c0_130 = arith.constant 0 : index
    %400 = vector.load %arg4[%c0_128, %c1_129, %c0_130] : memref<1x65x128xf32, #tpu.memory_space<vmem>>, vector<1x8x128xf32>
    %401 = vector.shape_cast %400 : vector<1x8x128xf32> to vector<8x128xf32>
    %402 = vector.extract_strided_slice %392 {offsets = [0, 0, 0], sizes = [1, 8, 128], strides = [1, 1, 1]} : vector<8x8x128xf32> to vector<1x8x128xf32>
    %403 = vector.shape_cast %402 : vector<1x8x128xf32> to vector<8x128xf32>
    %404 = arith.addf %403, %401 : vector<8x128xf32>
    %405 = vector.shape_cast %394 : vector<128xf32> to vector<1x128xf32>
    %406 = vector.broadcast %405 : vector<1x128xf32> to vector<8x128xf32>
    %407 = arith.addf %404, %406 : vector<8x128xf32>
    %c0_131 = arith.constant 0 : index
    %c1_132 = arith.constant 1 : index
    %c0_133 = arith.constant 0 : index
    %408 = vector.load %arg5[%c0_131, %c1_132, %c0_133] : memref<1x65x128xf32, #tpu.memory_space<vmem>>, vector<1x8x128xf32>
    %409 = vector.shape_cast %408 : vector<1x8x128xf32> to vector<8x128xf32>
    %410 = vector.shape_cast %407 : vector<8x128xf32> to vector<1x8x128xf32>
    tpu.vector_store %arg5[%c0_131, %c1_132, %c0_133], %410 {strides = array<i32>} : memref<1x65x128xf32, #tpu.memory_space<vmem>>, vector<1x8x128xf32>,
    %c0_134 = arith.constant 0 : index
    %c9_135 = arith.constant 9 : index
    %c0_136 = arith.constant 0 : index
    %411 = vector.load %arg4[%c0_134, %c9_135, %c0_136] : memref<1x65x128xf32, #tpu.memory_space<vmem>>, vector<1x8x128xf32>
    %412 = vector.shape_cast %411 : vector<1x8x128xf32> to vector<8x128xf32>
    %413 = vector.extract_strided_slice %392 {offsets = [1, 0, 0], sizes = [1, 8, 128], strides = [1, 1, 1]} : vector<8x8x128xf32> to vector<1x8x128xf32>
    %414 = vector.shape_cast %413 : vector<1x8x128xf32> to vector<8x128xf32>
    %415 = arith.addf %414, %412 : vector<8x128xf32>
    %416 = vector.shape_cast %394 : vector<128xf32> to vector<1x128xf32>
    %417 = vector.broadcast %416 : vector<1x128xf32> to vector<8x128xf32>
    %418 = arith.addf %415, %417 : vector<8x128xf32>
    %c0_137 = arith.constant 0 : index
    %c9_138 = arith.constant 9 : index
    %c0_139 = arith.constant 0 : index
    %419 = vector.load %arg5[%c0_137, %c9_138, %c0_139] : memref<1x65x128xf32, #tpu.memory_space<vmem>>, vector<1x8x128xf32>
    %420 = vector.shape_cast %419 : vector<1x8x128xf32> to vector<8x128xf32>
    %421 = vector.shape_cast %418 : vector<8x128xf32> to vector<1x8x128xf32>
    tpu.vector_store %arg5[%c0_137, %c9_138, %c0_139], %421 {strides = array<i32>} : memref<1x65x128xf32, #tpu.memory_space<vmem>>, vector<1x8x128xf32>,
    %c0_140 = arith.constant 0 : index
    %c17_141 = arith.constant 17 : index
    %c0_142 = arith.constant 0 : index
    %422 = vector.load %arg4[%c0_140, %c17_141, %c0_142] : memref<1x65x128xf32, #tpu.memory_space<vmem>>, vector<1x8x128xf32>
    %423 = vector.shape_cast %422 : vector<1x8x128xf32> to vector<8x128xf32>
    %424 = vector.extract_strided_slice %392 {offsets = [2, 0, 0], sizes = [1, 8, 128], strides = [1, 1, 1]} : vector<8x8x128xf32> to vector<1x8x128xf32>
    %425 = vector.shape_cast %424 : vector<1x8x128xf32> to vector<8x128xf32>
    %426 = arith.addf %425, %423 : vector<8x128xf32>
    %427 = vector.shape_cast %394 : vector<128xf32> to vector<1x128xf32>
    %428 = vector.broadcast %427 : vector<1x128xf32> to vector<8x128xf32>
    %429 = arith.addf %426, %428 : vector<8x128xf32>
    %c0_143 = arith.constant 0 : index
    %c17_144 = arith.constant 17 : index
    %c0_145 = arith.constant 0 : index
    %430 = vector.load %arg5[%c0_143, %c17_144, %c0_145] : memref<1x65x128xf32, #tpu.memory_space<vmem>>, vector<1x8x128xf32>
    %431 = vector.shape_cast %430 : vector<1x8x128xf32> to vector<8x128xf32>
    %432 = vector.shape_cast %429 : vector<8x128xf32> to vector<1x8x128xf32>
    tpu.vector_store %arg5[%c0_143, %c17_144, %c0_145], %432 {strides = array<i32>} : memref<1x65x128xf32, #tpu.memory_space<vmem>>, vector<1x8x128xf32>,
    %c0_146 = arith.constant 0 : index
    %c25_147 = arith.constant 25 : index
    %c0_148 = arith.constant 0 : index
    %433 = vector.load %arg4[%c0_146, %c25_147, %c0_148] : memref<1x65x128xf32, #tpu.memory_space<vmem>>, vector<1x8x128xf32>
    %434 = vector.shape_cast %433 : vector<1x8x128xf32> to vector<8x128xf32>
    %435 = vector.extract_strided_slice %392 {offsets = [3, 0, 0], sizes = [1, 8, 128], strides = [1, 1, 1]} : vector<8x8x128xf32> to vector<1x8x128xf32>
    %436 = vector.shape_cast %435 : vector<1x8x128xf32> to vector<8x128xf32>
    %437 = arith.addf %436, %434 : vector<8x128xf32>
    %438 = vector.shape_cast %394 : vector<128xf32> to vector<1x128xf32>
    %439 = vector.broadcast %438 : vector<1x128xf32> to vector<8x128xf32>
    %440 = arith.addf %437, %439 : vector<8x128xf32>
    %c0_149 = arith.constant 0 : index
    %c25_150 = arith.constant 25 : index
    %c0_151 = arith.constant 0 : index
    %441 = vector.load %arg5[%c0_149, %c25_150, %c0_151] : memref<1x65x128xf32, #tpu.memory_space<vmem>>, vector<1x8x128xf32>
    %442 = vector.shape_cast %441 : vector<1x8x128xf32> to vector<8x128xf32>
    %443 = vector.shape_cast %440 : vector<8x128xf32> to vector<1x8x128xf32>
    tpu.vector_store %arg5[%c0_149, %c25_150, %c0_151], %443 {strides = array<i32>} : memref<1x65x128xf32, #tpu.memory_space<vmem>>, vector<1x8x128xf32>,
    %c0_152 = arith.constant 0 : index
    %c33_153 = arith.constant 33 : index
    %c0_154 = arith.constant 0 : index
    %444 = vector.load %arg4[%c0_152, %c33_153, %c0_154] : memref<1x65x128xf32, #tpu.memory_space<vmem>>, vector<1x8x128xf32>
    %445 = vector.shape_cast %444 : vector<1x8x128xf32> to vector<8x128xf32>
    %446 = vector.extract_strided_slice %392 {offsets = [4, 0, 0], sizes = [1, 8, 128], strides = [1, 1, 1]} : vector<8x8x128xf32> to vector<1x8x128xf32>
    %447 = vector.shape_cast %446 : vector<1x8x128xf32> to vector<8x128xf32>
    %448 = arith.addf %447, %445 : vector<8x128xf32>
    %449 = vector.shape_cast %394 : vector<128xf32> to vector<1x128xf32>
    %450 = vector.broadcast %449 : vector<1x128xf32> to vector<8x128xf32>
    %451 = arith.addf %448, %450 : vector<8x128xf32>
    %c0_155 = arith.constant 0 : index
    %c33_156 = arith.constant 33 : index
    %c0_157 = arith.constant 0 : index
    %452 = vector.load %arg5[%c0_155, %c33_156, %c0_157] : memref<1x65x128xf32, #tpu.memory_space<vmem>>, vector<1x8x128xf32>
    %453 = vector.shape_cast %452 : vector<1x8x128xf32> to vector<8x128xf32>
    %454 = vector.shape_cast %451 : vector<8x128xf32> to vector<1x8x128xf32>
    tpu.vector_store %arg5[%c0_155, %c33_156, %c0_157], %454 {strides = array<i32>} : memref<1x65x128xf32, #tpu.memory_space<vmem>>, vector<1x8x128xf32>,
    %c0_158 = arith.constant 0 : index
    %c41_159 = arith.constant 41 : index
    %c0_160 = arith.constant 0 : index
    %455 = vector.load %arg4[%c0_158, %c41_159, %c0_160] : memref<1x65x128xf32, #tpu.memory_space<vmem>>, vector<1x8x128xf32>
    %456 = vector.shape_cast %455 : vector<1x8x128xf32> to vector<8x128xf32>
    %457 = vector.extract_strided_slice %392 {offsets = [5, 0, 0], sizes = [1, 8, 128], strides = [1, 1, 1]} : vector<8x8x128xf32> to vector<1x8x128xf32>
    %458 = vector.shape_cast %457 : vector<1x8x128xf32> to vector<8x128xf32>
    %459 = arith.addf %458, %456 : vector<8x128xf32>
    %460 = vector.shape_cast %394 : vector<128xf32> to vector<1x128xf32>
    %461 = vector.broadcast %460 : vector<1x128xf32> to vector<8x128xf32>
    %462 = arith.addf %459, %461 : vector<8x128xf32>
    %c0_161 = arith.constant 0 : index
    %c41_162 = arith.constant 41 : index
    %c0_163 = arith.constant 0 : index
    %463 = vector.load %arg5[%c0_161, %c41_162, %c0_163] : memref<1x65x128xf32, #tpu.memory_space<vmem>>, vector<1x8x128xf32>
    %464 = vector.shape_cast %463 : vector<1x8x128xf32> to vector<8x128xf32>
    %465 = vector.shape_cast %462 : vector<8x128xf32> to vector<1x8x128xf32>
    tpu.vector_store %arg5[%c0_161, %c41_162, %c0_163], %465 {strides = array<i32>} : memref<1x65x128xf32, #tpu.memory_space<vmem>>, vector<1x8x128xf32>,
    %c0_164 = arith.constant 0 : index
    %c49_165 = arith.constant 49 : index
    %c0_166 = arith.constant 0 : index
    %466 = vector.load %arg4[%c0_164, %c49_165, %c0_166] : memref<1x65x128xf32, #tpu.memory_space<vmem>>, vector<1x8x128xf32>
    %467 = vector.shape_cast %466 : vector<1x8x128xf32> to vector<8x128xf32>
    %468 = vector.extract_strided_slice %392 {offsets = [6, 0, 0], sizes = [1, 8, 128], strides = [1, 1, 1]} : vector<8x8x128xf32> to vector<1x8x128xf32>
    %469 = vector.shape_cast %468 : vector<1x8x128xf32> to vector<8x128xf32>
    %470 = arith.addf %469, %467 : vector<8x128xf32>
    %471 = vector.shape_cast %394 : vector<128xf32> to vector<1x128xf32>
    %472 = vector.broadcast %471 : vector<1x128xf32> to vector<8x128xf32>
    %473 = arith.addf %470, %472 : vector<8x128xf32>
    %c0_167 = arith.constant 0 : index
    %c49_168 = arith.constant 49 : index
    %c0_169 = arith.constant 0 : index
    %474 = vector.load %arg5[%c0_167, %c49_168, %c0_169] : memref<1x65x128xf32, #tpu.memory_space<vmem>>, vector<1x8x128xf32>
    %475 = vector.shape_cast %474 : vector<1x8x128xf32> to vector<8x128xf32>
    %476 = vector.shape_cast %473 : vector<8x128xf32> to vector<1x8x128xf32>
    tpu.vector_store %arg5[%c0_167, %c49_168, %c0_169], %476 {strides = array<i32>} : memref<1x65x128xf32, #tpu.memory_space<vmem>>, vector<1x8x128xf32>,
    %c0_170 = arith.constant 0 : index
    %c57_171 = arith.constant 57 : index
    %c0_172 = arith.constant 0 : index
    %477 = vector.load %arg4[%c0_170, %c57_171, %c0_172] : memref<1x65x128xf32, #tpu.memory_space<vmem>>, vector<1x8x128xf32>
    %478 = vector.shape_cast %477 : vector<1x8x128xf32> to vector<8x128xf32>
    %479 = vector.extract_strided_slice %392 {offsets = [7, 0, 0], sizes = [1, 8, 128], strides = [1, 1, 1]} : vector<8x8x128xf32> to vector<1x8x128xf32>
    %480 = vector.shape_cast %479 : vector<1x8x128xf32> to vector<8x128xf32>
    %481 = arith.addf %480, %478 : vector<8x128xf32>
    %482 = vector.shape_cast %394 : vector<128xf32> to vector<1x128xf32>
    %483 = vector.broadcast %482 : vector<1x128xf32> to vector<8x128xf32>
    %484 = arith.addf %481, %483 : vector<8x128xf32>
    %c0_173 = arith.constant 0 : index
    %c57_174 = arith.constant 57 : index
    %c0_175 = arith.constant 0 : index
    %485 = vector.load %arg5[%c0_173, %c57_174, %c0_175] : memref<1x65x128xf32, #tpu.memory_space<vmem>>, vector<1x8x128xf32>
    %486 = vector.shape_cast %485 : vector<1x8x128xf32> to vector<8x128xf32>
    %487 = vector.shape_cast %484 : vector<8x128xf32> to vector<1x8x128xf32>
    tpu.vector_store %arg5[%c0_173, %c57_174, %c0_175], %487 {strides = array<i32>} : memref<1x65x128xf32, #tpu.memory_space<vmem>>, vector<1x8x128xf32>,
    return
  }
  func.func @transform_0(%arg0: i32, %arg1: i32) -> (i32, i32) {
    %c0_i32 = arith.constant 0 : i32
    %c0_i32_0 = arith.constant 0 : i32
    return %c0_i32, %arg1 : i32, i32
  }
  func.func @transform_1(%arg0: i32, %arg1: i32) -> (i32, i32) {
    %c0_i32 = arith.constant 0 : i32
    %c0_i32_0 = arith.constant 0 : i32
    return %c0_i32, %arg1 : i32, i32
  }
  func.func @transform_2(%arg0: i32, %arg1: i32) -> (i32, i32, i32) {
    %c0_i32 = arith.constant 0 : i32
    %c0_i32_0 = arith.constant 0 : i32
    return %arg0, %c0_i32, %arg1 : i32, i32, i32
  }
  func.func @transform_3(%arg0: i32, %arg1: i32) -> (i32, i32, i32) {
    %c0_i32 = arith.constant 0 : i32
    %c0_i32_0 = arith.constant 0 : i32
    return %arg0, %c0_i32, %arg1 : i32, i32, i32
  }
}

</mosaic_0001>

<bundles_post_ra>
// kernel: tpu_custom_call.1
= control target key start
LH: loop header
LB: loop body
LE: loop exit
PB: predicated region body
PF: predicated region fallthrough
CT: control target
= control target key end

     0   :  { %s1708_s12 = smov 0   ;;  %s1710_s13 = smov 0   ;;  %s3390_s0 = inlined_call_operand.vmem [shape: f32[49,128], index: 0, kind: input, shape index: {}]   ;;  %s3391_s1 = inlined_call_operand.vmem [shape: f32[1,128], index: 1, kind: input, shape index: {}]   ;;  %s3392_s2 = inlined_call_operand.vmem [shape: f32[2,65,128], index: 2, kind: input, shape index: {}]   ;;  %s3393_s3 = inlined_call_operand.vmem [shape: f32[2,65,128], index: 3, kind: output, shape index: {}]  }
   0x1   :  { %s1712_s14 = smov 0  }
   0x2 LB: > { %s25_s15 = sadd.s32 1, %s1681_s13  ;;  %p1570_p0 = scmp.ge.s32.totalorder %s1685_s14, 1  ;;  %s1685_s14 = sphi %s1712_s14, %s13_s14   ;;  %s1681_s13 = sphi %s1710_s13, %s3769_s13   ;;  %s1677_s12 = sphi %s1708_s12, %s3768_s12  }
   0x3   : > { %p27_p1 = scmp.ge.s32.totalorder %s25_s15, 2  ;;  %p173_p2 = scmp.lt.s32.totalorder %s1685_s14, 3 }
   0x5   : > { %s3771_s15 = smov (%p27_p1, %s25_s15), 0  ;;  %p174_p3 = pnand %p1570_p0, %p173_p2 }
   0x7   : > { %177 = sbr.rel (%p174_p3) target bundleno = 268 (0x10c), region = 32 }
   0xc   : > { %v1687_v0 = vmov 0.0   ;;  %p217_p4 = scmp.lt.s32.totalorder %s1677_s12, 1  ;;  %v1732_v1 = vld [vmem:[%s3390_s0] ss:$0 sm:$0xff]  ;;  %v1737_v2 = vld [vmem:[%s3390_s0 + $0x7] ss:$0 sm:$0xff] }
   0xd   : > { %233 = vst [vmem:[#allocation2] sm:$0xff] %v1687_v0  ;;  %234 = vst [vmem:[#allocation2 + $0x8] sm:$0x3f] %v1687_v0  ;;  %v1743_v3 = vmul.f32 0.0, %v1732_v1  ;;  %v325_v4 = vmul.f32 0.0, %v1737_v2 }
   0xe   : > { %235 = vst [vmem:[#allocation2 + $0x10] sm:$0xff] %v1687_v0  ;;  %236 = vst [vmem:[#allocation2 + $0x18] sm:$0x3f] %v1687_v0  ;;  %s3773_s12 = smov (!%p217_p4, %s1677_s12), 1  ;;  %v1749_v5 = vld [vmem:[%s3390_s0 + $0xe] ss:$0 sm:$0xff] }
   0xf   : > { %237 = vst [vmem:[#allocation2 + $0x20] sm:$0xff] %v1687_v0  ;;  %238 = vst [vmem:[#allocation2 + $0x28] sm:$0x3f] %v1687_v0  ;;  %s1625_s22 = smul.u32 72, %s3773_s12  ;;  %v1753_v6 = vadd.f32 %v325_v4, %v1743_v3  ;;  %v346_v7 = vmul.f32 0.0, %v1749_v5 }
  0x10   : > { %239 = vst [vmem:[#allocation2 + $0x30] sm:$0xff] %v1687_v0  ;;  %240 = vst [vmem:[#allocation2 + $0x38] sm:$0x3f] %v1687_v0  ;;  %v1759_v11 = vld [vmem:[%s3390_s0 + $0x1] ss:$0 sm:$0xff] }
  0x11   : > { %241 = vst [vmem:[#allocation2 + $0x40] sm:$0xff] %v1687_v0  ;;  %242 = vst [vmem:[#allocation2 + $0x48] sm:$0x3f] %v1687_v0  ;;  %v1764_v12 = vld [vmem:[%s3390_s0 + $0x8] ss:$0 sm:$0xff]  ;;  %s1771_s29 = scalar_lea.vmem %s3392_s2, %s1625_s22  ;;  %v1794_v19 = vadd.f32 %v346_v7, %v1753_v6  ;;  %s2281_s24 = scalar_lea.vmem %s3393_s3, %s1625_s22 }
  0x12   : > { %243 = vst [vmem:[#allocation2 + $0x50] sm:$0xff] %v1687_v0  ;;  %244 = vst [vmem:[#allocation2 + $0x58] sm:$0x3f] %v1687_v0  ;;  %v1776_v13 = vld [vmem:[%s3390_s0 + $0xf] ss:$0 sm:$0xff]  ;;  %v1824_v31 = vld [vmem:[%s1771_s29 + $0x1] sm:$0xff] }
  0x13   : > { %245 = vst [vmem:[#allocation2 + $0x60] sm:$0xff] %v1687_v0  ;;  %246 = vst [vmem:[#allocation2 + $0x68] sm:$0x3f] %v1687_v0  ;;  %v1781_v16 = vld [vmem:[%s3390_s0 + $0x2] ss:$0 sm:$0xff]  ;;  %v1827_v32 = vld [vmem:[%s1771_s29 + $0x9] sm:$0xff] }
  0x14   : > { %247 = vst [vmem:[#allocation2 + $0x70] sm:$0xff] %v1687_v0  ;;  %248 = vst [vmem:[#allocation2 + $0x78] sm:$0x3f] %v1687_v0  ;;  %v446_v8 = vld [vmem:[#allocation2 + $0x1] sm:$0xff]  ;;  %v1791_v18 = vld [vmem:[%s3390_s0 + $0xa] ss:$0 sm:$0xff] }
  0x15   : > { %249 = vst [vmem:[#allocation2 + $0x80] sm:$0xff] %v1687_v0  ;;  %250 = vst [vmem:[#allocation2 + $0x88] sm:$0x3f] %v1687_v0  ;;  %v447_v9 = vld [vmem:[#allocation2 + $0x11] sm:$0xff]  ;;  %v607_v14 = vld [vmem:[#allocation2 + $0x2] sm:$0xff]  ;;  %v1812_v26 = vmul.f32 %v1759_v11, %v446_v8 }
  0x16   : > { %251 = vst [vmem:[#allocation2 + $0x90] sm:$0xff] %v1687_v0  ;;  %252 = vst [vmem:[#allocation2 + $0x98] sm:$0x3f] %v1687_v0  ;;  %v448_v10 = vld [vmem:[#allocation2 + $0x21] sm:$0xff]  ;;  %v608_v15 = vld [vmem:[#allocation2 + $0x12] sm:$0xff]  ;;  %v1815_v27 = vmul.f32 %v1759_v11, %v447_v9  ;;  %v1821_v29 = vmul.f32 %v1764_v12, %v447_v9  ;;  %v1836_v35 = vmul.f32 %v1781_v16, %v607_v14 }
  0x17   : > { %253 = vst [vmem:[#allocation2 + $0xa0] sm:$0xff] %v1687_v0  ;;  %254 = vst [vmem:[#allocation2 + $0xa8] sm:$0x3f] %v1687_v0  ;;  %v1786_v17 = vld [vmem:[%s3390_s0 + $0x3] ss:$0 sm:$0xff]  ;;  %v769_v24 = vld [vmem:[#allocation2 + $0x13] sm:$0xff]  ;;  %v1818_v28 = vmul.f32 %v1759_v11, %v448_v10  ;;  %v1830_v33 = vmul.f32 %v1764_v12, %v448_v10  ;;  %v1833_v34 = vmul.f32 %v1776_v13, %v448_v10 }
  0x18   : > { %255 = vst [vmem:[#allocation2 + $0xb0] sm:$0xff] %v1687_v0  ;;  %256 = vst [vmem:[#allocation2 + $0xb8] sm:$0x3f] %v1687_v0  ;;  %v609_v20 = vld [vmem:[#allocation2 + $0x22] sm:$0xff]  ;;  %v1804_v22 = vld [vmem:[%s3390_s0 + $0x10] ss:$0 sm:$0xff]  ;;  %v1839_v36 = vmul.f32 %v1781_v16, %v608_v15  ;;  %v1879_v50 = vmul.f32 %v1786_v17, %v769_v24  ;;  %v1885_v52 = vmul.f32 %v1791_v18, %v769_v24 }
  0x19   : > { %257 = vst [vmem:[#allocation2 + $0xc0] sm:$0xff] %v1687_v0  ;;  %258 = vst [vmem:[#allocation2 + $0xc8] sm:$0x3f] %v1687_v0  ;;  %v1799_v21 = vld [vmem:[%s3390_s0 + $0x9] ss:$0 sm:$0xff]  ;;  %v930_v38 = vld [vmem:[#allocation2 + $0x14] sm:$0xff]  ;;  %v1849_v40 = vmul.f32 %v1781_v16, %v609_v20  ;;  %v1858_v43 = vmul.f32 %v1804_v22, %v609_v20 }
  0x1a   : > { %259 = vst [vmem:[#allocation2 + $0xd0] sm:$0xff] %v1687_v0  ;;  %260 = vst [vmem:[#allocation2 + $0xd8] sm:$0x3f] %v1687_v0  ;;  %v768_v23 = vld [vmem:[#allocation2 + $0x3] sm:$0xff]  ;;  %v1809_v25 = vld [vmem:[%s3390_s0 + $0x11] ss:$0 sm:$0xff]  ;;  %v1852_v41 = vmul.f32 %v1799_v21, %v608_v15  ;;  %v1855_v42 = vmul.f32 %v1799_v21, %v609_v20 }
  0x1b   : > { %3425 = vst [vmem:[#allocation3_spill] sm:$0xff] %v1732_v1  ;;  %3426 = vst [vmem:[#allocation4_spill] sm:$0xff] %v1809_v25  ;;  %v770_v30 = vld [vmem:[#allocation2 + $0x23] sm:$0xff]  ;;  %v1865_v46 = vld [vmem:[%s3390_s0 + $0xb] ss:$0 sm:$0xff]  ;;  %v1876_v49 = vmul.f32 %v1786_v17, %v768_v23 }
  0x1c   : > { %3427 = vst [vmem:[#allocation5_spill] sm:$0xff] %v1818_v28  ;;  %3428 = vst [vmem:[#allocation6_spill] sm:$0xff] %v1839_v36  ;;  %v929_v37 = vld [vmem:[#allocation2 + $0x4] sm:$0xff]  ;;  %v1870_v47 = vld [vmem:[%s3390_s0 + $0x12] ss:$0 sm:$0xff]  ;;  %v1882_v51 = vmul.f32 %v1786_v17, %v770_v30  ;;  %v1894_v57 = vmul.f32 %v1791_v18, %v770_v30  ;;  %v1897_v58 = vmul.f32 %v1809_v25, %v770_v30 }
  0x1d   : > { %v1844_v39 = vld [vmem:[%s3390_s0 + $0x4] ss:$0 sm:$0xff]  ;;  %263 = vst [vmem:[#allocation2 + $0x33] sm:$0xff] %v1824_v31  ;;  %266 = vst [vmem:[#allocation2 + $0x43] sm:$0xff] %v1827_v32  ;;  %v1873_v48 = vld [vmem:[%s1771_s29 + $0x11] sm:$0xff]  ;;  %v1919_v7 = vmul.f32 %v1865_v46, %v930_v38 }
  0x1e   : > { %3429 = vst [vmem:[#allocation7_spill] sm:$0xff] %v1849_v40  ;;  %3430 = vst [vmem:[#allocation8_spill] sm:$0xff] %v1852_v41  ;;  %v931_v44 = vld [vmem:[#allocation2 + $0x24] sm:$0xff]  ;;  %v1890_v55 = vld [vmem:[%s3390_s0 + $0x2e] ss:$0 sm:$0xff]  ;;  %v1900_v59 = vmul.f32 %v1844_v39, %v929_v37  ;;  %v1903_v60 = vmul.f32 %v1844_v39, %v930_v38 }
  0x1f   : > { %3431 = vst [vmem:[#allocation9_spill] sm:$0xff] %v1855_v42  ;;  %3432 = vst [vmem:[#allocation10_spill] sm:$0xff] %v1858_v43  ;;  %v1860_v45 = vld [vmem:[#allocation2 + $0xb4] sm:$0xff]  ;;  %v1090_v56 = vld [vmem:[#allocation2 + $0x5] sm:$0xff]  ;;  %v1916_v4 = vmul.f32 %v1844_v39, %v931_v44  ;;  %v1922_v8 = vmul.f32 %v1865_v46, %v931_v44  ;;  %v1925_v9 = vmul.f32 %v1870_v47, %v931_v44 }
  0x20   : > { %3433 = vst [vmem:[#allocation11_spill] sm:$0xff] %v1870_v47  ;;  %3434 = vst [vmem:[#allocation12_spill] sm:$0xff] %v1876_v49  ;;  %v941_v53 = vld [vmem:[#allocation2 + $0xc4] sm:$0xff]  ;;  %v1905_v61 = vld [vmem:[#allocation2 + $0x15] sm:$0xff]  ;;  %v1938_v15 = vmul.f32 %v1890_v55, %v1860_v45 }
  0x21   : > { %3435 = vst [vmem:[#allocation13_spill] sm:$0xff] %v1879_v50  ;;  %3436 = vst [vmem:[#allocation14_spill] sm:$0xff] %v1882_v51  ;;  %v942_v54 = vld [vmem:[#allocation2 + $0xd4] sm:$0xff]  ;;  %v1608_v62 = vld [vmem:[%s3390_s0 + $0x5] ss:$0 sm:$0xff]  ;;  %v1941_v20 = vmul.f32 %v1890_v55, %v941_v53  ;;  %v1965_v53 = vmul.f32 %v1786_v17, %v1824_v31 }
  0x22   : > { %3437 = vst [vmem:[#allocation15_spill] sm:$0xff] %v1885_v52  ;;  %3438 = vst [vmem:[#allocation16_spill] sm:$0xff] %v1890_v55  ;;  %v1911_v63 = vld [vmem:[%s1771_s29 + $0x19] sm:$0xff]  ;;  %v1913_v0 = vld [vmem:[#allocation2 + $0xb1] sm:$0xff]  ;;  %v1944_v23 = vmul.f32 %v1890_v55, %v942_v54  ;;  %v1946_v24 = vmul.f32 %v1608_v62, %v1090_v56  ;;  %v1969_v54 = vmul.f32 %v1791_v18, %v1824_v31 }
  0x23   : > { %269 = vst [vmem:[#allocation2 + $0x53] sm:$0xff] %v1873_v48  ;;  %3439 = vst [vmem:[#allocation17_spill] sm:$0xff] %v1894_v57  ;;  %v1930_v10 = vld [vmem:[%s3390_s0 + $0x18] ss:$0 sm:$0xff]  ;;  %v1934_v14 = vld [vmem:[%s1771_s29 + $0x21] sm:$0xff]  ;;  %v1973_v56 = vmul.f32 %v1809_v25, %v1824_v31 }
  0x24   : > { %3440 = vst [vmem:[#allocation18_spill] sm:$0xff] %v1897_v58  ;;  %3441 = vst [vmem:[#allocation19_spill] sm:$0xff] %v1900_v59  ;;  %v1950_v30 = vld [vmem:[%s1771_s29 + $0x29] sm:$0xff]  ;;  %v1953_v37 = vld [vmem:[%s1771_s29 + $0x31] sm:$0xff] }
  0x25   : > { %3442 = vst [vmem:[#allocation20_spill] sm:$0xff] %v1903_v60  ;;  %3443 = vst [vmem:[#allocation21_spill] sm:$0xff] %v1905_v61  ;;  %v282_v38 = vld [vmem:[%s1771_s29 + $0x39] sm:$0xff]  ;;  %v2005_v60 = vmul.f32 %v1786_v17, %v1827_v32  ;;  %v2042_v59 = vld [vmem:[#allocation2 + $0xc3] sm:$0xff] }
  0x26   : > { %3444 = vst [vmem:[#allocation22_spill] sm:$0xff] %v1916_v4  ;;  %3445 = vst [vmem:[#allocation23_spill] sm:$0xff] %v1919_v7  ;;  %v1956_v44 = vld [vmem:[#allocation2 + $0xb2] sm:$0xff]  ;;  %v2020_v55 = vld [vmem:[%s3390_s0 + $0x1e] ss:$0 sm:$0xff] }
  0x27   : > { %3446 = vst [vmem:[#allocation24_spill] sm:$0xff] %v1922_v8  ;;  %3447 = vst [vmem:[#allocation25_spill] sm:$0xff] %v1925_v9  ;;  %v1958_v4 = vld [vmem:[#allocation2 + $0xb3] sm:$0xff]  ;;  %v1996_v8 = vld [vmem:[%s3390_s0 + $0x1c] ss:$0 sm:$0xff] }
  0x28   : > { %3448 = vst [vmem:[#allocation26_spill] sm:$0xff] %v1930_v10  ;;  %272 = vst [vmem:[#allocation2 + $0x63] sm:$0xff] %v1911_v63  ;;  %v2036_v9 = vmul.f32 0.0, %v1996_v8  ;;  %v2142_v40 = vld [vmem:[%s3390_s0 + $0x2d] ss:$0 sm:$0xff]  ;;  %v610_v58 = vld [vmem:[#allocation2 + $0x32] sm:$0xff] }
  0x29   : > { %3449 = vst [vmem:[#allocation27_spill] sm:$0xff] %v1938_v15  ;;  %3450 = vst [vmem:[#allocation28_spill] sm:$0xff] %v1941_v20  ;;  %v1961_v15 = vmul.f32 %v1608_v62, %v1905_v61  ;;  %v1982_v62 = vld [vmem:[#allocation2 + $0xc1] sm:$0xff]  ;;  %v1987_v20 = vld [vmem:[%s3390_s0 + $0x15] ss:$0 sm:$0xff]  ;;  %v2009_v61 = vmul.f32 %v1791_v18, %v1827_v32 }
  0x2a   : > { %3451 = vst [vmem:[#allocation29_spill] sm:$0xff] %v1944_v23  ;;  %3452 = vst [vmem:[#allocation30_spill] sm:$0xff] %v1946_v24  ;;  %v1978_v23 = vld [vmem:[%s3390_s0 + $0x1f] ss:$0 sm:$0xff]  ;;  %v2015_v24 = vld [vmem:[#allocation2 + $0xc2] sm:$0xff] }
  0x2b   : > { %275 = vst [vmem:[#allocation2 + $0x73] sm:$0xff] %v1934_v14  ;;  %3453 = vst [vmem:[#allocation31_spill] sm:$0xff] %v1950_v30  ;;  %v2090_v51 = vmul.f32 %v1978_v23, %v1873_v48  ;;  %v933_v43 = vld [vmem:[#allocation2 + $0x44] sm:$0xff] }
  0x2c   : > { %3454 = vst [vmem:[#allocation32_spill] sm:$0xff] %v1953_v37  ;;  %3455 = vst [vmem:[#allocation33_spill] sm:$0xff] %v1961_v15  ;;  %v1991_v15 = vmul.f32 %v1930_v10, %v1824_v31  ;;  %v2013_v31 = vmul.f32 %v1809_v25, %v1827_v32 }
  0x2d   : > { %3456 = vst [vmem:[#allocation34_spill] sm:$0xff] %v1965_v53  ;;  %3457 = vst [vmem:[#allocation35_spill] sm:$0xff] %v1969_v54  ;;  %v2024_v53 = vmul.f32 %v1930_v10, %v1827_v32 }
  0x2e   : > { %3458 = vst [vmem:[#allocation36_spill] sm:$0xff] %v1973_v56  ;;  %3459 = vst [vmem:[#allocation37_spill] sm:$0xff] %v1978_v23 }
  0x2f   : > { %278 = vst [vmem:[#allocation2 + $0x83] sm:$0xff] %v1950_v30  ;;  %281 = vst [vmem:[#allocation2 + $0x93] sm:$0xff] %v1953_v37  ;;  %v288_v37 = vld [vmem:[#allocation2 + $0x30] sm:$0xff]  ;;  %v2184_v30 = vld [vmem:[%s3390_s0 + $0x19] ss:$0 sm:$0xff] }
  0x30   : > { %284 = vst [vmem:[#allocation2 + $0xa3] sm:$0xff] %v282_v38  ;;  %3460 = vst [vmem:[#allocation38_spill] sm:$0xff] %v1991_v15  ;;  %v2001_v38 = vld [vmem:[%s3390_s0 + $0x1d] ss:$0 sm:$0xff]  ;;  %v347_v50 = vmul.f32 %v1749_v5, %v288_v37  ;;  %v307_v52 = vmul.f32 %v1732_v1, %v288_v37 }
  0x31   : > { %3461 = vst [vmem:[#allocation39_spill] sm:$0xff] %v2005_v60  ;;  %3462 = vst [vmem:[#allocation40_spill] sm:$0xff] %v2009_v61  ;;  %v2028_v60 = vmul.f32 %v1978_v23, %v1827_v32  ;;  %v2033_v61 = vld [vmem:[%s3390_s0 + $0x20] ss:$0 sm:$0xff]  ;;  %v2040_v7 = vmul.f32 %v2001_v38, %v1913_v0  ;;  %v2050_v32 = vmul.f32 %v1978_v23, %v1958_v4 }
  0x32   : > { %3463 = vst [vmem:[#allocation41_spill] sm:$0xff] %v2013_v31  ;;  %3464 = vst [vmem:[#allocation42_spill] sm:$0xff] %v2024_v53  ;;  %v2046_v31 = vmul.f32 %v2020_v55, %v1956_v44  ;;  %v2054_v54 = vmul.f32 %v2033_v61, %v1860_v45  ;;  %v2078_v45 = vld [vmem:[%s3390_s0 + $0x25] ss:$0 sm:$0xff] }
  0x33   : > { %3465 = vst [vmem:[#allocation43_spill] sm:$0xff] %v2028_v60  ;;  %3466 = vst [vmem:[#allocation44_spill] sm:$0xff] %v2033_v61  ;;  %v449_v60 = vld [vmem:[#allocation2 + $0x31] sm:$0xff] }
  0x34   : > { %3467 = vst [vmem:[#allocation45_spill] sm:$0xff] %v2036_v9  ;;  %3468 = vst [vmem:[#allocation46_spill] sm:$0xff] %v2040_v7  ;;  %v2058_v9 = vmul.f32 %v1791_v18, %v1873_v48  ;;  %v2063_v7 = vld [vmem:[%s3390_s0 + $0x26] ss:$0 sm:$0xff]  ;;  %v2162_v49 = vmul.f32 %v1759_v11, %v449_v60  ;;  %v2165_v42 = vmul.f32 %v1764_v12, %v449_v60 }
  0x35   : > { %3469 = vst [vmem:[#allocation47_spill] sm:$0xff] %v2046_v31  ;;  %3470 = vst [vmem:[#allocation48_spill] sm:$0xff] %v2050_v32  ;;  %v2068_v31 = vld [vmem:[%s3390_s0 + $0x23] ss:$0 sm:$0xff]  ;;  %v2073_v32 = vld [vmem:[%s3390_s0 + $0x24] ss:$0 sm:$0xff]  ;;  %v2094_v53 = vmul.f32 %v2063_v7, %v1873_v48  ;;  %v2133_v15 = vmul.f32 %v2063_v7, %v2042_v59 }
  0x36   : > { %3471 = vst [vmem:[#allocation49_spill] sm:$0xff] %v2054_v54  ;;  %3472 = vst [vmem:[#allocation50_spill] sm:$0xff] %v2058_v9  ;;  %v2082_v54 = vmul.f32 %v1809_v25, %v1873_v48  ;;  %v2086_v9 = vmul.f32 %v1930_v10, %v1873_v48  ;;  %v2097_v56 = vmul.f32 0.0, %v2068_v31  ;;  %v2101_v57 = vmul.f32 %v2073_v32, %v1913_v0 }
  0x37   : > { %3473 = vst [vmem:[#allocation51_spill] sm:$0xff] %v2063_v7  ;;  %3476 = vst [vmem:[#allocation54_spill] sm:$0xff] %v2090_v51  ;;  %v327_v51 = vmul.f32 %v1737_v2, %v288_v37 }
  0x38   : > { %3474 = vst [vmem:[#allocation52_spill] sm:$0xff] %v2082_v54  ;;  %3475 = vst [vmem:[#allocation53_spill] sm:$0xff] %v2086_v9  ;;  %v2105_v54 = vmul.f32 %v2073_v32, %v1982_v62  ;;  %v2109_v9 = vmul.f32 %v2078_v45, %v1956_v44 }
  0x39   : > { %3477 = vst [vmem:[#allocation55_spill] sm:$0xff] %v2094_v53  ;;  %3478 = vst [vmem:[#allocation56_spill] sm:$0xff] %v2097_v56  ;;  %v367_v53 = vmul.f32 %v1987_v20, %v288_v37  ;;  %v2116_v56 = vmul.f32 %v2078_v45, %v2015_v24  ;;  %v335_v36 = vadd.f32 %v327_v51, %v1743_v3 }
  0x3a   : > { %3479 = vst [vmem:[#allocation57_spill] sm:$0xff] %v2101_v57  ;;  %3480 = vst [vmem:[#allocation58_spill] sm:$0xff] %v2105_v54  ;;  %v2121_v57 = vld [vmem:[%s3390_s0 + $0x16] ss:$0 sm:$0xff]  ;;  %v2125_v54 = vmul.f32 %v1786_v17, %v1873_v48  ;;  %v289_v48 = vld [vmem:[#allocation2 + $0x40] sm:$0xff]  ;;  %v2193_v3 = vmul.f32 %v1804_v22, %v610_v58 }
  0x3b   : > { %3481 = vst [vmem:[#allocation59_spill] sm:$0xff] %v2109_v9  ;;  %3482 = vst [vmem:[#allocation60_spill] sm:$0xff] %v2116_v56  ;;  %v2129_v9 = vmul.f32 %v2063_v7, %v1958_v4  ;;  %v2137_v56 = vmul.f32 %v1809_v25, %v1911_v63  ;;  %v375_v37 = vadd.f32 %v367_v53, %v1794_v19  ;;  %v450_v19 = vld [vmem:[#allocation2 + $0x41] sm:$0xff] }
  0x3c   : > { %3483 = vst [vmem:[#allocation61_spill] sm:$0xff] %v2125_v54  ;;  %3485 = vst [vmem:[#allocation63_spill] sm:$0xff] %v2133_v15  ;;  %v2146_v54 = vmul.f32 %v1930_v10, %v1911_v63  ;;  %v2154_v15 = vmul.f32 %v2063_v7, %v1911_v63  ;;  %v2187_v25 = vmul.f32 %v1781_v16, %v610_v58 }
  0x3d   : > { %3484 = vst [vmem:[#allocation62_spill] sm:$0xff] %v2129_v9  ;;  %3486 = vst [vmem:[#allocation64_spill] sm:$0xff] %v2137_v56  ;;  %v2150_v9 = vmul.f32 %v1978_v23, %v1911_v63  ;;  %v2158_v56 = vmul.f32 %v2142_v40, %v1911_v63  ;;  %v388_v28 = vmul.f32 %v1996_v8, %v289_v48 }
  0x3e   : > { %3487 = vst [vmem:[#allocation65_spill] sm:$0xff] %v2142_v40  ;;  %3488 = vst [vmem:[#allocation66_spill] sm:$0xff] %v2146_v54  ;;  %v2168_v54 = vmul.f32 %v1776_v13, %v449_v60  ;;  %v2225_v10 = vmul.f32 %v2121_v57, %v450_v19 }
  0x3f   : > { %3489 = vst [vmem:[#allocation67_spill] sm:$0xff] %v2150_v9  ;;  %3490 = vst [vmem:[#allocation68_spill] sm:$0xff] %v2154_v15  ;;  %v2173_v9 = vld [vmem:[%s3390_s0 + $0x17] ss:$0 sm:$0xff]  ;;  %v396_v23 = vadd.f32 %v388_v28, %v375_v37 }
  0x40   : > { %3491 = vst [vmem:[#allocation69_spill] sm:$0xff] %v2158_v56  ;;  %3492 = vst [vmem:[#allocation70_spill] sm:$0xff] %v2162_v49  ;;  %v932_v15 = vld [vmem:[#allocation2 + $0x34] sm:$0xff]  ;;  %v355_v56 = vadd.f32 %v347_v50, %v1753_v6  ;;  %v2179_v49 = vmul.f32 %v2121_v57, %v449_v60  ;;  %v328_v6 = vmul.f32 %v1737_v2, %v289_v48 }
  0x41   : > { %3493 = vst [vmem:[#allocation71_spill] sm:$0xff] %v2165_v42  ;;  %3494 = vst [vmem:[#allocation72_spill] sm:$0xff] %v2168_v54  ;;  %v2190_v42 = vmul.f32 %v1799_v21, %v610_v58  ;;  %v2197_v50 = vmul.f32 %v2173_v9, %v610_v58  ;;  %v2200_v51 = vmul.f32 %v1844_v39, %v932_v15  ;;  %v611_v58 = vld [vmem:[#allocation2 + $0x42] sm:$0xff] }
  0x42   : > { %3495 = vst [vmem:[#allocation73_spill] sm:$0xff] %v2184_v30  ;;  %3496 = vst [vmem:[#allocation74_spill] sm:$0xff] %v2187_v25  ;;  %v2203_v60 = vmul.f32 %v1865_v46, %v932_v15  ;;  %v2206_v53 = vmul.f32 %v1870_v47, %v932_v15  ;;  %v2209_v25 = vmul.f32 %v2184_v30, %v932_v15  ;;  %v290_v15 = vld [vmem:[#allocation2 + $0x50] sm:$0xff] }
  0x43   : > { %3497 = vst [vmem:[#allocation75_spill] sm:$0xff] %v2190_v42  ;;  %3498 = vst [vmem:[#allocation76_spill] sm:$0xff] %v2193_v3  ;;  %v308_v42 = vmul.f32 %v1732_v1, %v289_v48  ;;  %v348_v3 = vmul.f32 %v1749_v5, %v289_v48  ;;  %v329_v28 = vmul.f32 %v1737_v2, %v290_v15 }
  0x44   : > { %3499 = vst [vmem:[#allocation77_spill] sm:$0xff] %v2197_v50  ;;  %3500 = vst [vmem:[#allocation78_spill] sm:$0xff] %v2200_v51  ;;  %v368_v50 = vmul.f32 %v1987_v20, %v289_v48  ;;  %v2216_v51 = vmul.f32 %v1759_v11, %v450_v19  ;;  %v2228_v48 = vmul.f32 %v2001_v38, %v450_v19 }
  0x45   : > { %3501 = vst [vmem:[#allocation79_spill] sm:$0xff] %v2203_v60  ;;  %3502 = vst [vmem:[#allocation80_spill] sm:$0xff] %v2206_v53  ;;  %v2219_v60 = vmul.f32 %v1764_v12, %v450_v19  ;;  %v2222_v53 = vmul.f32 %v1776_v13, %v450_v19  ;;  %v356_v7 = vadd.f32 %v348_v3, %v335_v36 }
  0x46   : > { %3503 = vst [vmem:[#allocation81_spill] sm:$0xff] %v2209_v25  ;;  %3504 = vst [vmem:[#allocation82_spill] sm:$0xff] %v2216_v51  ;;  %v336_v25 = vadd.f32 %v328_v6, %v307_v52  ;;  %v376_v41 = vadd.f32 %v368_v50, %v355_v56  ;;  %v2231_v51 = vmul.f32 %v1781_v16, %v611_v58  ;;  %v451_v56 = vld [vmem:[#allocation2 + $0x51] sm:$0xff]  ;;  %v291_v50 = vld [vmem:[#allocation2 + $0x60] sm:$0xff] }
  0x47   : > { %3505 = vst [vmem:[#allocation83_spill] sm:$0xff] %v2219_v60  ;;  %3506 = vst [vmem:[#allocation84_spill] sm:$0xff] %v2222_v53  ;;  %v2234_v60 = vmul.f32 %v1799_v21, %v611_v58  ;;  %v2237_v53 = vmul.f32 %v1804_v22, %v611_v58  ;;  %v2240_v36 = vmul.f32 %v2173_v9, %v611_v58 }
  0x48   : > { %3507 = vst [vmem:[#allocation85_spill] sm:$0xff] %v2225_v10  ;;  %3508 = vst [vmem:[#allocation86_spill] sm:$0xff] %v2231_v51  ;;  %v409_v52 = vmul.f32 %v2068_v31, %v290_v15  ;;  %v2245_v37 = vmul.f32 %v2020_v55, %v611_v58  ;;  %v2248_v3 = vmul.f32 %v1844_v39, %v933_v43  ;;  %v2259_v51 = vld [vmem:[%s3390_s0 + $0x2a] ss:$0 sm:$0xff]  ;;  %v612_v10 = vld [vmem:[#allocation2 + $0x52] sm:$0xff] }
  0x49   : > { %3509 = vst [vmem:[#allocation87_spill] sm:$0xff] %v2234_v60  ;;  %3510 = vst [vmem:[#allocation88_spill] sm:$0xff] %v2237_v53  ;;  %v2251_v6 = vmul.f32 %v1865_v46, %v933_v43  ;;  %v2254_v19 = vmul.f32 %v1870_v47, %v933_v43  ;;  %v2262_v60 = vmul.f32 %v2184_v30, %v933_v43 }
  0x4a   : > { %3511 = vst [vmem:[#allocation89_spill] sm:$0xff] %v2240_v36  ;;  %3512 = vst [vmem:[#allocation90_spill] sm:$0xff] %v2245_v37  ;;  %v2265_v58 = vmul.f32 %v2033_v61, %v933_v43  ;;  %v417_v53 = vadd.f32 %v409_v52, %v396_v23  ;;  %v389_v36 = vmul.f32 %v1996_v8, %v290_v15  ;;  %v1413_v43 = vld [vmem:[%s1771_s29] sm:$0x1] }
  0x4b   : > { %3513 = vst [vmem:[#allocation91_spill] sm:$0xff] %v2248_v3  ;;  %3514 = vst [vmem:[#allocation92_spill] sm:$0xff] %v2251_v6  ;;  %v2268_v3 = vmul.f32 %v1732_v1, %v290_v15  ;;  %v349_v6 = vmul.f32 %v1749_v5, %v290_v15  ;;  %v2274_v37 = vmul.f32 %v1764_v12, %v451_v56 }
  0x4c   : > { %3515 = vst [vmem:[#allocation93_spill] sm:$0xff] %v2254_v19  ;;  %3516 = vst [vmem:[#allocation94_spill] sm:$0xff] %v2262_v60  ;;  %v369_v19 = vmul.f32 %v1987_v20, %v290_v15  ;;  %v2284_v60 = vadd.f32 %v329_v28, %v308_v42  ;;  %v2287_v23 = vmul.f32 %v1776_v13, %v451_v56  ;;  %v2292_v15 = vld [vmem:[#allocation2 + $0x54] sm:$0xff] }
  0x4d   : > { %3517 = vst [vmem:[#allocation95_spill] sm:$0xff] %v2265_v58  ;;  %3518 = vst [vmem:[#allocation96_spill] sm:$0xff] %v2268_v3  ;;  %v2290_v52 = vmul.f32 %v2121_v57, %v451_v56  ;;  %v430_v61 = vmul.f32 %v2259_v51, %v291_v50  ;;  %v2296_v58 = vadd.f32 %v349_v6, %v336_v25  ;;  %v452_v6 = vld [vmem:[#allocation2 + $0x61] sm:$0xff] }
  0x4e   : > { %3519 = vst [vmem:[#allocation97_spill] sm:$0xff] %v2274_v37  ;;  %3520 = vst [vmem:[#allocation98_spill] sm:$0xff] %v2284_v60  ;;  %v377_v37 = vadd.f32 %v369_v19, %v356_v7  ;;  %v397_v3 = vadd.f32 %v389_v36, %v376_v41  ;;  %v2299_v54 = vmul.f32 %v2001_v38, %v451_v56 }
  0x4f   : > { %3521 = vst [vmem:[#allocation99_spill] sm:$0xff] %v2287_v23  ;;  %3522 = vst [vmem:[#allocation100_spill] sm:$0xff] %v2290_v52  ;;  %v570_v42 = vmul.f32 %v2073_v32, %v451_v56  ;;  %v2303_v28 = vmul.f32 %v1799_v21, %v612_v10  ;;  %v2306_v60 = vmul.f32 %v1804_v22, %v612_v10 }
  0x50   : > { %3523 = vst [vmem:[#allocation101_spill] sm:$0xff] %v2292_v15  ;;  %1414 = vst [vmem:[%s2281_s24] sm:$0x1] %v1413_v43  ;;  %v438_v23 = vadd.f32 %v430_v61, %v417_v53  ;;  %v2309_v52 = vmul.f32 %v2173_v9, %v612_v10  ;;  %v2312_v25 = vmul.f32 %v2020_v55, %v612_v10 }
  0x51   : > { %3524 = vst [vmem:[#allocation102_spill] sm:$0xff] %v2303_v28  ;;  %3525 = vst [vmem:[#allocation103_spill] sm:$0xff] %v2306_v60  ;;  %v2315_v41 = vmul.f32 %v2078_v45, %v612_v10  ;;  %v2319_v7 = vmul.f32 %v1865_v46, %v2292_v15  ;;  %v2323_v36 = vmul.f32 %v1870_v47, %v2292_v15 }
  0x52   : > { %3526 = vst [vmem:[#allocation104_spill] sm:$0xff] %v2309_v52  ;;  %v2327_v61 = vmul.f32 %v2184_v30, %v2292_v15  ;;  %v2330_v53 = vmul.f32 %v1759_v11, %v451_v56  ;;  %v473_v19 = vadd.f32 %v1812_v26, %v438_v23  ;;  %v2334_v43 = vmul.f32 %v1781_v16, %v612_v10  ;;  %v2352_v26 = vld [vmem:[%s3390_s0 + $0x2b] ss:$0 sm:$0xff]  ;;  %v613_v10 = vld [vmem:[#allocation2 + $0x62] sm:$0xff] }
  0x53   : > { %3527 = vst [vmem:[#allocation105_spill] sm:$0xff] %v2319_v7  ;;  %3528 = vst [vmem:[#allocation106_spill] sm:$0xff] %v2323_v36  ;;  %v2338_v7 = vmul.f32 %v1844_v39, %v2292_v15  ;;  %v2341_v28 = vmul.f32 %v1732_v1, %v291_v50  ;;  %v2344_v36 = vmul.f32 %v1737_v2, %v291_v50 }
  0x54   : > { %3529 = vst [vmem:[#allocation107_spill] sm:$0xff] %v2327_v61  ;;  %3530 = vst [vmem:[#allocation108_spill] sm:$0xff] %v2330_v53  ;;  %v390_v61 = vmul.f32 %v1996_v8, %v291_v50  ;;  %v410_v56 = vmul.f32 %v2068_v31, %v291_v50  ;;  %v494_v53 = vadd.f32 %v1821_v29, %v473_v19  ;;  %v2370_v19 = vld [vmem:[#allocation2 + $0x70] sm:$0xff] }
  0x55   : > { %3531 = vst [vmem:[#allocation109_spill] sm:$0xff] %v2334_v43  ;;  %3532 = vst [vmem:[#allocation110_spill] sm:$0xff] %v2338_v7  ;;  %v2356_v23 = vmul.f32 %v1786_v17, %v1911_v63  ;;  %v2359_v7 = vmul.f32 %v1749_v5, %v291_v50  ;;  %v2362_v43 = vmul.f32 %v1987_v20, %v291_v50  ;;  %v2379_v50 = vld [vmem:[%s3390_s0 + $0x2c] ss:$0 sm:$0xff] }
  0x56   : > { %3533 = vst [vmem:[#allocation111_spill] sm:$0xff] %v2341_v28  ;;  %3534 = vst [vmem:[#allocation112_spill] sm:$0xff] %v2344_v36  ;;  %v2365_v15 = vmul.f32 %v1776_v13, %v452_v6  ;;  %v2368_v29 = vmul.f32 %v2121_v57, %v452_v6  ;;  %v398_v60 = vadd.f32 %v390_v61, %v377_v37 }
  0x57   : > { %3535 = vst [vmem:[#allocation113_spill] sm:$0xff] %v2356_v23  ;;  %3536 = vst [vmem:[#allocation114_spill] sm:$0xff] %v2359_v7  ;;  %v418_v30 = vadd.f32 %v410_v56, %v397_v3  ;;  %v515_v47 = vadd.f32 %v1833_v34, %v494_v53  ;;  %v2374_v23 = vmul.f32 %v2001_v38, %v452_v6  ;;  %v459_v34 = vld [vmem:[#allocation2 + $0xd1] sm:$0xff] }
  0x58   : > { %3537 = vst [vmem:[#allocation115_spill] sm:$0xff] %v2365_v15  ;;  %3538 = vst [vmem:[#allocation116_spill] sm:$0xff] %v2368_v29  ;;  %v2382_v52 = vmul.f32 %v2073_v32, %v452_v6  ;;  %v591_v15 = vmul.f32 %v2352_v26, %v452_v6  ;;  %v2386_v29 = vmul.f32 %v1804_v22, %v613_v10  ;;  %v620_v7 = vld [vmem:[#allocation2 + $0xd2] sm:$0xff] }
  0x59   : > { %v2389_v37 = vmul.f32 %v2173_v9, %v613_v10  ;;  %v536_v3 = vadd.f32 %v2179_v49, %v515_v47  ;;  %v2393_v61 = vmul.f32 %v2020_v55, %v613_v10  ;;  %v2396_v53 = vmul.f32 %v2078_v45, %v613_v10  ;;  %v781_v49 = vld [vmem:[#allocation2 + $0xd3] sm:$0xff] }
  0x5a   : > { %3539 = vst [vmem:[#allocation117_spill] sm:$0xff] %v2386_v29  ;;  %v431_v56 = vmul.f32 %v2259_v51, %v2370_v19  ;;  %v2401_v28 = vmul.f32 %v2379_v50, %v613_v10  ;;  %v2404_v29 = vmul.f32 0.0, %v2259_v51  ;;  %v2410_v47 = vmul.f32 %v1764_v12, %v452_v6 }
  0x5b   : > { %3540 = vst [vmem:[#allocation118_spill] sm:$0xff] %v2389_v37  ;;  %3541 = vst [vmem:[#allocation119_spill] sm:$0xff] %v2393_v61  ;;  %v2407_v37 = vmul.f32 %v1759_v11, %v452_v6  ;;  %v557_v61 = vadd.f32 %v2228_v48, %v536_v3  ;;  %v2415_v36 = vmul.f32 %v2352_v26, %v1913_v0  ;;  %v2434_v3 = vld [vmem:[#allocation2 + $0x64] sm:$0xff] }
  0x5c   : > { %3542 = vst [vmem:[#allocation120_spill] sm:$0xff] %v2396_v53  ;;  %3543 = vst [vmem:[#allocation121_spill] sm:$0xff] %v2404_v29  ;;  %v2419_v1 = vmul.f32 %v2352_v26, %v1982_v62  ;;  %v439_v53 = vadd.f32 %v431_v56, %v418_v30  ;;  %v2422_v29 = vmul.f32 %v2352_v26, %v459_v34 }
  0x5d   : > { %3544 = vst [vmem:[#allocation122_spill] sm:$0xff] %v2407_v37  ;;  %3545 = vst [vmem:[#allocation123_spill] sm:$0xff] %v2410_v47  ;;  %v2425_v37 = vmul.f32 %v1781_v16, %v613_v10  ;;  %v2428_v6 = vmul.f32 %v1799_v21, %v613_v10  ;;  %v2432_v48 = vmul.f32 %v2379_v50, %v1956_v44 }
  0x5e   : > { %3546 = vst [vmem:[#allocation124_spill] sm:$0xff] %v2415_v36  ;;  %3547 = vst [vmem:[#allocation125_spill] sm:$0xff] %v2419_v1  ;;  %v578_v0 = vadd.f32 %v570_v42, %v557_v61  ;;  %v2438_v62 = vmul.f32 %v2379_v50, %v2015_v24  ;;  %v2441_v30 = vmul.f32 %v2379_v50, %v620_v7  ;;  %v453_v7 = vld [vmem:[#allocation2 + $0x71] sm:$0xff] }
  0x5f   : > { %3548 = vst [vmem:[#allocation126_spill] sm:$0xff] %v2422_v29  ;;  %3549 = vst [vmem:[#allocation127_spill] sm:$0xff] %v2425_v37  ;;  %v474_v34 = vadd.f32 %v1815_v27, %v439_v53  ;;  %v2446_v10 = vmul.f32 %v1791_v18, %v1911_v63  ;;  %v2450_v44 = vmul.f32 %v2142_v40, %v1958_v4  ;;  %v293_v4 = vld [vmem:[#allocation2 + $0x80] sm:$0xff]  ;;  %v3570_v29 = vld [vmem:[#allocation37_spill] sm:$0xff] }
  0x60   : > { %3550 = vst [vmem:[#allocation128_spill] sm:$0xff] %v2428_v6  ;;  %3551 = vst [vmem:[#allocation129_spill] sm:$0xff] %v2432_v48  ;;  %v2454_v42 = vmul.f32 %v2142_v40, %v2042_v59  ;;  %v2457_v24 = vmul.f32 %v2142_v40, %v781_v49  ;;  %v599_v61 = vadd.f32 %v591_v15, %v578_v0 }
  0x61   : > { %3552 = vst [vmem:[#allocation130_spill] sm:$0xff] %v2434_v3  ;;  %3553 = vst [vmem:[#allocation131_spill] sm:$0xff] %v2438_v62  ;;  %v495_v56 = vadd.f32 %v1830_v33, %v474_v34  ;;  %v2462_v27 = vmul.f32 %v1786_v17, %v1934_v14  ;;  %v2466_v63 = vmul.f32 %v1791_v18, %v1934_v14  ;;  %v3563_v34 = vld [vmem:[#allocation72_spill] sm:$0xff] }
  0x62   : > { %3554 = vst [vmem:[#allocation132_spill] sm:$0xff] %v2441_v30  ;;  %3555 = vst [vmem:[#allocation133_spill] sm:$0xff] %v2446_v10  ;;  %v2470_v59 = vmul.f32 %v1844_v39, %v2434_v3  ;;  %v2474_v53 = vmul.f32 %v1865_v46, %v2434_v3  ;;  %v2478_v33 = vmul.f32 %v1737_v2, %v2370_v19  ;;  %v2538_v3 = vld [vmem:[#allocation2 + $0x74] sm:$0xff] }
  0x63   : > { %3556 = vst [vmem:[#allocation134_spill] sm:$0xff] %v2450_v44  ;;  %3557 = vst [vmem:[#allocation135_spill] sm:$0xff] %v2454_v42  ;;  %v411_v17 = vmul.f32 %v2068_v31, %v2370_v19  ;;  %v634_v15 = vadd.f32 %v1836_v35, %v599_v61  ;;  %v2485_v49 = vmul.f32 %v1749_v5, %v2370_v19  ;;  %v3564_v61 = vld [vmem:[#allocation8_spill] sm:$0xff] }
  0x64   : > { %3558 = vst [vmem:[#allocation136_spill] sm:$0xff] %v2457_v24  ;;  %3559 = vst [vmem:[#allocation137_spill] sm:$0xff] %v2462_v27  ;;  %v2489_v0 = vmul.f32 %v1987_v20, %v2370_v19  ;;  %v516_v44 = vadd.f32 %v3563_v34, %v495_v56  ;;  %v2495_v24 = vmul.f32 %v2121_v57, %v453_v7  ;;  %v3565_v27 = vld [vmem:[#allocation85_spill] sm:$0xff] }
  0x65   : > { %3560 = vst [vmem:[#allocation138_spill] sm:$0xff] %v2466_v63  ;;  %3561 = vst [vmem:[#allocation139_spill] sm:$0xff] %v2470_v59  ;;  %v391_v59 = vmul.f32 %v1996_v8, %v2370_v19  ;;  %v419_v42 = vadd.f32 %v411_v17, %v398_v60  ;;  %v432_v35 = vmul.f32 %v2259_v51, %v293_v4  ;;  %v3567_v17 = vld [vmem:[#allocation10_spill] sm:$0xff] }
  0x66   : > { %3562 = vst [vmem:[#allocation140_spill] sm:$0xff] %v2474_v53  ;;  %v614_v53 = vld [vmem:[#allocation2 + $0x72] sm:$0xff]  ;;  %v655_v63 = vadd.f32 %v3564_v61, %v634_v15  ;;  %v537_v10 = vadd.f32 %v3565_v27, %v516_v44  ;;  %v2501_v30 = vmul.f32 %v2001_v38, %v453_v7  ;;  %v572_v62 = vmul.f32 %v2073_v32, %v453_v7 }
  0x67   : > { %v592_v56 = vmul.f32 %v2352_v26, %v453_v7  ;;  %v2506_v34 = vmul.f32 %v2173_v9, %v614_v53  ;;  %v2509_v48 = vmul.f32 %v2020_v55, %v614_v53  ;;  %v440_v60 = vadd.f32 %v432_v35, %v419_v42  ;;  %v3568_v61 = vld [vmem:[#allocation26_spill] sm:$0xff]  ;;  %v3572_v42 = vld [vmem:[#allocation51_spill] sm:$0xff] }
  0x68   : > { %v676_v6 = vadd.f32 %v3567_v17, %v655_v63  ;;  %v558_v15 = vadd.f32 %v2299_v54, %v537_v10  ;;  %v2514_v44 = vmul.f32 %v2078_v45, %v614_v53  ;;  %v2517_v27 = vmul.f32 %v2379_v50, %v614_v53  ;;  %v3574_v63 = vld [vmem:[#allocation5_spill] sm:$0xff] }
  0x69   : > { %3566 = vst [vmem:[#allocation72_spill] sm:$0xff] %v2506_v34  ;;  %v2521_v37 = vmul.f32 %v3568_v61, %v1934_v14  ;;  %v2525_v1 = vmul.f32 %v3570_v29, %v1934_v14  ;;  %v2529_v35 = vmul.f32 %v3572_v42, %v1934_v14  ;;  %v475_v54 = vadd.f32 %v3574_v63, %v440_v60  ;;  %v3575_v10 = vld [vmem:[#allocation77_spill] sm:$0xff] }
  0x6a   : > { %v697_v17 = vadd.f32 %v3575_v10, %v676_v6  ;;  %v579_v34 = vadd.f32 %v2382_v52, %v558_v15  ;;  %v2536_v36 = vmul.f32 %v2142_v40, %v1934_v14  ;;  %3576 = vst [vmem:[#allocation5_spill] sm:$0xff] %v2538_v3  ;;  %v2547_v47 = vmul.f32 %v1776_v13, %v453_v7  ;;  %v3581_v6 = vld [vmem:[#allocation71_spill] sm:$0xff]  ;;  %v3582_v15 = vld [vmem:[#allocation90_spill] sm:$0xff] }
  0x6b   : > { %3569 = vst [vmem:[#allocation8_spill] sm:$0xff] %v2521_v37  ;;  %3571 = vst [vmem:[#allocation85_spill] sm:$0xff] %v2525_v1  ;;  %v2541_v37 = vmul.f32 %v1759_v11, %v453_v7  ;;  %v2544_v1 = vmul.f32 %v1764_v12, %v453_v7  ;;  %v2550_v60 = vmul.f32 %v1781_v16, %v614_v53  ;;  %v3588_v16 = vld [vmem:[#allocation84_spill] sm:$0xff] }
  0x6c   : > { %3573 = vst [vmem:[#allocation10_spill] sm:$0xff] %v2529_v35  ;;  %3579 = vst [vmem:[#allocation142_spill] sm:$0xff] %v2547_v47  ;;  %v496_v52 = vadd.f32 %v3581_v6, %v475_v54  ;;  %v718_v63 = vadd.f32 %v3582_v15, %v697_v17  ;;  %v600_v10 = vadd.f32 %v592_v56, %v579_v34  ;;  %v3589_v54 = vld [vmem:[#allocation31_spill] sm:$0xff]  ;;  %v3591_v34 = vld [vmem:[#allocation6_spill] sm:$0xff] }
  0x6d   : > { %3577 = vst [vmem:[#allocation77_spill] sm:$0xff] %v2541_v37  ;;  %3578 = vst [vmem:[#allocation141_spill] sm:$0xff] %v2544_v1  ;;  %v2555_v35 = vmul.f32 %v1799_v21, %v614_v53  ;;  %v2558_v11 = vmul.f32 %v1804_v22, %v614_v53  ;;  %v3585_v37 = vld [vmem:[#allocation4_spill] sm:$0xff]  ;;  %v2566_v7 = vmul.f32 %v1844_v39, %v2538_v3  ;;  %v3624_v47 = vld [vmem:[#allocation98_spill] sm:$0xff] }
  0x6e   : > { %3580 = vst [vmem:[#allocation143_spill] sm:$0xff] %v2550_v60  ;;  %v2562_v1 = vmul.f32 %v3585_v37, %v1934_v14  ;;  %v517_v60 = vadd.f32 %v3588_v16, %v496_v52  ;;  %v2571_v17 = vmul.f32 %v1791_v18, %v3589_v54  ;;  %v739_v56 = vadd.f32 %v2315_v41, %v718_v63  ;;  %v2580_v15 = vld [vmem:[#allocation2 + $0x81] sm:$0xff] }
  0x6f   : > { %3583 = vst [vmem:[#allocation71_spill] sm:$0xff] %v2555_v35  ;;  %3584 = vst [vmem:[#allocation90_spill] sm:$0xff] %v2558_v11  ;;  %v635_v6 = vadd.f32 %v3591_v34, %v600_v10  ;;  %v2577_v53 = vmul.f32 %v1865_v46, %v2538_v3  ;;  %v332_v14 = vmul.f32 %v1737_v2, %v293_v4  ;;  %v3593_v16 = vld [vmem:[#allocation100_spill] sm:$0xff]  ;;  %v3594_v10 = vld [vmem:[#allocation9_spill] sm:$0xff] }
  0x70   : > { %3586 = vst [vmem:[#allocation4_spill] sm:$0xff] %v2562_v1  ;;  %3587 = vst [vmem:[#allocation144_spill] sm:$0xff] %v2566_v7  ;;  %v352_v39 = vmul.f32 %v1749_v5, %v293_v4  ;;  %v2584_v52 = vmul.f32 %v1987_v20, %v293_v4  ;;  %v538_v18 = vadd.f32 %v3593_v16, %v517_v60  ;;  %v2595_v7 = vld [vmem:[#allocation2 + $0x90] sm:$0xff]  ;;  %v3598_v16 = vld [vmem:[#allocation76_spill] sm:$0xff] }
  0x71   : > { %3590 = vst [vmem:[#allocation84_spill] sm:$0xff] %v2571_v17  ;;  %3592 = vst [vmem:[#allocation31_spill] sm:$0xff] %v2577_v53  ;;  %v378_v41 = vadd.f32 %v2362_v43, %v2296_v58  ;;  %v760_v63 = vadd.f32 %v2401_v28, %v739_v56  ;;  %v656_v34 = vadd.f32 %v3594_v10, %v635_v6  ;;  %v2606_v28 = vld [vmem:[#allocation2 + $0x82] sm:$0xff] }
  0x72   : > { %v2592_v53 = vmul.f32 %v1996_v8, %v293_v4  ;;  %v412_v2 = vmul.f32 %v2068_v31, %v293_v4  ;;  %v2599_v17 = vmul.f32 %v1776_v13, %v2580_v15  ;;  %v2603_v60 = vmul.f32 %v2121_v57, %v2580_v15  ;;  %v3597_v56 = vld [vmem:[#allocation12_spill] sm:$0xff] }
  0x73   : > { %v559_v58 = vadd.f32 %v2374_v23, %v538_v18  ;;  %v399_v43 = vadd.f32 %v391_v59, %v378_v41  ;;  %v795_v6 = vadd.f32 %v3597_v56, %v760_v63  ;;  %v677_v10 = vadd.f32 %v3598_v16, %v656_v34  ;;  %v3599_v59 = vld [vmem:[#allocation15_spill] sm:$0xff]  ;;  %v3600_v41 = vld [vmem:[#allocation89_spill] sm:$0xff] }
  0x74   : > { %3595 = vst [vmem:[#allocation6_spill] sm:$0xff] %v2599_v17  ;;  %3596 = vst [vmem:[#allocation100_spill] sm:$0xff] %v2603_v60  ;;  %v2612_v4 = vmul.f32 %v2001_v38, %v2580_v15  ;;  %v573_v1 = vmul.f32 %v2073_v32, %v2580_v15  ;;  %v593_v11 = vmul.f32 %v2352_v26, %v2580_v15  ;;  %v3622_v60 = vld [vmem:[#allocation99_spill] sm:$0xff] }
  0x75   : > { %v580_v3 = vadd.f32 %v572_v62, %v559_v58  ;;  %v420_v35 = vadd.f32 %v412_v2, %v399_v43  ;;  %v433_v23 = vmul.f32 %v2259_v51, %v2595_v7  ;;  %v816_v18 = vadd.f32 %v3599_v59, %v795_v6  ;;  %v3605_v6 = vld [vmem:[#allocation18_spill] sm:$0xff]  ;;  %v3623_v17 = vld [vmem:[#allocation111_spill] sm:$0xff] }
  0x76   : > { %v698_v63 = vadd.f32 %v3600_v41, %v677_v10  ;;  %v2624_v34 = vmul.f32 %v1804_v22, %v2606_v28  ;;  %v2628_v56 = vmul.f32 %v2173_v9, %v2606_v28  ;;  %v2632_v58 = vmul.f32 %v2020_v55, %v2606_v28 }
  0x77   : > { %v601_v62 = vadd.f32 %v593_v11, %v580_v3  ;;  %v2636_v2 = vmul.f32 %v2078_v45, %v2606_v28  ;;  %v441_v43 = vadd.f32 %v433_v23, %v420_v35  ;;  %v837_v16 = vadd.f32 %v3605_v6, %v816_v18  ;;  %v3607_v3 = vld [vmem:[#allocation7_spill] sm:$0xff]  ;;  %v3610_v23 = vld [vmem:[#allocation70_spill] sm:$0xff]  ;;  %v3612_v6 = vld [vmem:[#allocation120_spill] sm:$0xff] }
  0x78   : > { %3601 = vst [vmem:[#allocation9_spill] sm:$0xff] %v2624_v34  ;;  %3602 = vst [vmem:[#allocation12_spill] sm:$0xff] %v2628_v56  ;;  %v719_v10 = vadd.f32 %v2312_v25, %v698_v63  ;;  %v754_v59 = vmul.f32 %v2379_v50, %v2606_v28  ;;  %v2644_v41 = vmul.f32 %v3585_v37, %v3589_v54  ;;  %v3611_v25 = vld [vmem:[#allocation38_spill] sm:$0xff] }
  0x79   : > { %3603 = vst [vmem:[#allocation76_spill] sm:$0xff] %v2632_v58  ;;  %3604 = vst [vmem:[#allocation15_spill] sm:$0xff] %v2636_v2  ;;  %v636_v11 = vadd.f32 %v3607_v3, %v601_v62  ;;  %v2649_v56 = vmul.f32 %v3568_v61, %v3589_v54  ;;  %v2653_v35 = vmul.f32 %v3570_v29, %v3589_v54  ;;  %v3615_v3 = vld [vmem:[#allocation75_spill] sm:$0xff] }
  0x7a   : > { %3606 = vst [vmem:[#allocation89_spill] sm:$0xff] %v2644_v41  ;;  %v476_v18 = vadd.f32 %v3610_v23, %v441_v43  ;;  %v858_v63 = vadd.f32 %v3611_v25, %v837_v16  ;;  %v740_v34 = vadd.f32 %v3612_v6, %v719_v10  ;;  %v2660_v58 = vmul.f32 %v3572_v42, %v3589_v54  ;;  %v3616_v23 = vld [vmem:[#allocation83_spill] sm:$0xff] }
  0x7b   : > { %3608 = vst [vmem:[#allocation18_spill] sm:$0xff] %v2649_v56  ;;  %3609 = vst [vmem:[#allocation7_spill] sm:$0xff] %v2653_v35  ;;  %v2664_v62 = vmul.f32 %v2142_v40, %v3589_v54  ;;  %v657_v56 = vadd.f32 %v3615_v3, %v636_v11  ;;  %v353_v41 = vmul.f32 %v1749_v5, %v2595_v7  ;;  %v3617_v25 = vld [vmem:[#allocation43_spill] sm:$0xff]  ;;  %v3619_v54 = vld [vmem:[#allocation96_spill] sm:$0xff] }
  0x7c   : > { %3613 = vst [vmem:[#allocation70_spill] sm:$0xff] %v2660_v58  ;;  %v373_v43 = vmul.f32 %v1987_v20, %v2595_v7  ;;  %v497_v16 = vadd.f32 %v3616_v23, %v476_v18  ;;  %v879_v10 = vadd.f32 %v3617_v25, %v858_v63  ;;  %v761_v6 = vadd.f32 %v2517_v27, %v740_v34  ;;  %v295_v35 = vld [vmem:[#allocation2 + $0xa0] sm:$0xff]  ;;  %v3620_v40 = vld [vmem:[#allocation112_spill] sm:$0xff]  ;;  %v3625_v18 = vld [vmem:[#allocation114_spill] sm:$0xff] }
  0x7d   : > { %3614 = vst [vmem:[#allocation38_spill] sm:$0xff] %v2664_v62  ;;  %v3618_v58 = vld [vmem:[#allocation3_spill] sm:$0xff]  ;;  %v338_v29 = vadd.f32 %v3620_v40, %v3619_v54  ;;  %v3621_v11 = vld [vmem:[#allocation88_spill] sm:$0xff]  ;;  %v339_v61 = vadd.f32 %v2478_v33, %v3623_v17  ;;  %v358_v23 = vadd.f32 %v3625_v18, %v3624_v47  ;;  %v3627_v27 = vld [vmem:[#allocation13_spill] sm:$0xff] }
  0x7e   : > { %v311_v42 = vmul.f32 %v3618_v58, %v2370_v19  ;;  %v678_v3 = vadd.f32 %v3621_v11, %v657_v56  ;;  %v518_v5 = vadd.f32 %v3622_v60, %v497_v16  ;;  %v3626_v63 = vld [vmem:[#allocation55_spill] sm:$0xff]  ;;  %v796_v34 = vadd.f32 %v3627_v27, %v761_v6  ;;  %v3628_v58 = vld [vmem:[#allocation104_spill] sm:$0xff]  ;;  %v3630_v16 = vld [vmem:[#allocation69_spill] sm:$0xff] }
  0x7f   : > { %v900_v25 = vadd.f32 %v3626_v63, %v879_v10  ;;  %v359_v19 = vadd.f32 %v2485_v49, %v338_v29  ;;  %v3629_v40 = vld [vmem:[#allocation116_spill] sm:$0xff]  ;;  %v360_v56 = vadd.f32 %v352_v39, %v339_v61  ;;  %v374_v60 = vmul.f32 %v1987_v20, %v295_v35  ;;  %v3631_v33 = vld [vmem:[#allocation17_spill] sm:$0xff]  ;;  %v3632_v6 = vld [vmem:[#allocation119_spill] sm:$0xff] }
  0x80   : > { %v340_v62 = vadd.f32 %v332_v14, %v311_v42  ;;  %v699_v2 = vadd.f32 %v3628_v58, %v678_v3  ;;  %v539_v54 = vadd.f32 %v3629_v40, %v518_v5  ;;  %v817_v17 = vadd.f32 %v3631_v33, %v796_v34  ;;  %v455_v47 = vld [vmem:[#allocation2 + $0x91] sm:$0xff]  ;;  %v2696_v14 = vld [vmem:[#allocation2 + $0x84] sm:$0xff] }
  0x81   : > { %v2691_v11 = vadd.f32 %v3630_v16, %v900_v25  ;;  %v379_v10 = vadd.f32 %v2489_v0, %v358_v23  ;;  %v380_v49 = vadd.f32 %v2584_v52, %v359_v19  ;;  %v381_v61 = vadd.f32 %v373_v43, %v360_v56  ;;  %v3633_v39 = vld [vmem:[#allocation36_spill] sm:$0xff]  ;;  %v3635_v52 = vld [vmem:[#allocation11_spill] sm:$0xff] }
  0x82   : > { %v361_v18 = vadd.f32 %v353_v41, %v340_v62  ;;  %v720_v42 = vadd.f32 %v3632_v6, %v699_v2  ;;  %v560_v29 = vadd.f32 %v2501_v30, %v539_v54  ;;  %v838_v20 = vadd.f32 %v3633_v39, %v817_v17  ;;  %v3634_v30 = vld [vmem:[#allocation42_spill] sm:$0xff] }
  0x83   : > { %v413_v3 = vmul.f32 %v2068_v31, %v2595_v7  ;;  %v400_v63 = vadd.f32 %v2592_v53, %v379_v10  ;;  %v393_v0 = vmul.f32 %v1996_v8, %v2595_v7  ;;  %v594_v62 = vmul.f32 %v2352_v26, %v455_v47  ;;  %v3636_v53 = vld [vmem:[#allocation73_spill] sm:$0xff]  ;;  %v3637_v7 = vld [vmem:[#allocation54_spill] sm:$0xff] }
  0x84   : > { %v382_v5 = vadd.f32 %v374_v60, %v361_v18  ;;  %v741_v41 = vadd.f32 %v2514_v44, %v720_v42  ;;  %v581_v2 = vadd.f32 %v573_v1, %v560_v29  ;;  %v859_v23 = vadd.f32 %v3634_v30, %v838_v20  ;;  %v3638_v60 = vld [vmem:[#allocation14_spill] sm:$0xff]  ;;  %v3640_v18 = vld [vmem:[#allocation68_spill] sm:$0xff]  ;;  %v3642_v42 = vld [vmem:[#allocation35_spill] sm:$0xff] }
  0x85   : > { %v2711_v43 = vmul.f32 %v3635_v52, %v2696_v14  ;;  %v421_v25 = vadd.f32 %v413_v3, %v400_v63  ;;  %v434_v27 = vmul.f32 %v2259_v51, %v295_v35  ;;  %v2716_v19 = vmul.f32 %v3636_v53, %v2696_v14  ;;  %v3639_v51 = vld [vmem:[#allocation74_spill] sm:$0xff] }
  0x86   : > { %v762_v34 = vadd.f32 %v754_v59, %v741_v41  ;;  %v602_v44 = vadd.f32 %v594_v62, %v581_v2  ;;  %v401_v58 = vadd.f32 %v393_v0, %v380_v49  ;;  %v880_v1 = vadd.f32 %v3637_v7, %v859_v23  ;;  %v3643_v49 = vld [vmem:[#allocation87_spill] sm:$0xff]  ;;  %v3645_v41 = vld [vmem:[#allocation41_spill] sm:$0xff] }
  0x87   : > { %v493_v40 = vmul.f32 %v1764_v12, %v2580_v15  ;;  %v2723_v54 = vmul.f32 %v1799_v21, %v2606_v28  ;;  %v442_v56 = vadd.f32 %v434_v27, %v421_v25  ;;  %v394_v33 = vmul.f32 %v1996_v8, %v295_v35  ;;  %v616_v15 = vld [vmem:[#allocation2 + $0x92] sm:$0xff]  ;;  %v3646_v62 = vld [vmem:[#allocation103_spill] sm:$0xff] }
  0x88   : > { %v797_v16 = vadd.f32 %v3638_v60, %v762_v34  ;;  %v637_v59 = vadd.f32 %v3639_v51, %v602_v44  ;;  %v414_v17 = vmul.f32 %v2068_v31, %v295_v35  ;;  %v901_v10 = vadd.f32 %v3640_v18, %v880_v1  ;;  %v3641_v21 = vld [vmem:[#allocation82_spill] sm:$0xff]  ;;  %v3647_v23 = vld [vmem:[#allocation115_spill] sm:$0xff]  ;;  %v3648_v25 = vld [vmem:[#allocation45_spill] sm:$0xff] }
  0x89   : > { %v2732_v6 = vmul.f32 %v1865_v46, %v2696_v14  ;;  %v514_v12 = vmul.f32 %v1776_v13, %v455_v47  ;;  %v477_v28 = vadd.f32 %v3641_v21, %v442_v56  ;;  %v402_v20 = vadd.f32 %v394_v33, %v381_v61  ;;  %v3644_v46 = vld [vmem:[#allocation97_spill] sm:$0xff]  ;;  %v3650_v44 = vld [vmem:[#allocation118_spill] sm:$0xff] }
  0x8a   : > { %v818_v29 = vadd.f32 %v3642_v42, %v797_v16  ;;  %v658_v39 = vadd.f32 %v3643_v49, %v637_v59  ;;  %v422_v3 = vadd.f32 %v414_v17, %v401_v58  ;;  %v2739_v8 = vadd.f32 %v2536_v36, %v901_v10  ;;  %v3649_v34 = vld [vmem:[#allocation53_spill] sm:$0xff]  ;;  %v3653_v59 = vld [vmem:[#allocation67_spill] sm:$0xff]  ;;  %v3654_v10 = vld [vmem:[#allocation108_spill] sm:$0xff] }
  0x8b   : > { %v534_v31 = vmul.f32 %v2121_v57, %v455_v47  ;;  %v554_v35 = vmul.f32 %v2001_v38, %v455_v47  ;;  %v498_v63 = vadd.f32 %v3644_v46, %v477_v28  ;;  %v574_v0 = vmul.f32 %v2073_v32, %v455_v47  ;;  %v3651_v47 = vld [vmem:[#allocation56_spill] sm:$0xff]  ;;  %v3659_v46 = vld [vmem:[#allocation122_spill] sm:$0xff] }
  0x8c   : > { %v839_v13 = vadd.f32 %v3645_v41, %v818_v29  ;;  %v2747_v2 = vmul.f32 %v1804_v22, %v616_v15  ;;  %v679_v30 = vadd.f32 %v3646_v62, %v658_v39  ;;  %v2751_v61 = vmul.f32 %v2173_v9, %v616_v15  ;;  %v3652_v22 = vld [vmem:[#allocation121_spill] sm:$0xff]  ;;  %v456_v17 = vld [vmem:[#allocation2 + $0xa1] sm:$0xff]  ;;  %v3657_v39 = vld [vmem:[#allocation10_spill] sm:$0xff] }
  0x8d   : > { %v2754_v36 = vmul.f32 %v2020_v55, %v616_v15  ;;  %v519_v52 = vadd.f32 %v3647_v23, %v498_v63  ;;  %v403_v27 = vadd.f32 %v3648_v25, %v382_v5  ;;  %v423_v7 = vadd.f32 %v3651_v47, %v402_v20  ;;  %v3655_v28 = vld [vmem:[#allocation32_spill] sm:$0xff]  ;;  %v3660_v41 = vld [vmem:[#allocation123_spill] sm:$0xff]  ;;  %v3663_v25 = vld [vmem:[#allocation38_spill] sm:$0xff] }
  0x8e   : > { %v860_v53 = vadd.f32 %v3649_v34, %v839_v13  ;;  %v700_v58 = vadd.f32 %v3650_v44, %v679_v30  ;;  %v443_v1 = vadd.f32 %v3652_v22, %v422_v3  ;;  %v2763_v56 = vmul.f32 %v2078_v45, %v616_v15  ;;  %v3658_v3 = vld [vmem:[#allocation15_spill] sm:$0xff]  ;;  %v3665_v44 = vld [vmem:[#allocation142_spill] sm:$0xff] }
  0x8f   : > { %v755_v60 = vmul.f32 %v2379_v50, %v616_v15  ;;  %v540_v16 = vadd.f32 %v2495_v24, %v519_v52  ;;  %v424_v51 = vadd.f32 %v3651_v47, %v403_v27  ;;  %v444_v18 = vadd.f32 %v3652_v22, %v423_v7  ;;  %v3656_v24 = vld [vmem:[#allocation19_spill] sm:$0xff]  ;;  %v3666_v47 = vld [vmem:[#allocation26_spill] sm:$0xff] }
  0x90   : > { %v881_v33 = vadd.f32 %v3653_v59, %v860_v53  ;;  %v721_v5 = vadd.f32 %v2509_v48, %v700_v58  ;;  %v478_v21 = vadd.f32 %v3654_v10, %v443_v1  ;;  %v2774_v42 = vmul.f32 %v3585_v37, %v3655_v28  ;;  %v3661_v37 = vld [vmem:[#allocation77_spill] sm:$0xff]  ;;  %v3662_v52 = vld [vmem:[#allocation23_spill] sm:$0xff] }
  0x91   : > { %v561_v29 = vadd.f32 %v2612_v4, %v540_v16  ;;  %v445_v15 = vadd.f32 %v3652_v22, %v424_v51  ;;  %v956_v49 = vadd.f32 %v3656_v24, %v2691_v11  ;;  %v479_v63 = vadd.f32 %v3659_v46, %v444_v18  ;;  %v3664_v11 = vld [vmem:[#allocation141_spill] sm:$0xff]  ;;  %v3668_v16 = vld [vmem:[#allocation34_spill] sm:$0xff]  ;;  %v3670_v18 = vld [vmem:[#allocation100_spill] sm:$0xff] }
  0x92   : > { %v902_v20 = vadd.f32 %v3657_v39, %v881_v33  ;;  %v742_v48 = vadd.f32 %v3658_v3, %v721_v5  ;;  %v499_v13 = vadd.f32 %v3660_v41, %v478_v21  ;;  %v595_v30 = vmul.f32 %v2352_v26, %v456_v17  ;;  %v3667_v1 = vld [vmem:[#allocation25_spill] sm:$0xff]  ;;  %v3669_v33 = vld [vmem:[#allocation6_spill] sm:$0xff]  ;;  %v3673_v39 = vld [vmem:[#allocation40_spill] sm:$0xff] }
  0x93   : > { %v582_v62 = vadd.f32 %v574_v0, %v561_v29  ;;  %v480_v23 = vadd.f32 %v3661_v37, %v445_v15  ;;  %v977_v4 = vadd.f32 %v3662_v52, %v956_v49  ;;  %v500_v53 = vadd.f32 %v3664_v11, %v479_v63  ;;  %v3671_v29 = vld [vmem:[#allocation86_spill] sm:$0xff]  ;;  %v3672_v24 = vld [vmem:[#allocation81_spill] sm:$0xff] }
  0x94   : > { %v2788_v27 = vadd.f32 %v3663_v25, %v902_v20  ;;  %v763_v34 = vadd.f32 %v755_v60, %v742_v48  ;;  %v520_v58 = vadd.f32 %v3665_v44, %v499_v13  ;;  %v2794_v7 = vmul.f32 %v3666_v47, %v3655_v28  ;;  %v2802_v60 = vld [vmem:[%s3390_s0 + $0x27] ss:$0 sm:$0xff]  ;;  %v3674_v46 = vld [vmem:[#allocation102_spill] sm:$0xff]  ;;  %v3682_v44 = vld [vmem:[#allocation16_spill] sm:$0xff] }
  0x95   : > { %v603_v22 = vadd.f32 %v595_v30, %v582_v62  ;;  %v501_v0 = vadd.f32 %v493_v40, %v480_v23  ;;  %v998_v26 = vadd.f32 %v3667_v1, %v977_v4  ;;  %v535_v59 = vmul.f32 %v2121_v57, %v456_v17  ;;  %v3675_v13 = vld [vmem:[#allocation95_spill] sm:$0xff]  ;;  %v3676_v30 = vld [vmem:[#allocation101_spill] sm:$0xff]  ;;  %v3683_v47 = vld [vmem:[#allocation66_spill] sm:$0xff] }
  0x96   : > { %v798_v51 = vadd.f32 %v3668_v16, %v763_v34  ;;  %v521_v5 = vadd.f32 %v3669_v33, %v500_v53  ;;  %v541_v10 = vadd.f32 %v3670_v18, %v520_v58  ;;  %v555_v21 = vmul.f32 %v2001_v38, %v456_v17  ;;  %v3677_v38 = vld [vmem:[#allocation52_spill] sm:$0xff]  ;;  %v3681_v53 = vld [vmem:[#allocation130_spill] sm:$0xff]  ;;  %v3687_v33 = vld [vmem:[#allocation65_spill] sm:$0xff] }
  0x97   : > { %v638_v15 = vadd.f32 %v3671_v29, %v603_v22  ;;  %v522_v40 = vadd.f32 %v514_v12, %v501_v0  ;;  %v1019_v49 = vadd.f32 %v3672_v24, %v998_v26  ;;  %v575_v57 = vmul.f32 %v2073_v32, %v456_v17  ;;  %v3678_v12 = vld [vmem:[#allocation37_spill] sm:$0xff]  ;;  %v617_v34 = vld [vmem:[#allocation2 + $0xa2] sm:$0xff] }
  0x98   : > { %v819_v20 = vadd.f32 %v3673_v39, %v798_v51  ;;  %v542_v3 = vadd.f32 %v534_v31, %v521_v5  ;;  %v562_v48 = vadd.f32 %v554_v35, %v541_v10  ;;  %v1053_v37 = vmul.f32 %v2802_v60, %v3676_v30  ;;  %v3679_v32 = vld [vmem:[#allocation117_spill] sm:$0xff]  ;;  %v3680_v35 = vld [vmem:[#allocation46_spill] sm:$0xff]  ;;  %v3684_v0 = vld [vmem:[#allocation51_spill] sm:$0xff] }
  0x99   : > { %v659_v63 = vadd.f32 %v3674_v46, %v638_v15  ;;  %v543_v41 = vadd.f32 %v535_v59, %v522_v40  ;;  %v1040_v62 = vadd.f32 %v3675_v13, %v1019_v49  ;;  %v2818_v52 = vmul.f32 %v3678_v12, %v3655_v28  ;;  %v3685_v26 = vld [vmem:[#allocation57_spill] sm:$0xff]  ;;  %v3686_v51 = vld [vmem:[#allocation124_spill] sm:$0xff]  ;;  %v2856_v12 = vld [vmem:[%s3390_s0 + $0x1a] ss:$0 sm:$0xff] }
  0x9a   : > { %v840_v23 = vadd.f32 %v3677_v38, %v819_v20  ;;  %v563_v4 = vadd.f32 %v555_v21, %v542_v3  ;;  %v583_v25 = vadd.f32 %v575_v57, %v562_v48  ;;  %v1074_v58 = vmul.f32 %v3682_v44, %v3681_v53  ;;  %v3688_v18 = vld [vmem:[#allocation72_spill] sm:$0xff]  ;;  %v3689_v21 = vld [vmem:[#allocation58_spill] sm:$0xff]  ;;  %v3690_v24 = vld [vmem:[#allocation85_spill] sm:$0xff] }
  0x9b   : > { %v680_v31 = vadd.f32 %v3679_v32, %v659_v63  ;;  %v564_v17 = vadd.f32 %v3680_v35, %v543_v41  ;;  %v1061_v11 = vadd.f32 %v1053_v37, %v1040_v62  ;;  %v2827_v1 = vmul.f32 %v3684_v0, %v3655_v28  ;;  %v2835_v40 = vld [vmem:[#allocation2 + $0x25] sm:$0xff]  ;;  %v3691_v20 = vld [vmem:[#allocation125_spill] sm:$0xff]  ;;  %v3694_v41 = vld [vmem:[#allocation126_spill] sm:$0xff] }
  0x9c   : > { %v861_v22 = vadd.f32 %v3683_v47, %v840_v23  ;;  %v584_v16 = vadd.f32 %v3685_v26, %v563_v4  ;;  %v604_v59 = vadd.f32 %v3686_v51, %v583_v25  ;;  %v916_v5 = vmul.f32 %v3687_v33, %v3655_v28  ;;  %v3692_v3 = vld [vmem:[#allocation109_spill] sm:$0xff]  ;;  %v2844_v46 = vld [vmem:[%s3390_s0 + $0xc] ss:$0 sm:$0xff]  ;;  %v3695_v37 = vld [vmem:[#allocation30_spill] sm:$0xff] }
  0x9d   : > { %v701_v10 = vadd.f32 %v3688_v18, %v680_v31  ;;  %v585_v29 = vadd.f32 %v3689_v21, %v564_v17  ;;  %v1082_v15 = vadd.f32 %v1074_v58, %v1061_v11  ;;  %v696_v39 = vmul.f32 %v2173_v9, %v617_v34  ;;  %v3693_v28 = vld [vmem:[#allocation76_spill] sm:$0xff]  ;;  %v2848_v62 = vld [vmem:[#allocation2 + $0x35] sm:$0xff]  ;;  %v3698_v31 = vld [vmem:[#allocation127_spill] sm:$0xff] }
  0x9e   : > { %v882_v49 = vadd.f32 %v3690_v24, %v861_v22  ;;  %v605_v57 = vadd.f32 %v3691_v20, %v584_v16  ;;  %v639_v48 = vadd.f32 %v3692_v3, %v604_v59  ;;  %v3696_v23 = vld [vmem:[#allocation21_spill] sm:$0xff]  ;;  %v3697_v4 = vld [vmem:[#allocation70_spill] sm:$0xff]  ;;  %v756_v32 = vmul.f32 %v2379_v50, %v617_v34  ;;  %v3699_v17 = vld [vmem:[#allocation128_spill] sm:$0xff] }
  0x9f   : > { %v722_v63 = vadd.f32 %v3693_v28, %v701_v10  ;;  %v606_v13 = vadd.f32 %v3694_v41, %v585_v29  ;;  %v1117_v38 = vadd.f32 %v3695_v37, %v1082_v15  ;;  %v1130_v9 = vmul.f32 %v2844_v46, %v3696_v23  ;;  %v2865_v44 = vld [vmem:[%s3390_s0 + $0x13] ss:$0 sm:$0xff]  ;;  %v2867_v58 = vld [vmem:[#allocation2 + $0x45] sm:$0xff]  ;;  %v2876_v50 = vld [vmem:[%s3390_s0 + $0x21] ss:$0 sm:$0xff] }
  0xa0   : > { %v903_v25 = vadd.f32 %v3697_v4, %v882_v49  ;;  %v640_v35 = vadd.f32 %v3698_v31, %v605_v57  ;;  %v660_v11 = vadd.f32 %v3699_v17, %v639_v48  ;;  %v3700_v22 = vld [vmem:[#allocation143_spill] sm:$0xff]  ;;  %v1151_v16 = vmul.f32 %v2865_v44, %v2835_v40  ;;  %v3702_v18 = vld [vmem:[#allocation90_spill] sm:$0xff]  ;;  %v2890_v49 = vld [vmem:[%s3390_s0 + $0x28] ss:$0 sm:$0xff] }
  0xa1   : > { %v743_v47 = vadd.f32 %v2763_v56, %v722_v63  ;;  %v641_v0 = vadd.f32 %v3700_v22, %v606_v13  ;;  %v1138_v26 = vadd.f32 %v1130_v9, %v1117_v38  ;;  %v3701_v59 = vld [vmem:[#allocation71_spill] sm:$0xff]  ;;  %v1172_v56 = vmul.f32 %v2856_v12, %v2848_v62  ;;  %v2884_v21 = vld [vmem:[#allocation2 + $0x55] sm:$0xff]  ;;  %v3705_v28 = vld [vmem:[#allocation12_spill] sm:$0xff] }
  0xa2   : > { %v2878_v51 = vadd.f32 %v916_v5, %v903_v25  ;;  %v661_v33 = vadd.f32 %v3701_v59, %v640_v35  ;;  %v681_v10 = vadd.f32 %v3702_v18, %v660_v11  ;;  %v3703_v5 = vld [vmem:[#allocation20_spill] sm:$0xff]  ;;  %v716_v57 = vmul.f32 %v2020_v55, %v617_v34  ;;  %v3704_v3 = vld [vmem:[#allocation9_spill] sm:$0xff]  ;;  %v3708_v35 = vld [vmem:[#allocation50_spill] sm:$0xff] }
  0xa3   : > { %v764_v29 = vadd.f32 %v756_v32, %v743_v47  ;;  %v662_v15 = vadd.f32 %v2723_v54, %v641_v0  ;;  %v1159_v24 = vadd.f32 %v1151_v16, %v1138_v26  ;;  %v957_v20 = vadd.f32 %v3703_v5, %v2739_v8  ;;  %v2899_v13 = vld [vmem:[#allocation2 + $0x65] sm:$0xff]  ;;  %v2906_v8 = vld [vmem:[%s3390_s0 + $0x2f] ss:$0 sm:$0xff] }
  0xa4   : > { %v682_v48 = vadd.f32 %v3704_v3, %v661_v33  ;;  %v702_v63 = vadd.f32 %v3705_v28, %v681_v10  ;;  %v1193_v41 = vmul.f32 %v2876_v50, %v2867_v58  ;;  %v3706_v54 = vld [vmem:[#allocation39_spill] sm:$0xff]  ;;  %v3707_v55 = vld [vmem:[#allocation24_spill] sm:$0xff]  ;;  %v736_v4 = vmul.f32 %v2078_v45, %v617_v34 }
  0xa5   : > { %v799_v37 = vadd.f32 %v3706_v54, %v764_v29  ;;  %v683_v38 = vadd.f32 %v2747_v2, %v662_v15  ;;  %v1180_v23 = vadd.f32 %v1172_v56, %v1159_v24  ;;  %v978_v9 = vadd.f32 %v3707_v55, %v957_v20  ;;  %v1251_v47 = vld [vmem:[#allocation2 + $0x6] sm:$0xff]  ;;  %v2922_v56 = vld [vmem:[#allocation2 + $0x16] sm:$0xff] }
  0xa6   : > { %v703_v25 = vadd.f32 %v2751_v61, %v682_v48  ;;  %v723_v32 = vadd.f32 %v2754_v36, %v702_v63  ;;  %v1214_v31 = vmul.f32 %v2890_v49, %v2884_v21  ;;  %v3709_v22 = vld [vmem:[#allocation80_spill] sm:$0xff]  ;;  %v1235_v59 = vmul.f32 %v2906_v8, %v2899_v13  ;;  %v3712_v33 = vld [vmem:[#allocation47_spill] sm:$0xff]  ;;  %v3713_v29 = vld [vmem:[#allocation94_spill] sm:$0xff] }
  0xa7   : > { %v820_v17 = vadd.f32 %v3708_v35, %v799_v37  ;;  %v704_v2 = vadd.f32 %v696_v39, %v683_v38  ;;  %v1201_v11 = vadd.f32 %v1193_v41, %v1180_v23  ;;  %v999_v0 = vadd.f32 %v3709_v22, %v978_v9  ;;  %v3710_v45 = vld [vmem:[#allocation44_spill] sm:$0xff]  ;;  %v2927_v39 = vld [vmem:[%s3390_s0 + $0x6] ss:$0 sm:$0xff]  ;;  %v3715_v20 = vld [vmem:[#allocation129_spill] sm:$0xff] }
  0xa8   : > { %v724_v26 = vadd.f32 %v716_v57, %v703_v25  ;;  %v744_v16 = vadd.f32 %v736_v4, %v723_v32  ;;  %v1033_v61 = vmul.f32 %v3710_v45, %v3676_v30  ;;  %v3711_v34 = vld [vmem:[#allocation64_spill] sm:$0xff]  ;;  %v3714_v24 = vld [vmem:[#allocation59_spill] sm:$0xff]  ;;  %v1270_v30 = vmul.f32 %v2927_v39, %v1251_v47  ;;  %v3719_v4 = vld [vmem:[#allocation61_spill] sm:$0xff] }
  0xa9   : > { %v841_v36 = vadd.f32 %v3711_v34, %v820_v17  ;;  %v725_v18 = vadd.f32 %v3712_v33, %v704_v2  ;;  %v1222_v10 = vadd.f32 %v1214_v31, %v1201_v11  ;;  %v1020_v15 = vadd.f32 %v3713_v29, %v999_v0  ;;  %v3716_v48 = vld [vmem:[#allocation8_spill] sm:$0xff]  ;;  %v3718_v55 = vld [vmem:[#allocation131_spill] sm:$0xff]  ;;  %v3720_v35 = vld [vmem:[#allocation5_spill] sm:$0xff] }
  0xaa   : > { %v745_v5 = vadd.f32 %v3714_v24, %v724_v26  ;;  %v765_v57 = vadd.f32 %v3715_v20, %v744_v16  ;;  %v1054_v3 = vmul.f32 %v2802_v60, %v3681_v53  ;;  %v3717_v63 = vld [vmem:[#allocation60_spill] sm:$0xff]  ;;  %v3721_v2 = vld [vmem:[#allocation7_spill] sm:$0xff]  ;;  %v2957_v0 = vld [vmem:[#allocation2 + $0x36] sm:$0xff] }
  0xab   : > { %v862_v28 = vadd.f32 %v3716_v48, %v841_v36  ;;  %v746_v41 = vadd.f32 %v3717_v63, %v725_v18  ;;  %v1243_v54 = vadd.f32 %v1235_v59, %v1222_v10  ;;  %v2937_v37 = vld [vmem:[#allocation2 + $0x26] sm:$0xff]  ;;  %v1041_v23 = vadd.f32 %v1033_v61, %v1020_v15  ;;  %v2951_v31 = vld [vmem:[%s3390_s0 + $0x2e] ss:$0 sm:$0xff]  ;;  %v2962_v16 = vld [vmem:[%s3390_s0 + $0x14] ss:$0 sm:$0xff] }
  0xac   : > { %v2942_v38 = vld [vmem:[%s3390_s0 + $0xd] ss:$0 sm:$0xff]  ;;  %v766_v9 = vadd.f32 %v3718_v55, %v745_v5  ;;  %v800_v25 = vadd.f32 %v3719_v4, %v765_v57  ;;  %v1075_v17 = vmul.f32 %v2951_v31, %v3720_v35  ;;  %v2967_v59 = vld [vmem:[%s3390_s0 + $0x1b] ss:$0 sm:$0xff]  ;;  %v1652_v61 = vld [vmem:[%s3390_s0 + $0x18] ss:$0 sm:$0xff]  ;;  %v1312_v15 = vmul.f32 %v2962_v16, %v2937_v37 }
  0xad   : > { %v1291_v32 = vmul.f32 %v2942_v38, %v2922_v56  ;;  %v883_v11 = vadd.f32 %v3721_v2, %v862_v28  ;;  %v3722_v47 = vld [vmem:[#allocation132_spill] sm:$0xff]  ;;  %v1278_v26 = vadd.f32 %v1270_v30, %v1243_v54  ;;  %v1062_v45 = vadd.f32 %v1054_v3, %v1041_v23  ;;  %v3724_v33 = vld [vmem:[#allocation113_spill] sm:$0xff]  ;;  %v2988_v3 = vld [vmem:[%s3390_s0 + $0x22] ss:$0 sm:$0xff] }
  0xae   : > { %v767_v22 = vadd.f32 %v3722_v47, %v746_v41  ;;  %v2972_v34 = vld [vmem:[#allocation2 + $0xa3] sm:$0xff]  ;;  %v801_v18 = vadd.f32 %v3724_v33, %v766_v9  ;;  %v3725_v10 = vld [vmem:[#allocation133_spill] sm:$0xff]  ;;  %v3727_v28 = vld [vmem:[#allocation22_spill] sm:$0xff] }
  0xaf   : > { %3723 = vst [vmem:[#allocation120_spill] sm:$0xff] %v2972_v34  ;;  %v857_v36 = vmul.f32 %v2972_v34, %v1652_v61  ;;  %v821_v29 = vadd.f32 %v3725_v10, %v800_v25  ;;  %v2980_v24 = vadd.f32 %v2827_v1, %v883_v11  ;;  %v3726_v5 = vld [vmem:[#allocation137_spill] sm:$0xff]  ;;  %v2983_v57 = vld [vmem:[#allocation2 + $0x46] sm:$0xff]  ;;  %v1299_v30 = vadd.f32 %v1291_v32, %v1278_v26  ;;  %v3728_v41 = vld [vmem:[#allocation138_spill] sm:$0xff] }
  0xb0   : > { %v802_v20 = vadd.f32 %v3726_v5, %v767_v22  ;;  %v1083_v48 = vadd.f32 %v1075_v17, %v1062_v45  ;;  %v958_v63 = vadd.f32 %v3727_v28, %v2788_v27  ;;  %v822_v54 = vadd.f32 %v3728_v41, %v801_v18  ;;  %v3729_v23 = vld [vmem:[#allocation4_spill] sm:$0xff]  ;;  %v2997_v25 = vld [vmem:[#allocation2 + $0x56] sm:$0xff]  ;;  %v1654_v47 = vld [vmem:[%s3390_s0 + $0x1f] ss:$0 sm:$0xff] }
  0xb1   : > { %v842_v55 = vadd.f32 %v3729_v23, %v821_v29  ;;  %v1333_v1 = vmul.f32 %v2967_v59, %v2957_v0  ;;  %v3730_v9 = vld [vmem:[#allocation84_spill] sm:$0xff]  ;;  %v1320_v32 = vadd.f32 %v1312_v15, %v1299_v30  ;;  %v3731_v17 = vld [vmem:[#allocation33_spill] sm:$0xff]  ;;  %v1131_v27 = vmul.f32 %v2844_v46, %v2835_v40  ;;  %v3733_v61 = vld [vmem:[#allocation18_spill] sm:$0xff] }
  0xb2   : > { %v823_v4 = vadd.f32 %v3730_v9, %v802_v20  ;;  %v3002_v2 = vld [vmem:[%s3390_s0 + $0x29] ss:$0 sm:$0xff]  ;;  %v1118_v11 = vadd.f32 %v3731_v17, %v1083_v48  ;;  %v877_v22 = vmul.f32 %v1654_v47, %v2972_v34  ;;  %v3732_v26 = vld [vmem:[#allocation89_spill] sm:$0xff]  ;;  %v1354_v18 = vmul.f32 %v2988_v3, %v2983_v57 }
  0xb3   : > { %v843_v45 = vadd.f32 %v3732_v26, %v822_v54  ;;  %v863_v33 = vadd.f32 %v3733_v61, %v842_v55  ;;  %v3015_v10 = vld [vmem:[#allocation2 + $0x94] sm:$0xff]  ;;  %v3018_v15 = vld [vmem:[#allocation2 + $0x66] sm:$0xff]  ;;  %v1341_v5 = vadd.f32 %v1333_v1, %v1320_v32  ;;  %v3023_v20 = vld [vmem:[%s3390_s0 + $0x30] ss:$0 sm:$0xff]  ;;  %v1152_v48 = vmul.f32 %v2865_v44, %v2848_v62 }
  0xb4   : > { %v844_v29 = vadd.f32 %v2774_v42, %v823_v4  ;;  %v1139_v30 = vadd.f32 %v1131_v27, %v1118_v11  ;;  %v1375_v54 = vmul.f32 %v3002_v2, %v2997_v25  ;;  %v3734_v42 = vld [vmem:[#allocation79_spill] sm:$0xff]  ;;  %v1173_v4 = vmul.f32 %v2856_v12, %v2867_v58  ;;  %v3037_v32 = vld [vmem:[%s3390_s0 + $0x12] ss:$0 sm:$0xff]  ;;  %v3736_v11 = vld [vmem:[#allocation48_spill] sm:$0xff] }
  0xb5   : > { %v864_v28 = vadd.f32 %v2794_v7, %v843_v45  ;;  %v884_v41 = vadd.f32 %v2818_v52, %v863_v33  ;;  %v979_v23 = vadd.f32 %v3734_v42, %v958_v63  ;;  %v1362_v1 = vadd.f32 %v1354_v18, %v1341_v5  ;;  %v3049_v61 = vld [vmem:[#allocation2 + $0x75] sm:$0xff]  ;;  %v1656_v33 = vld [vmem:[%s3390_s0 + $0x26] ss:$0 sm:$0xff] }
  0xb6   : > { %v865_v55 = vadd.f32 %v857_v36, %v844_v29  ;;  %v1160_v9 = vadd.f32 %v1152_v48, %v1139_v30  ;;  %v3041_v7 = vmul.f32 %v3037_v32, %v3015_v10  ;;  %v1396_v63 = vmul.f32 %v3023_v20, %v3018_v15  ;;  %v3735_v36 = vld [vmem:[#allocation93_spill] sm:$0xff]  ;;  %v3737_v18 = vld [vmem:[#allocation62_spill] sm:$0xff]  ;;  %v1415_v5 = vld [vmem:[%s1771_s29 + $0x1] sm:$0xff] }
  0xb7   : > { %v885_v52 = vadd.f32 %v877_v22, %v864_v28  ;;  %v1000_v17 = vadd.f32 %v3735_v36, %v979_v23  ;;  %v1383_v47 = vadd.f32 %v1375_v54, %v1362_v1  ;;  %v1194_v45 = vmul.f32 %v2876_v50, %v2884_v21  ;;  %v3738_v30 = vld [vmem:[#allocation107_spill] sm:$0xff] }
  0xb8   : > { %v886_v27 = vadd.f32 %v3736_v11, %v865_v55  ;;  %v1181_v26 = vadd.f32 %v1173_v4, %v1160_v9  ;;  %v897_v22 = vmul.f32 %v1656_v33, %v2972_v34  ;;  %v3061_v28 = vld [vmem:[%s3390_s0 + $0x20] ss:$0 sm:$0xff]  ;;  %v1215_v9 = vmul.f32 %v2890_v49, %v2899_v13  ;;  %v1658_v4 = vld [vmem:[%s3390_s0 + $0x2d] ss:$0 sm:$0xff] }
  0xb9   : > { %v906_v29 = vadd.f32 %v3737_v18, %v885_v52  ;;  %v1021_v48 = vadd.f32 %v3738_v30, %v1000_v17  ;;  %v1034_v54 = vmul.f32 %v3061_v28, %v3681_v53  ;;  %v3739_v42 = vld [vmem:[#allocation63_spill] sm:$0xff]  ;;  %v1404_v55 = vadd.f32 %v1396_v63, %v1383_v47 }
  0xba   : > { %v907_v23 = vadd.f32 %v3739_v42, %v886_v27  ;;  %v1202_v1 = vadd.f32 %v1194_v45, %v1181_v26  ;;  %v917_v52 = vmul.f32 %v1658_v4, %v2972_v34  ;;  %v3740_v36 = vld [vmem:[#allocation135_spill] sm:$0xff]  ;;  %v1055_v63 = vmul.f32 %v2802_v60, %v3720_v35  ;;  %v3741_v27 = vld [vmem:[#allocation136_spill] sm:$0xff] }
  0xbb   : > { %v927_v17 = vadd.f32 %v3740_v36, %v906_v29  ;;  %v3076_v11 = vld [vmem:[%s3391_s1] ss:$0 sm:$0xff]  ;;  %v1042_v33 = vadd.f32 %v1034_v54, %v1021_v48  ;;  %v1416_v26 = vadd.f32 %v1415_v5, %v1404_v55  ;;  %v1236_v18 = vmul.f32 %v2906_v8, %v3049_v61  ;;  %v3743_v36 = vld [vmem:[#allocation144_spill] sm:$0xff]  ;;  %v3744_v55 = vld [vmem:[#allocation78_spill] sm:$0xff] }
  0xbc   : > { %v928_v47 = vadd.f32 %v3741_v27, %v907_v23  ;;  %v1223_v45 = vadd.f32 %v1215_v9, %v1202_v1  ;;  %v3742_v30 = vld [vmem:[#allocation139_spill] sm:$0xff]  ;;  %v1271_v29 = vmul.f32 %v2927_v39, %v2922_v56  ;;  %v1076_v48 = vmul.f32 %v2951_v31, %v2696_v14 }
  0xbd   : > { %v962_v42 = vadd.f32 %v3742_v30, %v927_v17  ;;  %v1063_v4 = vadd.f32 %v1055_v63, %v1042_v33  ;;  %v905_v54 = vadd.f32 %v897_v22, %v884_v41  ;;  %v1423_v23 = vadd.f32 %v3076_v11, %v1416_v26  ;;  %v3092_v9 = vld [vmem:[#allocation2 + $0xa4] sm:$0xff] }
  0xbe   : > { %v963_v34 = vadd.f32 %v3743_v36, %v928_v47  ;;  %v1244_v5 = vadd.f32 %v1236_v18, %v1223_v45  ;;  %v959_v1 = vadd.f32 %v3744_v55, %v2878_v51  ;;  %v3745_v17 = vld [vmem:[#allocation31_spill] sm:$0xff]  ;;  %v925_v22 = vadd.f32 %v917_v52, %v2980_v24  ;;  %v1660_v47 = vld [vmem:[%s3390_s0 + $0x19] ss:$0 sm:$0xff]  ;;  %v3749_v36 = vld [vmem:[#allocation92_spill] sm:$0xff] }
  0xbf   : > { %v3095_v27 = vadd.f32 %v3745_v17, %v962_v42  ;;  %v1084_v30 = vadd.f32 %v1076_v48, %v1063_v4  ;;  %v3100_v56 = vld [vmem:[%s3390_s0 + $0x5] ss:$0 sm:$0xff]  ;;  %1424 = vst [vmem:[%s2281_s24 + $0x1] sm:$0xff] %v1423_v23  ;;  %v1292_v63 = vmul.f32 %v2942_v38, %v2937_v37  ;;  %v3115_v26 = vmul.f32 %v1660_v47, %v3015_v10  ;;  %v3747_v52 = vld [vmem:[#allocation134_spill] sm:$0xff] }
  0xc0   : > { %v1111_v41 = vmul.f32 %v3100_v56, %v2835_v40  ;;  %v3106_v33 = vadd.f32 %v2732_v6, %v963_v34  ;;  %v1279_v51 = vadd.f32 %v1271_v29, %v1244_v5  ;;  %v3119_v40 = vmul.f32 %v3061_v28, %v3015_v10  ;;  %v3750_v5 = vld [vmem:[#allocation91_spill] sm:$0xff] }
  0xc1   : > { %v1132_v6 = vmul.f32 %v2844_v46, %v2848_v62  ;;  %v3124_v34 = vmul.f32 %v1660_v47, %v3092_v9  ;;  %v926_v45 = vadd.f32 %v3747_v52, %v905_v54  ;;  %v1313_v42 = vmul.f32 %v2962_v16, %v2957_v0  ;;  %v1661_v52 = vld [vmem:[#allocation2 + $0xb4] sm:$0xff] }
  0xc2   : > { %v1119_v24 = vadd.f32 %v1111_v41, %v1084_v30  ;;  %v1300_v18 = vadd.f32 %v1292_v63, %v1279_v51  ;;  %v3131_v29 = vmul.f32 %v3061_v28, %v3092_v9  ;;  %v1153_v48 = vmul.f32 %v2865_v44, %v2867_v58  ;;  %v3752_v63 = vld [vmem:[#allocation106_spill] sm:$0xff] }
  0xc3   : > { %3746 = vst [vmem:[#allocation75_spill] sm:$0xff] %v3124_v34  ;;  %v980_v23 = vadd.f32 %v3749_v36, %v959_v1  ;;  %v960_v55 = vadd.f32 %v3750_v5, %v925_v22  ;;  %v3139_v17 = vmul.f32 %v2802_v60, %v3092_v9  ;;  %v1334_v30 = vmul.f32 %v2967_v59, %v2983_v57  ;;  %v3754_v22 = vld [vmem:[#allocation110_spill] sm:$0xff] }
  0xc4   : > { %3748 = vst [vmem:[#allocation83_spill] sm:$0xff] %v3131_v29  ;;  %v1140_v4 = vadd.f32 %v1132_v6, %v1119_v24  ;;  %v1321_v54 = vadd.f32 %v1313_v42, %v1300_v18  ;;  %v1174_v51 = vmul.f32 %v2856_v12, %v2884_v21  ;;  %v1014_v6 = vmul.f32 %v1660_v47, %v3681_v53  ;;  %v3153_v42 = vld [vmem:[#allocation2 + $0x76] sm:$0xff]  ;;  %v3757_v29 = vld [vmem:[#allocation140_spill] sm:$0xff] }
  0xc5   : > { %3751 = vst [vmem:[#allocation43_spill] sm:$0xff] %v3139_v17  ;;  %v1001_v24 = vadd.f32 %v3752_v63, %v980_v23  ;;  %v3148_v1 = vmul.f32 %v1661_v52, %v2802_v60  ;;  %v961_v36 = vadd.f32 %v3754_v22, %v926_v45  ;;  %v1355_v18 = vmul.f32 %v2988_v3, %v2997_v25  ;;  %v3755_v63 = vld [vmem:[#allocation105_spill] sm:$0xff]  ;;  %v3165_v22 = vld [vmem:[#allocation2 + $0x85] sm:$0xff] }
  0xc6   : > { %v1161_v41 = vadd.f32 %v1153_v48, %v1140_v4  ;;  %v1342_v5 = vadd.f32 %v1334_v30, %v1321_v54  ;;  %v1195_v48 = vmul.f32 %v2876_v50, %v2899_v13  ;;  %v1035_v23 = vmul.f32 %v3061_v28, %v3720_v35 }
  0xc7   : > { %3753 = vst [vmem:[#allocation3_spill] sm:$0xff] %v3148_v1  ;;  %v1022_v34 = vadd.f32 %v1014_v6, %v1001_v24  ;;  %v981_v52 = vadd.f32 %v3755_v63, %v960_v55  ;;  %v1662_v1 = vld [vmem:[#allocation2 + $0xc4] sm:$0xff]  ;;  %v1376_v30 = vmul.f32 %v3002_v2, %v3018_v15  ;;  %v1056_v6 = vmul.f32 %v2802_v60, %v2696_v14 }
  0xc8   : > { %v1182_v4 = vadd.f32 %v1174_v51, %v1161_v41  ;;  %v3161_v45 = vmul.f32 %v1662_v1, %v2802_v60  ;;  %v1363_v54 = vadd.f32 %v1355_v18, %v1342_v5  ;;  %v1216_v51 = vmul.f32 %v2890_v49, %v3049_v61  ;;  %v1425_v18 = vld [vmem:[%s1771_s29 + $0x9] sm:$0xff] }
  0xc9   : > { %v1043_v24 = vadd.f32 %v1035_v23, %v1022_v34  ;;  %v982_v55 = vadd.f32 %v3757_v29, %v961_v36  ;;  %v1397_v1 = vmul.f32 %v3023_v20, %v3153_v42  ;;  %v994_v5 = vmul.f32 %v3037_v32, %v3681_v53 }
  0xca   : > { %3756 = vst [vmem:[#allocation96_spill] sm:$0xff] %v3161_v45  ;;  %v1203_v41 = vadd.f32 %v1195_v48, %v1182_v4  ;;  %v1384_v63 = vadd.f32 %v1376_v30, %v1363_v54  ;;  %v1237_v4 = vmul.f32 %v2906_v8, %v3165_v22  ;;  %v1077_v34 = vmul.f32 %v2951_v31, %v3015_v10 }
  0xcb   : > { %v1064_v48 = vadd.f32 %v1056_v6, %v1043_v24  ;;  %v1272_v29 = vmul.f32 %v2927_v39, %v2937_v37  ;;  %v1002_v36 = vadd.f32 %v994_v5, %v981_v52  ;;  %v1015_v54 = vmul.f32 %v1660_v47, %v3720_v35 }
  0xcc   : > { %v1224_v45 = vadd.f32 %v1216_v51, %v1203_v41  ;;  %v1405_v23 = vadd.f32 %v1397_v1, %v1384_v63  ;;  %v1293_v53 = vmul.f32 %v2942_v38, %v2957_v0  ;;  %v1112_v41 = vmul.f32 %v3100_v56, %v2848_v62 }
  0xcd   : > { %v1085_v17 = vadd.f32 %v1077_v34, %v1064_v48  ;;  %v1004_v51 = vadd.f32 %v2711_v43, %v3095_v27  ;;  %v1023_v6 = vadd.f32 %v1015_v54, %v1002_v36  ;;  %v1036_v37 = vmul.f32 %v3061_v28, %v2696_v14  ;;  %v3205_v28 = vld [vmem:[#allocation2 + $0x86] sm:$0xff] }
  0xce   : > { %v1245_v30 = vadd.f32 %v1237_v4, %v1224_v45  ;;  %v1426_v24 = vadd.f32 %v1425_v18, %v1405_v23  ;;  %v1314_v47 = vmul.f32 %v2962_v16, %v2983_v57  ;;  %v1133_v63 = vmul.f32 %v2844_v46, %v2867_v58 }
  0xcf   : > { %v1120_v45 = vadd.f32 %v1112_v41, %v1085_v17  ;;  %v1335_v62 = vmul.f32 %v2967_v59, %v2997_v25  ;;  %v1044_v43 = vadd.f32 %v1036_v37, %v1023_v6  ;;  %v1057_v27 = vmul.f32 %v2802_v60, %v3015_v10 }
  0xd0   : > { %v1280_v52 = vadd.f32 %v1272_v29, %v1245_v30  ;;  %v1427_v1 = vadd.f32 %v3076_v11, %v1426_v24  ;;  %v3203_v14 = vadd.f32 %v3041_v7, %v3106_v33  ;;  %v1154_v18 = vmul.f32 %v2865_v44, %v2884_v21  ;;  %v3216_v7 = vld [vmem:[#allocation2 + $0x95] sm:$0xff] }
  0xd1   : > { %v1141_v17 = vadd.f32 %v1133_v63, %v1120_v45  ;;  %v1356_v4 = vmul.f32 %v2988_v3, %v3018_v15  ;;  %v1377_v48 = vmul.f32 %v3002_v2, %v3153_v42  ;;  %v1065_v34 = vadd.f32 %v1057_v27, %v1044_v43  ;;  %v3239_v63 = vld [vmem:[#allocation2 + $0x96] sm:$0xff] }
  0xd2   : > { %v1301_v5 = vadd.f32 %v1293_v53, %v1280_v52  ;;  %1428 = vst [vmem:[%s2281_s24 + $0x9] sm:$0xff] %v1427_v1  ;;  %v1078_v60 = vmul.f32 %v2951_v31, %v3092_v9  ;;  %v1175_v23 = vmul.f32 %v2856_v12, %v2899_v13  ;;  %v995_v29 = vmul.f32 %v3037_v32, %v3720_v35 }
  0xd3   : > { %v1162_v33 = vadd.f32 %v1154_v18, %v1141_v17  ;;  %v1398_v36 = vmul.f32 %v3023_v20, %v3205_v28  ;;  %v1196_v54 = vmul.f32 %v2876_v50, %v3049_v61  ;;  %v1113_v31 = vmul.f32 %v3100_v56, %v2867_v58 }
  0xd4   : > { %v1322_v10 = vadd.f32 %v1314_v47, %v1301_v5  ;;  %v1086_v30 = vadd.f32 %v1078_v60, %v1065_v34  ;;  %v1217_v41 = vmul.f32 %v2890_v49, %v3165_v22  ;;  %v1003_v24 = vadd.f32 %v995_v29, %v982_v55  ;;  %v3758_v29 = vld [vmem:[#allocation43_spill] sm:$0xff] }
  0xd5   : > { %v1183_v53 = vadd.f32 %v1175_v23, %v1162_v33  ;;  %v1238_v6 = vmul.f32 %v2906_v8, %v3216_v7  ;;  %v1273_v35 = vmul.f32 %v2927_v39, %v2957_v0  ;;  %v1134_v37 = vmul.f32 %v2844_v46, %v2884_v21  ;;  %v3258_v23 = vld [vmem:[#allocation2 + $0xa5] sm:$0xff] }
  0xd6   : > { %v1343_v9 = vadd.f32 %v1335_v62, %v1322_v10  ;;  %v1121_v32 = vadd.f32 %v1113_v31, %v1086_v30  ;;  %v1294_v58 = vmul.f32 %v2942_v38, %v2983_v57  ;;  %v1024_v45 = vadd.f32 %v2716_v19, %v1003_v24  ;;  %v1429_v19 = vld [vmem:[%s1771_s29 + $0x11] sm:$0xff] }
  0xd7   : > { %v1204_v47 = vadd.f32 %v1196_v54, %v1183_v53  ;;  %v1315_v55 = vmul.f32 %v2962_v16, %v2997_v25  ;;  %v1336_v0 = vmul.f32 %v2967_v59, %v3018_v15  ;;  %v1155_v62 = vmul.f32 %v2865_v44, %v2899_v13 }
  0xd8   : > { %v1364_v52 = vadd.f32 %v1356_v4, %v1343_v9  ;;  %v1142_v1 = vadd.f32 %v1134_v37, %v1121_v32  ;;  %v1357_v5 = vmul.f32 %v2988_v3, %v3153_v42  ;;  %v1045_v17 = vadd.f32 %v3119_v40, %v1024_v45  ;;  %v3759_v9 = vld [vmem:[#allocation83_spill] sm:$0xff] }
  0xd9   : > { %v1225_v27 = vadd.f32 %v1217_v41, %v1204_v47  ;;  %v1378_v18 = vmul.f32 %v3002_v2, %v3205_v28  ;;  %v1176_v34 = vmul.f32 %v2856_v12, %v3049_v61  ;;  %v1025_v60 = vadd.f32 %v3115_v26, %v1004_v51  ;;  %v3760_v51 = vld [vmem:[#allocation27_spill] sm:$0xff] }
  0xda   : > { %v1385_v43 = vadd.f32 %v1377_v48, %v1364_v52  ;;  %v1163_v4 = vadd.f32 %v1155_v62, %v1142_v1  ;;  %v1399_v48 = vmul.f32 %v3023_v20, %v3239_v63  ;;  %v1066_v54 = vadd.f32 %v3758_v29, %v1045_v17  ;;  %v3761_v52 = vld [vmem:[#allocation3_spill] sm:$0xff] }
  0xdb   : > { %v1246_v33 = vadd.f32 %v1238_v6, %v1225_v27  ;;  %v1197_v30 = vmul.f32 %v2876_v50, %v3165_v22  ;;  %v1218_v31 = vmul.f32 %v2890_v49, %v3216_v7  ;;  %v1046_v53 = vadd.f32 %v3759_v9, %v1025_v60  ;;  %v3762_v27 = vld [vmem:[#allocation28_spill] sm:$0xff] }
  0xdc   : > { %v1406_v10 = vadd.f32 %v1398_v36, %v1385_v43  ;;  %v1184_v40 = vadd.f32 %v1176_v34, %v1163_v4  ;;  %v1087_v36 = vadd.f32 %v3760_v51, %v1066_v54  ;;  %v1114_v24 = vmul.f32 %v3100_v56, %v2884_v21  ;;  %v1101_v51 = vld [vmem:[#allocation2 + $0xb5] sm:$0xff] }
  0xdd   : > { %v1281_v26 = vadd.f32 %v1273_v35, %v1246_v33  ;;  %v1239_v32 = vmul.f32 %v2906_v8, %v3258_v23  ;;  %v1274_v37 = vmul.f32 %v2927_v39, %v2983_v57  ;;  %v1067_v47 = vadd.f32 %v3761_v52, %v1046_v53 }
  0xde   : > { %v1430_v41 = vadd.f32 %v1429_v19, %v1406_v10  ;;  %v1205_v6 = vadd.f32 %v1197_v30, %v1184_v40  ;;  %v1122_v62 = vadd.f32 %v1114_v24, %v1087_v36  ;;  %v1135_v35 = vmul.f32 %v2844_v46, %v2899_v13  ;;  %v3764_v24 = vld [vmem:[#allocation49_spill] sm:$0xff] }
  0xdf   : > { %v1302_v1 = vadd.f32 %v1294_v58, %v1281_v26  ;;  %v1295_v21 = vmul.f32 %v2942_v38, %v2997_v25  ;;  %v1088_v17 = vadd.f32 %v3762_v27, %v1067_v47  ;;  %v1115_v19 = vmul.f32 %v3100_v56, %v2899_v13 }
  0xe0   : > { %v1431_v45 = vadd.f32 %v3076_v11, %v1430_v41  ;;  %v1226_v43 = vadd.f32 %v1218_v31, %v1205_v6  ;;  %v1316_v4 = vmul.f32 %v2962_v16, %v3018_v15  ;;  %v1143_v34 = vadd.f32 %v1135_v35, %v1122_v62  ;;  %v1433_v35 = vld [vmem:[%s1771_s29 + $0x19] sm:$0xff] }
  0xe1   : > { %v1323_v57 = vadd.f32 %v1315_v55, %v1302_v1  ;;  %v1156_v58 = vmul.f32 %v2865_v44, %v3049_v61  ;;  %v1337_v10 = vmul.f32 %v2967_v59, %v3153_v42  ;;  %v1123_v33 = vadd.f32 %v1115_v19, %v1088_v17  ;;  %v3763_v55 = vld [vmem:[#allocation75_spill] sm:$0xff]  ;;  %v3765_v1 = vld [vmem:[#allocation96_spill] sm:$0xff] }
  0xe2   : > { %1432 = vst [vmem:[%s2281_s24 + $0x11] sm:$0xff] %v1431_v45  ;;  %v1247_v60 = vadd.f32 %v1239_v32, %v1226_v43  ;;  %v1136_v29 = vmul.f32 %v2844_v46, %v3049_v61  ;;  %v1177_v13 = vmul.f32 %v2856_v12, %v3165_v22  ;;  %v1026_v30 = vadd.f32 %v3763_v55, %v3203_v14 }
  0xe3   : > { %v1344_v54 = vadd.f32 %v1336_v0, %v1323_v57  ;;  %v1164_v40 = vadd.f32 %v1156_v58, %v1143_v34  ;;  %v1358_v9 = vmul.f32 %v2988_v3, %v3205_v28  ;;  %v1157_v41 = vmul.f32 %v2865_v44, %v3165_v22  ;;  %v1102_v34 = vld [vmem:[#allocation2 + $0xc5] sm:$0xff]  ;;  %v3766_v58 = vld [vmem:[#allocation29_spill] sm:$0xff] }
  0xe4   : > { %v1282_v31 = vadd.f32 %v1274_v37, %v1247_v60  ;;  %v1144_v53 = vadd.f32 %v1136_v29, %v1123_v33  ;;  %v1198_v0 = vmul.f32 %v2876_v50, %v3216_v7  ;;  %v1047_v6 = vadd.f32 %v3764_v24, %v1026_v30 }
  0xe5   : > { %v1365_v26 = vadd.f32 %v1357_v5, %v1344_v54  ;;  %v1185_v36 = vadd.f32 %v1177_v13, %v1164_v40  ;;  %v1379_v14 = vmul.f32 %v3002_v2, %v3239_v63  ;;  %v1178_v52 = vmul.f32 %v2856_v12, %v3216_v7  ;;  %v3319_v13 = vld [vmem:[#allocation2 + $0xa6] sm:$0xff] }
  0xe6   : > { %v1303_v32 = vadd.f32 %v1295_v21, %v1282_v31  ;;  %v1165_v37 = vadd.f32 %v1157_v41, %v1144_v53  ;;  %v1219_v5 = vmul.f32 %v2890_v49, %v3258_v23  ;;  %v1068_v62 = vadd.f32 %v3765_v1, %v1047_v6 }
  0xe7   : > { %v1386_v47 = vadd.f32 %v1378_v18, %v1365_v26  ;;  %v1206_v45 = vadd.f32 %v1198_v0, %v1185_v36  ;;  %v1240_v27 = vmul.f32 %v2906_v8, %v1101_v51  ;;  %v1199_v21 = vmul.f32 %v2876_v50, %v3258_v23 }
  0xe8   : > { %v1324_v43 = vadd.f32 %v1316_v4, %v1303_v32  ;;  %v1186_v17 = vadd.f32 %v1178_v52, %v1165_v37  ;;  %v1089_v60 = vadd.f32 %v3766_v58, %v1068_v62  ;;  %v1116_v18 = vmul.f32 %v3100_v56, %v3049_v61 }
  0xe9   : > { %v1407_v19 = vadd.f32 %v1399_v48, %v1386_v47  ;;  %v1227_v57 = vadd.f32 %v1219_v5, %v1206_v45  ;;  %v1275_v29 = vmul.f32 %v2927_v39, %v2997_v25  ;;  %v1220_v4 = vmul.f32 %v2890_v49, %v1101_v51 }
  0xea   : > { %v1345_v33 = vadd.f32 %v1337_v10, %v1324_v43  ;;  %v1207_v54 = vadd.f32 %v1199_v21, %v1186_v17  ;;  %v1124_v48 = vadd.f32 %v1116_v18, %v1089_v60  ;;  %v1137_v30 = vmul.f32 %v2844_v46, %v3165_v22  ;;  %v1437_v22 = vld [vmem:[%s1771_s29 + $0x21] sm:$0xff]  ;;  %v1262_v21 = vld [vmem:[#allocation2 + $0xb6] sm:$0xff] }
  0xeb   : > { %v1434_v40 = vadd.f32 %v1433_v35, %v1407_v19  ;;  %v1248_v55 = vadd.f32 %v1240_v27, %v1227_v57  ;;  %v1296_v61 = vmul.f32 %v2942_v38, %v3018_v15  ;;  %v1241_v25 = vmul.f32 %v2906_v8, %v1102_v34  ;;  %v1103_v35 = vld [vmem:[#allocation2 + $0xd5] sm:$0xff] }
  0xec   : > { %v1366_v31 = vadd.f32 %v1358_v9, %v1345_v33  ;;  %v1228_v56 = vadd.f32 %v1220_v4, %v1207_v54  ;;  %v1145_v41 = vadd.f32 %v1137_v30, %v1124_v48  ;;  %v1158_v26 = vmul.f32 %v2865_v44, %v3216_v7 }
  0xed   : > { %v1435_v10 = vadd.f32 %v3076_v11, %v1434_v40  ;;  %v1283_v53 = vadd.f32 %v1275_v29, %v1248_v55  ;;  %v1400_v0 = vmul.f32 %v3023_v20, %v3319_v13  ;;  %v1276_v46 = vmul.f32 %v2927_v39, %v3018_v15  ;;  %v1263_v29 = vld [vmem:[#allocation2 + $0xc6] sm:$0xff] }
  0xee   : > { %v1387_v36 = vadd.f32 %v1379_v14, %v1366_v31  ;;  %v1249_v24 = vadd.f32 %v1241_v25, %v1228_v56  ;;  %v1317_v6 = vmul.f32 %v2962_v16, %v3153_v42  ;;  %v1166_v32 = vadd.f32 %v1158_v26, %v1145_v41  ;;  %v1441_v40 = vld [vmem:[%s1771_s29 + $0x29] sm:$0xff] }
  0xef   : > { %1436 = vst [vmem:[%s2281_s24 + $0x19] sm:$0xff] %v1435_v10  ;;  %v1304_v9 = vadd.f32 %v1296_v61, %v1283_v53  ;;  %v1179_v37 = vmul.f32 %v2856_v12, %v3258_v23  ;;  %v1297_v7 = vmul.f32 %v2942_v38, %v3153_v42  ;;  %v1338_v47 = vmul.f32 %v2967_v59, %v3205_v28  ;;  %v1445_v10 = vld [vmem:[%s1771_s29 + $0x31] sm:$0xff] }
  0xf0   : > { %v1408_v52 = vadd.f32 %v1400_v0, %v1387_v36  ;;  %v1284_v44 = vadd.f32 %v1276_v46, %v1249_v24  ;;  %v1200_v45 = vmul.f32 %v2876_v50, %v1101_v51  ;;  %v1318_v62 = vmul.f32 %v2962_v16, %v3205_v28  ;;  %v1264_v46 = vld [vmem:[#allocation2 + $0xd6] sm:$0xff] }
  0xf1   : > { %v1325_v14 = vadd.f32 %v1317_v6, %v1304_v9  ;;  %v1187_v15 = vadd.f32 %v1179_v37, %v1166_v32  ;;  %v1359_v23 = vmul.f32 %v2988_v3, %v3239_v63  ;;  %v1221_v27 = vmul.f32 %v2890_v49, %v1102_v34  ;;  %v3767_v32 = vld [vmem:[#allocation120_spill] sm:$0xff] }
  0xf2   : > { %v1438_v5 = vadd.f32 %v1437_v22, %v1408_v52  ;;  %v1305_v1 = vadd.f32 %v1297_v7, %v1284_v44  ;;  %v1339_v50 = vmul.f32 %v2967_v59, %v3239_v63  ;;  %v1380_v57 = vmul.f32 %v3002_v2, %v3319_v13 }
  0xf3   : > { %v1346_v12 = vadd.f32 %v1338_v47, %v1325_v14  ;;  %v1208_v43 = vadd.f32 %v1200_v45, %v1187_v15  ;;  %v1242_v60 = vmul.f32 %v2906_v8, %v1103_v35  ;;  %v1360_v49 = vmul.f32 %v2988_v3, %v3319_v13 }
  0xf4   : > { %v1439_v17 = vadd.f32 %v3076_v11, %v1438_v5  ;;  %v1326_v19 = vadd.f32 %v1318_v62, %v1305_v1  ;;  %v1401_v33 = vmul.f32 %v3023_v20, %v1262_v21  ;;  %v1277_v4 = vmul.f32 %v2927_v39, %v3153_v42 }
  0xf5   : > { %v1367_v51 = vadd.f32 %v1359_v23, %v1346_v12  ;;  %v1229_v58 = vadd.f32 %v1221_v27, %v1208_v43  ;;  %v1381_v48 = vmul.f32 %v3002_v2, %v1262_v21  ;;  %v1298_v31 = vmul.f32 %v2942_v38, %v3205_v28 }
  0xf6   : > { %1440 = vst [vmem:[%s2281_s24 + $0x21] sm:$0xff] %v1439_v17  ;;  %v1347_v18 = vadd.f32 %v1339_v50, %v1326_v19  ;;  %v1402_v56 = vmul.f32 %v3023_v20, %v1263_v29  ;;  %v1319_v39 = vmul.f32 %v2962_v16, %v3239_v63  ;;  %v1340_v36 = vmul.f32 %v2967_v59, %v3319_v13 }
  0xf7   : > { %v1388_v34 = vadd.f32 %v1380_v57, %v1367_v51  ;;  %v1250_v54 = vadd.f32 %v1242_v60, %v1229_v58  ;;  %v1361_v28 = vmul.f32 %v2988_v3, %v1262_v21  ;;  %v1382_v9 = vmul.f32 %v3002_v2, %v1263_v29 }
  0xf8   : > { %v1368_v55 = vadd.f32 %v1360_v49, %v1347_v18  ;;  %v1403_v63 = vmul.f32 %v3023_v20, %v1264_v46 }
  0xf9   : > { %v1409_v8 = vadd.f32 %v1401_v33, %v1388_v34  ;;  %v1285_v30 = vadd.f32 %v1277_v4, %v1250_v54 }
  0xfa   : > { %v1389_v61 = vadd.f32 %v1381_v48, %v1368_v55 }
  0xfb   : > { %v1442_v25 = vadd.f32 %v1441_v40, %v1409_v8  ;;  %v1306_v53 = vadd.f32 %v1298_v31, %v1285_v30 }
  0xfc   : > { %v1410_v42 = vadd.f32 %v1402_v56, %v1389_v61 }
  0xfd   : > { %v1443_v41 = vadd.f32 %v3076_v11, %v1442_v25  ;;  %v1327_v26 = vadd.f32 %v1319_v39, %v1306_v53 }
  0xfe   : > { %v1446_v0 = vadd.f32 %v1445_v10, %v1410_v42 }
  0xff   : > { %1444 = vst [vmem:[%s2281_s24 + $0x29] sm:$0xff] %v1443_v41  ;;  %v1348_v38 = vadd.f32 %v1340_v36, %v1327_v26 }
 0x100   : > { %v1447_v24 = vadd.f32 %v3076_v11, %v1446_v0 }
 0x101   : > { %v1369_v22 = vadd.f32 %v1361_v28, %v1348_v38 }
 0x102   : > { %1448 = vst [vmem:[%s2281_s24 + $0x31] sm:$0xff] %v1447_v24 }
 0x103   : > { %v1390_v16 = vadd.f32 %v1382_v9, %v1369_v22 }
 0x105   : > { %v1411_v6 = vadd.f32 %v1403_v63, %v1390_v16 }
 0x107   : > { %v1450_v37 = vadd.f32 %v3767_v32, %v1411_v6 }
 0x109   : > { %v1451_v59 = vadd.f32 %v3076_v11, %v1450_v37 }
 0x10b   : > { %1452 = vst [vmem:[%s2281_s24 + $0x39] sm:$0xff] %v1451_v59 }
 0x10c PF: > { %s13_s14 = sadd.s32 1, %s1685_s14   ;;  %s3768_s12 = smov %s1681_s13 }
 0x10d   : > { %p10_p5 = scmp.ge.s32.totalorder %s13_s14, 4   ;;  %s3769_s13 = smov %s3771_s15 }
 0x10f   :  { %12 = sbr.rel (!%p10_p5) target bundleno = 2 (0x2), region = 76 }

</bundles_post_ra>
